<compile_context>
chip_gen: v5e
topology: v5e:2x2
jax: 0.10.0
libtpu: 0.0.40
codegen_flags: <defaults>
</compile_context>

<pallas_src>
import functools

import jax
import jax.numpy as jnp
from jax import lax
from jax.experimental import pallas as pl
from jax.experimental.pallas import tpu as pltpu

F_IN = 512      # GRU input_size fixed by the module
HIDDEN = 128    # small hidden size for the demo (module default is 2048)


def _round_up(x, m):
    return ((x + m - 1) // m) * m


def gru_chunk_kernel(x_ref, wih_ref, whh_ref, wlin_ref, bgi_ref, bhn_ref,
                     blin_ref, y_ref, h_ref, gi_ref, hs_ref, *,
                     chunk_t, batch_tile, hidden):
    """Process CHUNK_T timesteps for one batch tile (time-major layout)."""
    H = hidden
    rows = chunk_t * batch_tile
    f_in = x_ref.shape[-1]

    # First T-chunk of every batch tile starts the recurrence from h_0 = 0.
    @pl.when(pl.program_id(1) == 0)
    def _():
        h_ref[...] = jnp.zeros_like(h_ref)

    # ---- Phase 1: input projection for the whole chunk (one big MXU matmul) ----
    # (chunk_t, BT, F) -> (chunk_t*BT, F): BT is a multiple of 8 sublanes, so this
    # collapse is layout-preserving (no data movement).
    x_f32 = x_ref[...].reshape(rows, f_in)
    gi_ref[...] = (
        jnp.dot(x_f32.astype(jnp.bfloat16), wih_ref[...],
                preferred_element_type=jnp.float32)
        + bgi_ref[...])                                   # b_ih (+ b_hh for r,z)

    # ---- Phase 2: serial GRU recurrence over the chunk's timesteps ----
    b_hn = bhn_ref[...]                                   # (1, H), hoisted

    def step(ct, h):
        r0 = pl.multiple_of(ct * batch_tile, 8)           # sublane-aligned row start
        gi = gi_ref[pl.ds(r0, batch_tile), :]             # (BT, 3H)
        gh = jnp.dot(h.astype(jnp.bfloat16), whh_ref[...],
                     preferred_element_type=jnp.float32)  # (BT, 3H)
        r = jax.nn.sigmoid(gi[:, 0:H] + gh[:, 0:H])
        z = jax.nn.sigmoid(gi[:, H:2 * H] + gh[:, H:2 * H])
        n = jnp.tanh(gi[:, 2 * H:] + r * (gh[:, 2 * H:] + b_hn))
        h_new = (1.0 - z) * n + z * h
        hs_ref[pl.ds(r0, batch_tile), :] = h_new          # collect GRU outputs
        return h_new

    h_ref[...] = lax.fori_loop(0, chunk_t, step, h_ref[...],
                               unroll=chunk_t <= 16)

    # ---- Phase 3: ReLU -> Linear -> residual (one big MXU matmul) ----
    act = jnp.maximum(hs_ref[...], 0.0).astype(jnp.bfloat16)          # (rows, H)
    y = (jnp.dot(act, wlin_ref[...], preferred_element_type=jnp.float32)
         + blin_ref[...]) + x_f32                                      # residual
    y_ref[...] = y.reshape(chunk_t, batch_tile, f_in).astype(y_ref.dtype)


def temporal_encoder_forward(x, params, hidden=HIDDEN, chunk_t=None,
                             batch_tile=8):
    """x: (N, T, F_IN) batch-first, matching the PyTorch module's input."""
    n, t, f = x.shape
    assert f == F_IN
    assert batch_tile % 8 == 0
    H = hidden

    n_pad = max(batch_tile, _round_up(n, batch_tile))
    if chunk_t is None:
        chunk_t = min(t, 128)
    t_pad = _round_up(t, chunk_t)

    # Time-major, batch-padded input.  Transpose + zero-pad fuse into one copy;
    # padded rows/steps are independent sequences / trailing steps and are
    # sliced away at the end.
    x_tm = jnp.transpose(x, (1, 0, 2))                    # (T, N, F)
    if (t_pad, n_pad) != (t, n):
        x_tm = jnp.pad(x_tm, ((0, t_pad - t), (0, n_pad - n), (0, 0)))

    # bf16 weights for the MXU; biases, gate math and hidden state stay f32.
    w_ih = params["w_ih_T"].astype(jnp.bfloat16)          # (F, 3H)
    w_hh = params["w_hh_T"].astype(jnp.bfloat16)          # (H, 3H)
    w_lin = params["w_lin_T"].astype(jnp.bfloat16)        # (H, F)
    b_ih, b_hh = params["b_ih"], params["b_hh"]           # (1, 3H) f32 each
    # Fold b_hh into the input-projection bias for the r,z gates; the n gate needs
    # b_hh inside the r*(...) term (PyTorch GRU), so keep that part separate.
    b_gi = b_ih + jnp.concatenate(
        [b_hh[:, :2 * H], jnp.zeros((1, H), b_hh.dtype)], axis=1)
    b_hn = b_hh[:, 2 * H:]
    b_lin = params["b_lin"]

    kernel = functools.partial(gru_chunk_kernel, chunk_t=chunk_t,
                               batch_tile=batch_tile, hidden=H)
    grid = (n_pad // batch_tile, t_pad // chunk_t)

    y_tm = pl.pallas_call(
        kernel,
        out_shape=jax.ShapeDtypeStruct((t_pad, n_pad, f), x.dtype),
        grid_spec=pltpu.PrefetchScalarGridSpec(
            num_scalar_prefetch=0,
            grid=grid,
            in_specs=[
                pl.BlockSpec((chunk_t, batch_tile, f),
                             lambda bi, ti: (ti, bi, 0)),            # x chunk
                pl.BlockSpec((f, 3 * H), lambda bi, ti: (0, 0)),     # W_ih^T (bf16)
                pl.BlockSpec((H, 3 * H), lambda bi, ti: (0, 0)),     # W_hh^T (bf16)
                pl.BlockSpec((H, f), lambda bi, ti: (0, 0)),         # W_lin^T (bf16)
                pl.BlockSpec((1, 3 * H), lambda bi, ti: (0, 0)),     # folded bias
                pl.BlockSpec((1, H), lambda bi, ti: (0, 0)),         # b_hh (n gate)
                pl.BlockSpec((1, f), lambda bi, ti: (0, 0)),         # b_lin
            ],
            out_specs=pl.BlockSpec((chunk_t, batch_tile, f),
                                   lambda bi, ti: (ti, bi, 0)),
            scratch_shapes=[
                pltpu.VMEM((batch_tile, H), jnp.float32),                 # h state
                pltpu.VMEM((chunk_t * batch_tile, 3 * H), jnp.float32),   # GI chunk
                pltpu.VMEM((chunk_t * batch_tile, H), jnp.float32),       # h_t chunk
            ],
        ),
        compiler_params=pltpu.CompilerParams(
            dimension_semantics=("parallel", "arbitrary")),  # batch ∥, time serial
    )(x_tm, w_ih, w_hh, w_lin, b_gi, b_hn, b_lin)

    return jnp.transpose(y_tm[:t, :n, :], (1, 0, 2))       # back to (N, T, F)


def reference_forward(x, params, hidden=HIDDEN):
    """Pure-JAX reference with the same numerics (bf16 MXU operands, f32 math)."""
    n, t, f = x.shape
    H = hidden
    bf16 = jnp.bfloat16
    w_ih = params["w_ih_T"].astype(bf16)
    w_hh = params["w_hh_T"].astype(bf16)
    w_lin = params["w_lin_T"].astype(bf16)
    b_ih, b_hh, b_lin = params["b_ih"], params["b_hh"], params["b_lin"]

    x_tm = jnp.transpose(x, (1, 0, 2))                     # (T, N, F)

    def step(h, x_t):
        gi = jnp.dot(x_t.astype(bf16), w_ih,
                     preferred_element_type=jnp.float32) + b_ih
        gh = jnp.dot(h.astype(bf16), w_hh,
                     preferred_element_type=jnp.float32) + b_hh
        r = jax.nn.sigmoid(gi[:, :H] + gh[:, :H])
        z = jax.nn.sigmoid(gi[:, H:2 * H] + gh[:, H:2 * H])
        nn_ = jnp.tanh(gi[:, 2 * H:] + r * gh[:, 2 * H:])
        h_new = (1.0 - z) * nn_ + z * h
        return h_new, h_new

    h0 = jnp.zeros((n, H), jnp.float32)
    _, hs = lax.scan(step, h0, x_tm)                       # (T, N, H)
    y = jnp.dot(jnp.maximum(hs, 0.0).astype(bf16).reshape(-1, H), w_lin,
                preferred_element_type=jnp.float32).reshape(t, n, f)
    y = y + b_lin + x_tm                                   # Linear bias + residual
    return jnp.transpose(y, (1, 0, 2))


def make_params(key, hidden=HIDDEN, scale=0.05):
    ks = jax.random.split(key, 6)
    return {
        "w_ih_T": scale * jax.random.normal(ks[0], (F_IN, 3 * hidden), jnp.float32),
        "w_hh_T": scale * jax.random.normal(ks[1], (hidden, 3 * hidden), jnp.float32),
        "b_ih": scale * jax.random.normal(ks[2], (1, 3 * hidden), jnp.float32),
        "b_hh": scale * jax.random.normal(ks[3], (1, 3 * hidden), jnp.float32),
        "w_lin_T": scale * jax.random.normal(ks[4], (hidden, F_IN), jnp.float32),
        "b_lin": scale * jax.random.normal(ks[5], (1, F_IN), jnp.float32),
    }


if __name__ == "__main__":
    key = jax.random.PRNGKey(0)
    kp, kx = jax.random.split(key)
    params = make_params(kp)

    batch, seq = 2, 8
    x = jax.random.normal(kx, (batch, seq, F_IN), jnp.float32)

    y = jax.block_until_ready(temporal_encoder_forward(x, params))
    y_ref = jax.block_until_ready(reference_forward(x, params))

    assert y.shape == (batch, seq, F_IN)
    assert jnp.allclose(y, y_ref, atol=1e-3, rtol=1e-3), "mismatch vs reference"

    print("KERNEL_OK")
</pallas_src>

<mosaic_0001>
module attributes {stable_mosaic.version = 11 : i64} {
  func.func @gru_chunk_kernel(%arg0: i32, %arg1: i32, %arg2: memref<8x8x512xf32, #tpu.memory_space<vmem>>, %arg3: memref<512x384xbf16, #tpu.memory_space<vmem>>, %arg4: memref<128x384xbf16, #tpu.memory_space<vmem>>, %arg5: memref<128x512xbf16, #tpu.memory_space<vmem>>, %arg6: memref<1x384xf32, #tpu.memory_space<vmem>>, %arg7: memref<1x128xf32, #tpu.memory_space<vmem>>, %arg8: memref<1x512xf32, #tpu.memory_space<vmem>>, %arg9: memref<8x8x512xf32, #tpu.memory_space<vmem>>, %arg10: memref<8x128xf32, #tpu.memory_space<vmem>>, %arg11: memref<64x384xf32, #tpu.memory_space<vmem>>, %arg12: memref<64x128xf32, #tpu.memory_space<vmem>>) attributes {dimension_semantics = [#tpu.dimension_semantics<parallel>, #tpu.dimension_semantics<arbitrary>], iteration_bounds = array<i64: 1, 1>, scalar_prefetch = 0 : i64, scratch_operands = 3 : i64, tpu.core_type = #tpu.core_type<tc>, window_params = [{transform_indices = @transform_0, window_bounds = array<i64: 8, 8, 512>}, {pipeline_mode = #tpu.pipeline_mode<synchronous>, transform_indices = @transform_1, window_bounds = array<i64: 512, 384>}, {pipeline_mode = #tpu.pipeline_mode<synchronous>, transform_indices = @transform_2, window_bounds = array<i64: 128, 384>}, {pipeline_mode = #tpu.pipeline_mode<synchronous>, transform_indices = @transform_3, window_bounds = array<i64: 128, 512>}, {pipeline_mode = #tpu.pipeline_mode<synchronous>, transform_indices = @transform_4, window_bounds = array<i64: 1, 384>}, {pipeline_mode = #tpu.pipeline_mode<synchronous>, transform_indices = @transform_5, window_bounds = array<i64: 1, 128>}, {pipeline_mode = #tpu.pipeline_mode<synchronous>, transform_indices = @transform_6, window_bounds = array<i64: 1, 512>}, {transform_indices = @transform_7, window_bounds = array<i64: 8, 8, 512>}]} {
    %c0_i32 = arith.constant 0 : i32
    %0 = arith.cmpi eq, %arg1, %c0_i32 : i32
    %1 = arith.extui %0 : i1 to i32
    %c0_i32_0 = arith.constant 0 : i32
    %2 = arith.cmpi ne, %1, %c0_i32_0 : i32
    scf.if %2 {
      %cst_99 = arith.constant 0.000000e+00 : f32
      %323 = vector.broadcast %cst_99 : f32 to vector<8x128xf32>
      %c0_100 = arith.constant 0 : index
      %c0_101 = arith.constant 0 : index
      %324 = vector.load %arg10[%c0_100, %c0_101] : memref<8x128xf32, #tpu.memory_space<vmem>>, vector<8x128xf32>
      tpu.vector_store %arg10[%c0_100, %c0_101], %323 {strides = array<i32>} : memref<8x128xf32, #tpu.memory_space<vmem>>, vector<8x128xf32>,
    } else {
    }
    %c0 = arith.constant 0 : index
    %c0_1 = arith.constant 0 : index
    %c0_2 = arith.constant 0 : index
    %3 = vector.load %arg2[%c0, %c0_1, %c0_2] : memref<8x8x512xf32, #tpu.memory_space<vmem>>, vector<8x8x512xf32>
    %4 = vector.shape_cast %3 : vector<8x8x512xf32> to vector<64x512xf32>
    %5 = arith.truncf %4 : vector<64x512xf32> to vector<64x512xbf16>
    %c0_3 = arith.constant 0 : index
    %c0_4 = arith.constant 0 : index
    %6 = vector.load %arg3[%c0_3, %c0_4] : memref<512x384xbf16, #tpu.memory_space<vmem>>, vector<512x384xbf16>
    %cst = arith.constant dense<0.000000e+00> : vector<64x384xf32>
    %7 = tpu.matmul %5, %6, %cst {dimension_numbers = #tpu.dot_dimension_numbers<[1], [0], [0], [1], [0, 0, 1, 1], [], []>} : vector<64x512xbf16>, vector<512x384xbf16>, vector<64x384xf32> -> vector<64x384xf32>
    %c0_5 = arith.constant 0 : index
    %c0_6 = arith.constant 0 : index
    %8 = vector.load %arg6[%c0_5, %c0_6] : memref<1x384xf32, #tpu.memory_space<vmem>>, vector<1x384xf32>
    %9 = vector.broadcast %8 : vector<1x384xf32> to vector<64x384xf32>
    %10 = arith.addf %7, %9 : vector<64x384xf32>
    %c0_7 = arith.constant 0 : index
    %c0_8 = arith.constant 0 : index
    %11 = vector.load %arg11[%c0_7, %c0_8] : memref<64x384xf32, #tpu.memory_space<vmem>>, vector<64x384xf32>
    tpu.vector_store %arg11[%c0_7, %c0_8], %10 {strides = array<i32>} : memref<64x384xf32, #tpu.memory_space<vmem>>, vector<64x384xf32>,
    %c0_9 = arith.constant 0 : index
    %c0_10 = arith.constant 0 : index
    %12 = vector.load %arg7[%c0_9, %c0_10] : memref<1x128xf32, #tpu.memory_space<vmem>>, vector<1x128xf32>
    %c0_11 = arith.constant 0 : index
    %c0_12 = arith.constant 0 : index
    %13 = vector.load %arg10[%c0_11, %c0_12] : memref<8x128xf32, #tpu.memory_space<vmem>>, vector<8x128xf32>
    %c0_i32_13 = arith.constant 0 : i32
    %c8_i32 = arith.constant 8 : i32
    %14 = arith.muli %c0_i32_13, %c8_i32 : i32
    %15 = tpu.assume_multiple %14, 8 : i32
    %16 = arith.index_cast %15 : i32 to index
    %c0_14 = arith.constant 0 : index
    %17 = vector.load %arg11[%16, %c0_14] : memref<64x384xf32, #tpu.memory_space<vmem>>, vector<8x384xf32>
    %18 = arith.truncf %13 : vector<8x128xf32> to vector<8x128xbf16>
    %c0_15 = arith.constant 0 : index
    %c0_16 = arith.constant 0 : index
    %19 = vector.load %arg4[%c0_15, %c0_16] : memref<128x384xbf16, #tpu.memory_space<vmem>>, vector<128x384xbf16>
    %cst_17 = arith.constant dense<0.000000e+00> : vector<8x384xf32>
    %20 = tpu.matmul %18, %19, %cst_17 {dimension_numbers = #tpu.dot_dimension_numbers<[1], [0], [0], [1], [0, 0, 1, 1], [], []>} : vector<8x128xbf16>, vector<128x384xbf16>, vector<8x384xf32> -> vector<8x384xf32>
    %21 = vector.extract_strided_slice %17 {offsets = [0, 0], sizes = [8, 128], strides = [1, 1]} : vector<8x384xf32> to vector<8x128xf32>
    %22 = vector.extract_strided_slice %20 {offsets = [0, 0], sizes = [8, 128], strides = [1, 1]} : vector<8x384xf32> to vector<8x128xf32>
    %23 = arith.addf %21, %22 : vector<8x128xf32>
    %24 = arith.negf %23 : vector<8x128xf32>
    %25 = math.exp %24 : vector<8x128xf32>
    %cst_18 = arith.constant 1.000000e+00 : f32
    %26 = vector.broadcast %cst_18 : f32 to vector<8x128xf32>
    %27 = arith.addf %26, %25 : vector<8x128xf32>
    %28 = arith.divf %26, %27 : vector<8x128xf32>
    %29 = vector.extract_strided_slice %17 {offsets = [0, 128], sizes = [8, 128], strides = [1, 1]} : vector<8x384xf32> to vector<8x128xf32>
    %30 = vector.extract_strided_slice %20 {offsets = [0, 128], sizes = [8, 128], strides = [1, 1]} : vector<8x384xf32> to vector<8x128xf32>
    %31 = arith.addf %29, %30 : vector<8x128xf32>
    %32 = arith.negf %31 : vector<8x128xf32>
    %33 = math.exp %32 : vector<8x128xf32>
    %cst_19 = arith.constant 1.000000e+00 : f32
    %34 = vector.broadcast %cst_19 : f32 to vector<8x128xf32>
    %35 = arith.addf %34, %33 : vector<8x128xf32>
    %36 = arith.divf %34, %35 : vector<8x128xf32>
    %37 = vector.extract_strided_slice %17 {offsets = [0, 256], sizes = [8, 128], strides = [1, 1]} : vector<8x384xf32> to vector<8x128xf32>
    %38 = vector.extract_strided_slice %20 {offsets = [0, 256], sizes = [8, 128], strides = [1, 1]} : vector<8x384xf32> to vector<8x128xf32>
    %39 = vector.broadcast %12 : vector<1x128xf32> to vector<8x128xf32>
    %40 = arith.addf %38, %39 : vector<8x128xf32>
    %41 = arith.mulf %28, %40 : vector<8x128xf32>
    %42 = arith.addf %37, %41 : vector<8x128xf32>
    %43 = math.tanh %42 : vector<8x128xf32>
    %cst_20 = arith.constant 1.000000e+00 : f32
    %44 = vector.broadcast %cst_20 : f32 to vector<8x128xf32>
    %45 = arith.subf %44, %36 : vector<8x128xf32>
    %46 = arith.mulf %45, %43 : vector<8x128xf32>
    %47 = arith.mulf %36, %13 : vector<8x128xf32>
    %48 = arith.addf %46, %47 : vector<8x128xf32>
    %49 = arith.index_cast %15 : i32 to index
    %c0_21 = arith.constant 0 : index
    %50 = vector.load %arg12[%49, %c0_21] : memref<64x128xf32, #tpu.memory_space<vmem>>, vector<8x128xf32>
    tpu.vector_store %arg12[%49, %c0_21], %48 {strides = array<i32>} : memref<64x128xf32, #tpu.memory_space<vmem>>, vector<8x128xf32>,
    %c1_i32 = arith.constant 1 : i32
    %c8_i32_22 = arith.constant 8 : i32
    %51 = arith.muli %c1_i32, %c8_i32_22 : i32
    %52 = tpu.assume_multiple %51, 8 : i32
    %53 = arith.index_cast %52 : i32 to index
    %c0_23 = arith.constant 0 : index
    %54 = vector.load %arg11[%53, %c0_23] : memref<64x384xf32, #tpu.memory_space<vmem>>, vector<8x384xf32>
    %55 = arith.truncf %48 : vector<8x128xf32> to vector<8x128xbf16>
    %c0_24 = arith.constant 0 : index
    %c0_25 = arith.constant 0 : index
    %56 = vector.load %arg4[%c0_24, %c0_25] : memref<128x384xbf16, #tpu.memory_space<vmem>>, vector<128x384xbf16>
    %cst_26 = arith.constant dense<0.000000e+00> : vector<8x384xf32>
    %57 = tpu.matmul %55, %56, %cst_26 {dimension_numbers = #tpu.dot_dimension_numbers<[1], [0], [0], [1], [0, 0, 1, 1], [], []>} : vector<8x128xbf16>, vector<128x384xbf16>, vector<8x384xf32> -> vector<8x384xf32>
    %58 = vector.extract_strided_slice %54 {offsets = [0, 0], sizes = [8, 128], strides = [1, 1]} : vector<8x384xf32> to vector<8x128xf32>
    %59 = vector.extract_strided_slice %57 {offsets = [0, 0], sizes = [8, 128], strides = [1, 1]} : vector<8x384xf32> to vector<8x128xf32>
    %60 = arith.addf %58, %59 : vector<8x128xf32>
    %61 = arith.negf %60 : vector<8x128xf32>
    %62 = math.exp %61 : vector<8x128xf32>
    %cst_27 = arith.constant 1.000000e+00 : f32
    %63 = vector.broadcast %cst_27 : f32 to vector<8x128xf32>
    %64 = arith.addf %63, %62 : vector<8x128xf32>
    %65 = arith.divf %63, %64 : vector<8x128xf32>
    %66 = vector.extract_strided_slice %54 {offsets = [0, 128], sizes = [8, 128], strides = [1, 1]} : vector<8x384xf32> to vector<8x128xf32>
    %67 = vector.extract_strided_slice %57 {offsets = [0, 128], sizes = [8, 128], strides = [1, 1]} : vector<8x384xf32> to vector<8x128xf32>
    %68 = arith.addf %66, %67 : vector<8x128xf32>
    %69 = arith.negf %68 : vector<8x128xf32>
    %70 = math.exp %69 : vector<8x128xf32>
    %cst_28 = arith.constant 1.000000e+00 : f32
    %71 = vector.broadcast %cst_28 : f32 to vector<8x128xf32>
    %72 = arith.addf %71, %70 : vector<8x128xf32>
    %73 = arith.divf %71, %72 : vector<8x128xf32>
    %74 = vector.extract_strided_slice %54 {offsets = [0, 256], sizes = [8, 128], strides = [1, 1]} : vector<8x384xf32> to vector<8x128xf32>
    %75 = vector.extract_strided_slice %57 {offsets = [0, 256], sizes = [8, 128], strides = [1, 1]} : vector<8x384xf32> to vector<8x128xf32>
    %76 = vector.broadcast %12 : vector<1x128xf32> to vector<8x128xf32>
    %77 = arith.addf %75, %76 : vector<8x128xf32>
    %78 = arith.mulf %65, %77 : vector<8x128xf32>
    %79 = arith.addf %74, %78 : vector<8x128xf32>
    %80 = math.tanh %79 : vector<8x128xf32>
    %cst_29 = arith.constant 1.000000e+00 : f32
    %81 = vector.broadcast %cst_29 : f32 to vector<8x128xf32>
    %82 = arith.subf %81, %73 : vector<8x128xf32>
    %83 = arith.mulf %82, %80 : vector<8x128xf32>
    %84 = arith.mulf %73, %48 : vector<8x128xf32>
    %85 = arith.addf %83, %84 : vector<8x128xf32>
    %86 = arith.index_cast %52 : i32 to index
    %c0_30 = arith.constant 0 : index
    %87 = vector.load %arg12[%86, %c0_30] : memref<64x128xf32, #tpu.memory_space<vmem>>, vector<8x128xf32>
    tpu.vector_store %arg12[%86, %c0_30], %85 {strides = array<i32>} : memref<64x128xf32, #tpu.memory_space<vmem>>, vector<8x128xf32>,
    %c2_i32 = arith.constant 2 : i32
    %c8_i32_31 = arith.constant 8 : i32
    %88 = arith.muli %c2_i32, %c8_i32_31 : i32
    %89 = tpu.assume_multiple %88, 8 : i32
    %90 = arith.index_cast %89 : i32 to index
    %c0_32 = arith.constant 0 : index
    %91 = vector.load %arg11[%90, %c0_32] : memref<64x384xf32, #tpu.memory_space<vmem>>, vector<8x384xf32>
    %92 = arith.truncf %85 : vector<8x128xf32> to vector<8x128xbf16>
    %c0_33 = arith.constant 0 : index
    %c0_34 = arith.constant 0 : index
    %93 = vector.load %arg4[%c0_33, %c0_34] : memref<128x384xbf16, #tpu.memory_space<vmem>>, vector<128x384xbf16>
    %cst_35 = arith.constant dense<0.000000e+00> : vector<8x384xf32>
    %94 = tpu.matmul %92, %93, %cst_35 {dimension_numbers = #tpu.dot_dimension_numbers<[1], [0], [0], [1], [0, 0, 1, 1], [], []>} : vector<8x128xbf16>, vector<128x384xbf16>, vector<8x384xf32> -> vector<8x384xf32>
    %95 = vector.extract_strided_slice %91 {offsets = [0, 0], sizes = [8, 128], strides = [1, 1]} : vector<8x384xf32> to vector<8x128xf32>
    %96 = vector.extract_strided_slice %94 {offsets = [0, 0], sizes = [8, 128], strides = [1, 1]} : vector<8x384xf32> to vector<8x128xf32>
    %97 = arith.addf %95, %96 : vector<8x128xf32>
    %98 = arith.negf %97 : vector<8x128xf32>
    %99 = math.exp %98 : vector<8x128xf32>
    %cst_36 = arith.constant 1.000000e+00 : f32
    %100 = vector.broadcast %cst_36 : f32 to vector<8x128xf32>
    %101 = arith.addf %100, %99 : vector<8x128xf32>
    %102 = arith.divf %100, %101 : vector<8x128xf32>
    %103 = vector.extract_strided_slice %91 {offsets = [0, 128], sizes = [8, 128], strides = [1, 1]} : vector<8x384xf32> to vector<8x128xf32>
    %104 = vector.extract_strided_slice %94 {offsets = [0, 128], sizes = [8, 128], strides = [1, 1]} : vector<8x384xf32> to vector<8x128xf32>
    %105 = arith.addf %103, %104 : vector<8x128xf32>
    %106 = arith.negf %105 : vector<8x128xf32>
    %107 = math.exp %106 : vector<8x128xf32>
    %cst_37 = arith.constant 1.000000e+00 : f32
    %108 = vector.broadcast %cst_37 : f32 to vector<8x128xf32>
    %109 = arith.addf %108, %107 : vector<8x128xf32>
    %110 = arith.divf %108, %109 : vector<8x128xf32>
    %111 = vector.extract_strided_slice %91 {offsets = [0, 256], sizes = [8, 128], strides = [1, 1]} : vector<8x384xf32> to vector<8x128xf32>
    %112 = vector.extract_strided_slice %94 {offsets = [0, 256], sizes = [8, 128], strides = [1, 1]} : vector<8x384xf32> to vector<8x128xf32>
    %113 = vector.broadcast %12 : vector<1x128xf32> to vector<8x128xf32>
    %114 = arith.addf %112, %113 : vector<8x128xf32>
    %115 = arith.mulf %102, %114 : vector<8x128xf32>
    %116 = arith.addf %111, %115 : vector<8x128xf32>
    %117 = math.tanh %116 : vector<8x128xf32>
    %cst_38 = arith.constant 1.000000e+00 : f32
    %118 = vector.broadcast %cst_38 : f32 to vector<8x128xf32>
    %119 = arith.subf %118, %110 : vector<8x128xf32>
    %120 = arith.mulf %119, %117 : vector<8x128xf32>
    %121 = arith.mulf %110, %85 : vector<8x128xf32>
    %122 = arith.addf %120, %121 : vector<8x128xf32>
    %123 = arith.index_cast %89 : i32 to index
    %c0_39 = arith.constant 0 : index
    %124 = vector.load %arg12[%123, %c0_39] : memref<64x128xf32, #tpu.memory_space<vmem>>, vector<8x128xf32>
    tpu.vector_store %arg12[%123, %c0_39], %122 {strides = array<i32>} : memref<64x128xf32, #tpu.memory_space<vmem>>, vector<8x128xf32>,
    %c3_i32 = arith.constant 3 : i32
    %c8_i32_40 = arith.constant 8 : i32
    %125 = arith.muli %c3_i32, %c8_i32_40 : i32
    %126 = tpu.assume_multiple %125, 8 : i32
    %127 = arith.index_cast %126 : i32 to index
    %c0_41 = arith.constant 0 : index
    %128 = vector.load %arg11[%127, %c0_41] : memref<64x384xf32, #tpu.memory_space<vmem>>, vector<8x384xf32>
    %129 = arith.truncf %122 : vector<8x128xf32> to vector<8x128xbf16>
    %c0_42 = arith.constant 0 : index
    %c0_43 = arith.constant 0 : index
    %130 = vector.load %arg4[%c0_42, %c0_43] : memref<128x384xbf16, #tpu.memory_space<vmem>>, vector<128x384xbf16>
    %cst_44 = arith.constant dense<0.000000e+00> : vector<8x384xf32>
    %131 = tpu.matmul %129, %130, %cst_44 {dimension_numbers = #tpu.dot_dimension_numbers<[1], [0], [0], [1], [0, 0, 1, 1], [], []>} : vector<8x128xbf16>, vector<128x384xbf16>, vector<8x384xf32> -> vector<8x384xf32>
    %132 = vector.extract_strided_slice %128 {offsets = [0, 0], sizes = [8, 128], strides = [1, 1]} : vector<8x384xf32> to vector<8x128xf32>
    %133 = vector.extract_strided_slice %131 {offsets = [0, 0], sizes = [8, 128], strides = [1, 1]} : vector<8x384xf32> to vector<8x128xf32>
    %134 = arith.addf %132, %133 : vector<8x128xf32>
    %135 = arith.negf %134 : vector<8x128xf32>
    %136 = math.exp %135 : vector<8x128xf32>
    %cst_45 = arith.constant 1.000000e+00 : f32
    %137 = vector.broadcast %cst_45 : f32 to vector<8x128xf32>
    %138 = arith.addf %137, %136 : vector<8x128xf32>
    %139 = arith.divf %137, %138 : vector<8x128xf32>
    %140 = vector.extract_strided_slice %128 {offsets = [0, 128], sizes = [8, 128], strides = [1, 1]} : vector<8x384xf32> to vector<8x128xf32>
    %141 = vector.extract_strided_slice %131 {offsets = [0, 128], sizes = [8, 128], strides = [1, 1]} : vector<8x384xf32> to vector<8x128xf32>
    %142 = arith.addf %140, %141 : vector<8x128xf32>
    %143 = arith.negf %142 : vector<8x128xf32>
    %144 = math.exp %143 : vector<8x128xf32>
    %cst_46 = arith.constant 1.000000e+00 : f32
    %145 = vector.broadcast %cst_46 : f32 to vector<8x128xf32>
    %146 = arith.addf %145, %144 : vector<8x128xf32>
    %147 = arith.divf %145, %146 : vector<8x128xf32>
    %148 = vector.extract_strided_slice %128 {offsets = [0, 256], sizes = [8, 128], strides = [1, 1]} : vector<8x384xf32> to vector<8x128xf32>
    %149 = vector.extract_strided_slice %131 {offsets = [0, 256], sizes = [8, 128], strides = [1, 1]} : vector<8x384xf32> to vector<8x128xf32>
    %150 = vector.broadcast %12 : vector<1x128xf32> to vector<8x128xf32>
    %151 = arith.addf %149, %150 : vector<8x128xf32>
    %152 = arith.mulf %139, %151 : vector<8x128xf32>
    %153 = arith.addf %148, %152 : vector<8x128xf32>
    %154 = math.tanh %153 : vector<8x128xf32>
    %cst_47 = arith.constant 1.000000e+00 : f32
    %155 = vector.broadcast %cst_47 : f32 to vector<8x128xf32>
    %156 = arith.subf %155, %147 : vector<8x128xf32>
    %157 = arith.mulf %156, %154 : vector<8x128xf32>
    %158 = arith.mulf %147, %122 : vector<8x128xf32>
    %159 = arith.addf %157, %158 : vector<8x128xf32>
    %160 = arith.index_cast %126 : i32 to index
    %c0_48 = arith.constant 0 : index
    %161 = vector.load %arg12[%160, %c0_48] : memref<64x128xf32, #tpu.memory_space<vmem>>, vector<8x128xf32>
    tpu.vector_store %arg12[%160, %c0_48], %159 {strides = array<i32>} : memref<64x128xf32, #tpu.memory_space<vmem>>, vector<8x128xf32>,
    %c4_i32 = arith.constant 4 : i32
    %c8_i32_49 = arith.constant 8 : i32
    %162 = arith.muli %c4_i32, %c8_i32_49 : i32
    %163 = tpu.assume_multiple %162, 8 : i32
    %164 = arith.index_cast %163 : i32 to index
    %c0_50 = arith.constant 0 : index
    %165 = vector.load %arg11[%164, %c0_50] : memref<64x384xf32, #tpu.memory_space<vmem>>, vector<8x384xf32>
    %166 = arith.truncf %159 : vector<8x128xf32> to vector<8x128xbf16>
    %c0_51 = arith.constant 0 : index
    %c0_52 = arith.constant 0 : index
    %167 = vector.load %arg4[%c0_51, %c0_52] : memref<128x384xbf16, #tpu.memory_space<vmem>>, vector<128x384xbf16>
    %cst_53 = arith.constant dense<0.000000e+00> : vector<8x384xf32>
    %168 = tpu.matmul %166, %167, %cst_53 {dimension_numbers = #tpu.dot_dimension_numbers<[1], [0], [0], [1], [0, 0, 1, 1], [], []>} : vector<8x128xbf16>, vector<128x384xbf16>, vector<8x384xf32> -> vector<8x384xf32>
    %169 = vector.extract_strided_slice %165 {offsets = [0, 0], sizes = [8, 128], strides = [1, 1]} : vector<8x384xf32> to vector<8x128xf32>
    %170 = vector.extract_strided_slice %168 {offsets = [0, 0], sizes = [8, 128], strides = [1, 1]} : vector<8x384xf32> to vector<8x128xf32>
    %171 = arith.addf %169, %170 : vector<8x128xf32>
    %172 = arith.negf %171 : vector<8x128xf32>
    %173 = math.exp %172 : vector<8x128xf32>
    %cst_54 = arith.constant 1.000000e+00 : f32
    %174 = vector.broadcast %cst_54 : f32 to vector<8x128xf32>
    %175 = arith.addf %174, %173 : vector<8x128xf32>
    %176 = arith.divf %174, %175 : vector<8x128xf32>
    %177 = vector.extract_strided_slice %165 {offsets = [0, 128], sizes = [8, 128], strides = [1, 1]} : vector<8x384xf32> to vector<8x128xf32>
    %178 = vector.extract_strided_slice %168 {offsets = [0, 128], sizes = [8, 128], strides = [1, 1]} : vector<8x384xf32> to vector<8x128xf32>
    %179 = arith.addf %177, %178 : vector<8x128xf32>
    %180 = arith.negf %179 : vector<8x128xf32>
    %181 = math.exp %180 : vector<8x128xf32>
    %cst_55 = arith.constant 1.000000e+00 : f32
    %182 = vector.broadcast %cst_55 : f32 to vector<8x128xf32>
    %183 = arith.addf %182, %181 : vector<8x128xf32>
    %184 = arith.divf %182, %183 : vector<8x128xf32>
    %185 = vector.extract_strided_slice %165 {offsets = [0, 256], sizes = [8, 128], strides = [1, 1]} : vector<8x384xf32> to vector<8x128xf32>
    %186 = vector.extract_strided_slice %168 {offsets = [0, 256], sizes = [8, 128], strides = [1, 1]} : vector<8x384xf32> to vector<8x128xf32>
    %187 = vector.broadcast %12 : vector<1x128xf32> to vector<8x128xf32>
    %188 = arith.addf %186, %187 : vector<8x128xf32>
    %189 = arith.mulf %176, %188 : vector<8x128xf32>
    %190 = arith.addf %185, %189 : vector<8x128xf32>
    %191 = math.tanh %190 : vector<8x128xf32>
    %cst_56 = arith.constant 1.000000e+00 : f32
    %192 = vector.broadcast %cst_56 : f32 to vector<8x128xf32>
    %193 = arith.subf %192, %184 : vector<8x128xf32>
    %194 = arith.mulf %193, %191 : vector<8x128xf32>
    %195 = arith.mulf %184, %159 : vector<8x128xf32>
    %196 = arith.addf %194, %195 : vector<8x128xf32>
    %197 = arith.index_cast %163 : i32 to index
    %c0_57 = arith.constant 0 : index
    %198 = vector.load %arg12[%197, %c0_57] : memref<64x128xf32, #tpu.memory_space<vmem>>, vector<8x128xf32>
    tpu.vector_store %arg12[%197, %c0_57], %196 {strides = array<i32>} : memref<64x128xf32, #tpu.memory_space<vmem>>, vector<8x128xf32>,
    %c5_i32 = arith.constant 5 : i32
    %c8_i32_58 = arith.constant 8 : i32
    %199 = arith.muli %c5_i32, %c8_i32_58 : i32
    %200 = tpu.assume_multiple %199, 8 : i32
    %201 = arith.index_cast %200 : i32 to index
    %c0_59 = arith.constant 0 : index
    %202 = vector.load %arg11[%201, %c0_59] : memref<64x384xf32, #tpu.memory_space<vmem>>, vector<8x384xf32>
    %203 = arith.truncf %196 : vector<8x128xf32> to vector<8x128xbf16>
    %c0_60 = arith.constant 0 : index
    %c0_61 = arith.constant 0 : index
    %204 = vector.load %arg4[%c0_60, %c0_61] : memref<128x384xbf16, #tpu.memory_space<vmem>>, vector<128x384xbf16>
    %cst_62 = arith.constant dense<0.000000e+00> : vector<8x384xf32>
    %205 = tpu.matmul %203, %204, %cst_62 {dimension_numbers = #tpu.dot_dimension_numbers<[1], [0], [0], [1], [0, 0, 1, 1], [], []>} : vector<8x128xbf16>, vector<128x384xbf16>, vector<8x384xf32> -> vector<8x384xf32>
    %206 = vector.extract_strided_slice %202 {offsets = [0, 0], sizes = [8, 128], strides = [1, 1]} : vector<8x384xf32> to vector<8x128xf32>
    %207 = vector.extract_strided_slice %205 {offsets = [0, 0], sizes = [8, 128], strides = [1, 1]} : vector<8x384xf32> to vector<8x128xf32>
    %208 = arith.addf %206, %207 : vector<8x128xf32>
    %209 = arith.negf %208 : vector<8x128xf32>
    %210 = math.exp %209 : vector<8x128xf32>
    %cst_63 = arith.constant 1.000000e+00 : f32
    %211 = vector.broadcast %cst_63 : f32 to vector<8x128xf32>
    %212 = arith.addf %211, %210 : vector<8x128xf32>
    %213 = arith.divf %211, %212 : vector<8x128xf32>
    %214 = vector.extract_strided_slice %202 {offsets = [0, 128], sizes = [8, 128], strides = [1, 1]} : vector<8x384xf32> to vector<8x128xf32>
    %215 = vector.extract_strided_slice %205 {offsets = [0, 128], sizes = [8, 128], strides = [1, 1]} : vector<8x384xf32> to vector<8x128xf32>
    %216 = arith.addf %214, %215 : vector<8x128xf32>
    %217 = arith.negf %216 : vector<8x128xf32>
    %218 = math.exp %217 : vector<8x128xf32>
    %cst_64 = arith.constant 1.000000e+00 : f32
    %219 = vector.broadcast %cst_64 : f32 to vector<8x128xf32>
    %220 = arith.addf %219, %218 : vector<8x128xf32>
    %221 = arith.divf %219, %220 : vector<8x128xf32>
    %222 = vector.extract_strided_slice %202 {offsets = [0, 256], sizes = [8, 128], strides = [1, 1]} : vector<8x384xf32> to vector<8x128xf32>
    %223 = vector.extract_strided_slice %205 {offsets = [0, 256], sizes = [8, 128], strides = [1, 1]} : vector<8x384xf32> to vector<8x128xf32>
    %224 = vector.broadcast %12 : vector<1x128xf32> to vector<8x128xf32>
    %225 = arith.addf %223, %224 : vector<8x128xf32>
    %226 = arith.mulf %213, %225 : vector<8x128xf32>
    %227 = arith.addf %222, %226 : vector<8x128xf32>
    %228 = math.tanh %227 : vector<8x128xf32>
    %cst_65 = arith.constant 1.000000e+00 : f32
    %229 = vector.broadcast %cst_65 : f32 to vector<8x128xf32>
    %230 = arith.subf %229, %221 : vector<8x128xf32>
    %231 = arith.mulf %230, %228 : vector<8x128xf32>
    %232 = arith.mulf %221, %196 : vector<8x128xf32>
    %233 = arith.addf %231, %232 : vector<8x128xf32>
    %234 = arith.index_cast %200 : i32 to index
    %c0_66 = arith.constant 0 : index
    %235 = vector.load %arg12[%234, %c0_66] : memref<64x128xf32, #tpu.memory_space<vmem>>, vector<8x128xf32>
    tpu.vector_store %arg12[%234, %c0_66], %233 {strides = array<i32>} : memref<64x128xf32, #tpu.memory_space<vmem>>, vector<8x128xf32>,
    %c6_i32 = arith.constant 6 : i32
    %c8_i32_67 = arith.constant 8 : i32
    %236 = arith.muli %c6_i32, %c8_i32_67 : i32
    %237 = tpu.assume_multiple %236, 8 : i32
    %238 = arith.index_cast %237 : i32 to index
    %c0_68 = arith.constant 0 : index
    %239 = vector.load %arg11[%238, %c0_68] : memref<64x384xf32, #tpu.memory_space<vmem>>, vector<8x384xf32>
    %240 = arith.truncf %233 : vector<8x128xf32> to vector<8x128xbf16>
    %c0_69 = arith.constant 0 : index
    %c0_70 = arith.constant 0 : index
    %241 = vector.load %arg4[%c0_69, %c0_70] : memref<128x384xbf16, #tpu.memory_space<vmem>>, vector<128x384xbf16>
    %cst_71 = arith.constant dense<0.000000e+00> : vector<8x384xf32>
    %242 = tpu.matmul %240, %241, %cst_71 {dimension_numbers = #tpu.dot_dimension_numbers<[1], [0], [0], [1], [0, 0, 1, 1], [], []>} : vector<8x128xbf16>, vector<128x384xbf16>, vector<8x384xf32> -> vector<8x384xf32>
    %243 = vector.extract_strided_slice %239 {offsets = [0, 0], sizes = [8, 128], strides = [1, 1]} : vector<8x384xf32> to vector<8x128xf32>
    %244 = vector.extract_strided_slice %242 {offsets = [0, 0], sizes = [8, 128], strides = [1, 1]} : vector<8x384xf32> to vector<8x128xf32>
    %245 = arith.addf %243, %244 : vector<8x128xf32>
    %246 = arith.negf %245 : vector<8x128xf32>
    %247 = math.exp %246 : vector<8x128xf32>
    %cst_72 = arith.constant 1.000000e+00 : f32
    %248 = vector.broadcast %cst_72 : f32 to vector<8x128xf32>
    %249 = arith.addf %248, %247 : vector<8x128xf32>
    %250 = arith.divf %248, %249 : vector<8x128xf32>
    %251 = vector.extract_strided_slice %239 {offsets = [0, 128], sizes = [8, 128], strides = [1, 1]} : vector<8x384xf32> to vector<8x128xf32>
    %252 = vector.extract_strided_slice %242 {offsets = [0, 128], sizes = [8, 128], strides = [1, 1]} : vector<8x384xf32> to vector<8x128xf32>
    %253 = arith.addf %251, %252 : vector<8x128xf32>
    %254 = arith.negf %253 : vector<8x128xf32>
    %255 = math.exp %254 : vector<8x128xf32>
    %cst_73 = arith.constant 1.000000e+00 : f32
    %256 = vector.broadcast %cst_73 : f32 to vector<8x128xf32>
    %257 = arith.addf %256, %255 : vector<8x128xf32>
    %258 = arith.divf %256, %257 : vector<8x128xf32>
    %259 = vector.extract_strided_slice %239 {offsets = [0, 256], sizes = [8, 128], strides = [1, 1]} : vector<8x384xf32> to vector<8x128xf32>
    %260 = vector.extract_strided_slice %242 {offsets = [0, 256], sizes = [8, 128], strides = [1, 1]} : vector<8x384xf32> to vector<8x128xf32>
    %261 = vector.broadcast %12 : vector<1x128xf32> to vector<8x128xf32>
    %262 = arith.addf %260, %261 : vector<8x128xf32>
    %263 = arith.mulf %250, %262 : vector<8x128xf32>
    %264 = arith.addf %259, %263 : vector<8x128xf32>
    %265 = math.tanh %264 : vector<8x128xf32>
    %cst_74 = arith.constant 1.000000e+00 : f32
    %266 = vector.broadcast %cst_74 : f32 to vector<8x128xf32>
    %267 = arith.subf %266, %258 : vector<8x128xf32>
    %268 = arith.mulf %267, %265 : vector<8x128xf32>
    %269 = arith.mulf %258, %233 : vector<8x128xf32>
    %270 = arith.addf %268, %269 : vector<8x128xf32>
    %271 = arith.index_cast %237 : i32 to index
    %c0_75 = arith.constant 0 : index
    %272 = vector.load %arg12[%271, %c0_75] : memref<64x128xf32, #tpu.memory_space<vmem>>, vector<8x128xf32>
    tpu.vector_store %arg12[%271, %c0_75], %270 {strides = array<i32>} : memref<64x128xf32, #tpu.memory_space<vmem>>, vector<8x128xf32>,
    %c7_i32 = arith.constant 7 : i32
    %c8_i32_76 = arith.constant 8 : i32
    %273 = arith.muli %c7_i32, %c8_i32_76 : i32
    %274 = tpu.assume_multiple %273, 8 : i32
    %275 = arith.index_cast %274 : i32 to index
    %c0_77 = arith.constant 0 : index
    %276 = vector.load %arg11[%275, %c0_77] : memref<64x384xf32, #tpu.memory_space<vmem>>, vector<8x384xf32>
    %277 = arith.truncf %270 : vector<8x128xf32> to vector<8x128xbf16>
    %c0_78 = arith.constant 0 : index
    %c0_79 = arith.constant 0 : index
    %278 = vector.load %arg4[%c0_78, %c0_79] : memref<128x384xbf16, #tpu.memory_space<vmem>>, vector<128x384xbf16>
    %cst_80 = arith.constant dense<0.000000e+00> : vector<8x384xf32>
    %279 = tpu.matmul %277, %278, %cst_80 {dimension_numbers = #tpu.dot_dimension_numbers<[1], [0], [0], [1], [0, 0, 1, 1], [], []>} : vector<8x128xbf16>, vector<128x384xbf16>, vector<8x384xf32> -> vector<8x384xf32>
    %280 = vector.extract_strided_slice %276 {offsets = [0, 0], sizes = [8, 128], strides = [1, 1]} : vector<8x384xf32> to vector<8x128xf32>
    %281 = vector.extract_strided_slice %279 {offsets = [0, 0], sizes = [8, 128], strides = [1, 1]} : vector<8x384xf32> to vector<8x128xf32>
    %282 = arith.addf %280, %281 : vector<8x128xf32>
    %283 = arith.negf %282 : vector<8x128xf32>
    %284 = math.exp %283 : vector<8x128xf32>
    %cst_81 = arith.constant 1.000000e+00 : f32
    %285 = vector.broadcast %cst_81 : f32 to vector<8x128xf32>
    %286 = arith.addf %285, %284 : vector<8x128xf32>
    %287 = arith.divf %285, %286 : vector<8x128xf32>
    %288 = vector.extract_strided_slice %276 {offsets = [0, 128], sizes = [8, 128], strides = [1, 1]} : vector<8x384xf32> to vector<8x128xf32>
    %289 = vector.extract_strided_slice %279 {offsets = [0, 128], sizes = [8, 128], strides = [1, 1]} : vector<8x384xf32> to vector<8x128xf32>
    %290 = arith.addf %288, %289 : vector<8x128xf32>
    %291 = arith.negf %290 : vector<8x128xf32>
    %292 = math.exp %291 : vector<8x128xf32>
    %cst_82 = arith.constant 1.000000e+00 : f32
    %293 = vector.broadcast %cst_82 : f32 to vector<8x128xf32>
    %294 = arith.addf %293, %292 : vector<8x128xf32>
    %295 = arith.divf %293, %294 : vector<8x128xf32>
    %296 = vector.extract_strided_slice %276 {offsets = [0, 256], sizes = [8, 128], strides = [1, 1]} : vector<8x384xf32> to vector<8x128xf32>
    %297 = vector.extract_strided_slice %279 {offsets = [0, 256], sizes = [8, 128], strides = [1, 1]} : vector<8x384xf32> to vector<8x128xf32>
    %298 = vector.broadcast %12 : vector<1x128xf32> to vector<8x128xf32>
    %299 = arith.addf %297, %298 : vector<8x128xf32>
    %300 = arith.mulf %287, %299 : vector<8x128xf32>
    %301 = arith.addf %296, %300 : vector<8x128xf32>
    %302 = math.tanh %301 : vector<8x128xf32>
    %cst_83 = arith.constant 1.000000e+00 : f32
    %303 = vector.broadcast %cst_83 : f32 to vector<8x128xf32>
    %304 = arith.subf %303, %295 : vector<8x128xf32>
    %305 = arith.mulf %304, %302 : vector<8x128xf32>
    %306 = arith.mulf %295, %270 : vector<8x128xf32>
    %307 = arith.addf %305, %306 : vector<8x128xf32>
    %308 = arith.index_cast %274 : i32 to index
    %c0_84 = arith.constant 0 : index
    %309 = vector.load %arg12[%308, %c0_84] : memref<64x128xf32, #tpu.memory_space<vmem>>, vector<8x128xf32>
    tpu.vector_store %arg12[%308, %c0_84], %307 {strides = array<i32>} : memref<64x128xf32, #tpu.memory_space<vmem>>, vector<8x128xf32>,
    %c8_i32_85 = arith.constant 8 : i32
    %c0_86 = arith.constant 0 : index
    %c0_87 = arith.constant 0 : index
    %310 = vector.load %arg10[%c0_86, %c0_87] : memref<8x128xf32, #tpu.memory_space<vmem>>, vector<8x128xf32>
    tpu.vector_store %arg10[%c0_86, %c0_87], %307 {strides = array<i32>} : memref<8x128xf32, #tpu.memory_space<vmem>>, vector<8x128xf32>,
    %c0_88 = arith.constant 0 : index
    %c0_89 = arith.constant 0 : index
    %311 = vector.load %arg12[%c0_88, %c0_89] : memref<64x128xf32, #tpu.memory_space<vmem>>, vector<64x128xf32>
    %cst_90 = arith.constant 0.000000e+00 : f32
    %312 = vector.broadcast %cst_90 : f32 to vector<64x128xf32>
    %313 = arith.maximumf %311, %312 : vector<64x128xf32>
    %314 = arith.truncf %313 : vector<64x128xf32> to vector<64x128xbf16>
    %c0_91 = arith.constant 0 : index
    %c0_92 = arith.constant 0 : index
    %315 = vector.load %arg5[%c0_91, %c0_92] : memref<128x512xbf16, #tpu.memory_space<vmem>>, vector<128x512xbf16>
    %cst_93 = arith.constant dense<0.000000e+00> : vector<64x512xf32>
    %316 = tpu.matmul %314, %315, %cst_93 {dimension_numbers = #tpu.dot_dimension_numbers<[1], [0], [0], [1], [0, 0, 1, 1], [], []>} : vector<64x128xbf16>, vector<128x512xbf16>, vector<64x512xf32> -> vector<64x512xf32>
    %c0_94 = arith.constant 0 : index
    %c0_95 = arith.constant 0 : index
    %317 = vector.load %arg8[%c0_94, %c0_95] : memref<1x512xf32, #tpu.memory_space<vmem>>, vector<1x512xf32>
    %318 = vector.broadcast %317 : vector<1x512xf32> to vector<64x512xf32>
    %319 = arith.addf %316, %318 : vector<64x512xf32>
    %320 = arith.addf %319, %4 : vector<64x512xf32>
    %321 = vector.shape_cast %320 : vector<64x512xf32> to vector<8x8x512xf32>
    %c0_96 = arith.constant 0 : index
    %c0_97 = arith.constant 0 : index
    %c0_98 = arith.constant 0 : index
    %322 = vector.load %arg9[%c0_96, %c0_97, %c0_98] : memref<8x8x512xf32, #tpu.memory_space<vmem>>, vector<8x8x512xf32>
    tpu.vector_store %arg9[%c0_96, %c0_97, %c0_98], %321 {strides = array<i32>} : memref<8x8x512xf32, #tpu.memory_space<vmem>>, vector<8x8x512xf32>,
    return
  }
  func.func @transform_0(%arg0: i32, %arg1: i32) -> (i32, i32, i32) {
    %c0_i32 = arith.constant 0 : i32
    %c0_i32_0 = arith.constant 0 : i32
    return %arg1, %arg0, %c0_i32 : i32, i32, i32
  }
  func.func @transform_1(%arg0: i32, %arg1: i32) -> (i32, i32) {
    %c0_i32 = arith.constant 0 : i32
    %c0_i32_0 = arith.constant 0 : i32
    %c0_i32_1 = arith.constant 0 : i32
    return %c0_i32, %c0_i32_0 : i32, i32
  }
  func.func @transform_2(%arg0: i32, %arg1: i32) -> (i32, i32) {
    %c0_i32 = arith.constant 0 : i32
    %c0_i32_0 = arith.constant 0 : i32
    %c0_i32_1 = arith.constant 0 : i32
    return %c0_i32, %c0_i32_0 : i32, i32
  }
  func.func @transform_3(%arg0: i32, %arg1: i32) -> (i32, i32) {
    %c0_i32 = arith.constant 0 : i32
    %c0_i32_0 = arith.constant 0 : i32
    %c0_i32_1 = arith.constant 0 : i32
    return %c0_i32, %c0_i32_0 : i32, i32
  }
  func.func @transform_4(%arg0: i32, %arg1: i32) -> (i32, i32) {
    %c0_i32 = arith.constant 0 : i32
    %c0_i32_0 = arith.constant 0 : i32
    %c0_i32_1 = arith.constant 0 : i32
    return %c0_i32, %c0_i32_0 : i32, i32
  }
  func.func @transform_5(%arg0: i32, %arg1: i32) -> (i32, i32) {
    %c0_i32 = arith.constant 0 : i32
    %c0_i32_0 = arith.constant 0 : i32
    %c0_i32_1 = arith.constant 0 : i32
    return %c0_i32, %c0_i32_0 : i32, i32
  }
  func.func @transform_6(%arg0: i32, %arg1: i32) -> (i32, i32) {
    %c0_i32 = arith.constant 0 : i32
    %c0_i32_0 = arith.constant 0 : i32
    %c0_i32_1 = arith.constant 0 : i32
    return %c0_i32, %c0_i32_0 : i32, i32
  }
  func.func @transform_7(%arg0: i32, %arg1: i32) -> (i32, i32, i32) {
    %c0_i32 = arith.constant 0 : i32
    %c0_i32_0 = arith.constant 0 : i32
    return %arg1, %arg0, %c0_i32 : i32, i32, i32
  }
}

</mosaic_0001>

<bundles_post_ra>
// kernel: tpu_custom_call.1
= control target key start
LH: loop header
LB: loop body
LE: loop exit
PB: predicated region body
PF: predicated region fallthrough
CT: control target
= control target key end

     0   :  { %12 = vsyncpa [#allocation6], 0  ;;  %s6104_s0 = inlined_call_operand.hbm [shape: f32[8,8,512], index: 0, kind: input, shape index: {}]   ;;  %s6105_s1 = inlined_call_operand.hbm [shape: bf16[512,384], index: 1, kind: input, shape index: {}]   ;;  %s6106_s2 = inlined_call_operand.hbm [shape: bf16[128,384], index: 2, kind: input, shape index: {}]   ;;  %s6107_s3 = inlined_call_operand.hbm [shape: bf16[128,512], index: 3, kind: input, shape index: {}]   ;;  %s6108_s4 = inlined_call_operand.hbm [shape: f32[1,384], index: 4, kind: input, shape index: {}]   ;;  %s6109_s5 = inlined_call_operand.vmem [shape: f32[1,128], index: 5, kind: input, shape index: {}]   ;;  %s6110_s6 = inlined_call_operand.vmem [shape: f32[1,512], index: 6, kind: input, shape index: {}]   ;;  %s6111_s7 = inlined_call_operand.hbm [shape: f32[8,8,512], index: 7, kind: output, shape index: {}]  }
   0x1   :  { %13 = vsyncpa [#allocation9], 0 }
   0x2   :  { %14 = vsyncpa [#allocation12], 0  ;;  %s33_s26 = sshll.u32 %s6105_s1, 4  ;;  %s34_s26 = int_to_ptr.hbm [resolvable:$true] %s33_s26 }
   0x3   :  { %15 = vsyncpa [#allocation7], 0  ;;  %s5555_s27 = smov [#allocation8]   ;;  %s59_s8 = sshll.u32 %s6107_s3, 4  ;;  %s60_s8 = int_to_ptr.hbm [resolvable:$true] %s59_s8 }
   0x4   :  { %s35_s28 = sshll.u32 %s5555_s27, 4  ;;  %s5556_s9 = smov 192   ;;  %s36_s28 = int_to_ptr.vmem [resolvable:$true] %s35_s28 }
   0x5   :  { %s5557_s10 = smov 12   ;;  %s5558_s11 = smov [#allocation11]  }
   0x6   :  { %41 = dma.hbm_to_vmem [thread:$0]  %s34_s26, 12288, %s36_s28, [#allocation9], %s5556_s9, %s5556_s9, %s5557_s10  }
   0x7   :  { %s61_s12 = sshll.u32 %s5558_s11, 4  ;;  %s5559_s13 = smov 256   ;;  %s62_s12 = int_to_ptr.vmem [resolvable:$true] %s61_s12 }
   0x8   :  { %s5560_s14 = smov 16   ;;  %s20_s16 = sshll.u32 %s6104_s0, 4  ;;  %s21_s16 = int_to_ptr.hbm [resolvable:$true] %s20_s16 }
   0x9   :  { %67 = dma.hbm_to_vmem [thread:$0]  %s60_s8, 4096, %s62_s12, [#allocation12], %s5559_s13, %s5559_s13, %s5560_s14  }
   0xa   :  { %s5561_s17 = smov [#allocation5]   ;;  %s46_s20 = sshll.u32 %s6106_s2, 4  ;;  %s47_s20 = int_to_ptr.hbm [resolvable:$true] %s46_s20 }
   0xb   :  { %s22_s18 = sshll.u32 %s5561_s17, 4  ;;  %s5562_s21 = smov 512   ;;  %s23_s18 = int_to_ptr.vmem [resolvable:$true] %s22_s18 }
   0xc   :  { %s5563_s22 = smov 32   ;;  %s5564_s23 = smov [#allocation10]  }
   0xd   :  { %28 = dma.hbm_to_vmem [thread:$0]  %s21_s16, 4096, %s23_s18, [#allocation6], %s5562_s21, %s5562_s21, %s5563_s22  }
   0xe   :  { %s48_s24 = sshll.u32 %s5564_s23, 4  ;;  %s73_s0 = sshll.u32 %s6108_s4, 4  ;;  %s49_s24 = int_to_ptr.vmem [resolvable:$true] %s48_s24  ;;  %s74_s0 = int_to_ptr.hbm [resolvable:$true] %s73_s0 }
   0xf   :  { %54 = dma.hbm_to_vmem [thread:$0]  %s47_s20, 3072, %s49_s24, [#allocation9], %s5556_s9, %s5556_s9, %s5557_s10  }
  0x10   :  { %s5565_s27 = smov [#allocation13]  }
  0x11   :  { %s75_s28 = sshll.u32 %s5565_s27, 4  ;;  %s76_s28 = int_to_ptr.vmem [resolvable:$true] %s75_s28 }
  0x12   :  { %78 = dma.hbm_to_vmem [thread:$0]  %s74_s0, 48, %s76_s28, [#allocation12]  }
  0x13   :  { %5547 = dma.done.wait [#allocation6], 4096  }
  0x14   :  { %5548 = vsyncadd [#allocation6], 4294963200 }
  0x15   :  { %5549 = dma.done.wait [#allocation9], 15360  }
  0x16   :  { %5550 = vsyncadd [#allocation9], 4294951936 }
  0x17   :  { %5551 = dma.done.wait [#allocation12], 4144  }
  0x18   :  { %5552 = vsyncadd [#allocation12], 4294963152  ;;  %v3745_v0 = vld [vmem:[#allocation8 + $0xa8] sm:$0xf]  ;;  %v4977_v1 = vld [vmem:[#allocation8 + $0xb0] sm:$0xf0] }
  0x19   :  { %v3841_v2 = vld [vmem:[#allocation8 + $0x168] sm:$0xf]  ;;  %v3746_v3 = vor.u32 %v4977_v1, %v3745_v0  ;;  %v5001_v4 = vld [vmem:[#allocation8 + $0x170] sm:$0xf0]  ;;  %v3733_v11 = vld [vmem:[#allocation8 + $0x90] sm:$0xf] }
  0x1a   :  { %v3937_v5 = vld [vmem:[#allocation8 + $0x228] sm:$0xf]  ;;  %v5025_v6 = vld [vmem:[#allocation8 + $0x230] sm:$0xf0]  ;;  %v3842_v7 = vor.u32 %v5001_v4, %v3841_v2  ;;  %v4974_v13 = vld [vmem:[#allocation8 + $0x98] sm:$0xf0] }
  0x1b   :  { %v3938_v8 = vor.u32 %v5025_v6, %v3937_v5  ;;  %v4033_v9 = vld [vmem:[#allocation8 + $0x2e8] sm:$0xf]  ;;  %v5049_v10 = vld [vmem:[#allocation8 + $0x2f0] sm:$0xf0]  ;;  %804 = vmatpush.bf16.msra.mxu0 %v3746_v3  ;;  %v3829_v14 = vld [vmem:[#allocation8 + $0x150] sm:$0xf]  ;;  %v3734_v16 = vor.u32 %v4974_v13, %v3733_v11 }
  0x1c   :  { %v4034_v12 = vor.u32 %v5049_v10, %v4033_v9  ;;  %v4998_v15 = vld [vmem:[#allocation8 + $0x158] sm:$0xf0]  ;;  %833 = vmatpush.bf16.msra.mxu1 %v3842_v7  ;;  %v3925_v18 = vld [vmem:[#allocation8 + $0x210] sm:$0xf]  ;;  %v3721_v23 = vld [vmem:[#allocation8 + $0x78] sm:$0xf] }
  0x1d   :  { %862 = vmatpush.bf16.msra.mxu2 %v3938_v8  ;;  %v3830_v17 = vor.u32 %v4998_v15, %v3829_v14  ;;  %v5022_v19 = vld [vmem:[#allocation8 + $0x218] sm:$0xf0]  ;;  %v4021_v20 = vld [vmem:[#allocation8 + $0x2d0] sm:$0xf]  ;;  %v4971_v24 = vld [vmem:[#allocation8 + $0x80] sm:$0xf0] }
  0x1e   :  { %891 = vmatpush.bf16.msra.mxu3 %v4034_v12  ;;  %v3926_v21 = vor.u32 %v5022_v19, %v3925_v18  ;;  %v5046_v22 = vld [vmem:[#allocation8 + $0x2d8] sm:$0xf0]  ;;  %v3817_v26 = vld [vmem:[#allocation8 + $0x138] sm:$0xf]  ;;  %v4995_v27 = vld [vmem:[#allocation8 + $0x140] sm:$0xf0]  ;;  %v3722_v29 = vor.u32 %v4971_v24, %v3721_v23 }
  0x1f   :  { %v4022_v25 = vor.u32 %v5046_v22, %v4021_v20  ;;  %v3913_v28 = vld [vmem:[#allocation8 + $0x1f8] sm:$0xf]  ;;  %805 = vmatpush.bf16.msra.mxu0 %v3734_v16  ;;  %v5019_v30 = vld [vmem:[#allocation8 + $0x200] sm:$0xf0]  ;;  %v3818_v33 = vor.u32 %v4995_v27, %v3817_v26  ;;  %v3709_v35 = vld [vmem:[#allocation8 + $0x60] sm:$0xf] }
  0x20   :  { %v4009_v31 = vld [vmem:[#allocation8 + $0x2b8] sm:$0xf]  ;;  %v5043_v32 = vld [vmem:[#allocation8 + $0x2c0] sm:$0xf0]  ;;  %834 = vmatpush.bf16.msra.mxu1 %v3830_v17  ;;  %v3914_v34 = vor.u32 %v5019_v30, %v3913_v28  ;;  %v4968_v36 = vld [vmem:[#allocation8 + $0x68] sm:$0xf0] }
  0x21   :  { %863 = vmatpush.bf16.msra.mxu2 %v3926_v21  ;;  %v3805_v37 = vld [vmem:[#allocation8 + $0x120] sm:$0xf]  ;;  %v4010_v38 = vor.u32 %v5043_v32, %v4009_v31  ;;  %v4992_v39 = vld [vmem:[#allocation8 + $0x128] sm:$0xf0]  ;;  %v3710_v44 = vor.u32 %v4968_v36, %v3709_v35  ;;  %v3697_v47 = vld [vmem:[#allocation8 + $0x48] sm:$0xf] }
  0x22   :  { %892 = vmatpush.bf16.msra.mxu3 %v4022_v25  ;;  %v3901_v40 = vld [vmem:[#allocation8 + $0x1e0] sm:$0xf]  ;;  %v5016_v41 = vld [vmem:[#allocation8 + $0x1e8] sm:$0xf0]  ;;  %v3806_v45 = vor.u32 %v4992_v39, %v3805_v37  ;;  %v4965_v48 = vld [vmem:[#allocation8 + $0x50] sm:$0xf0] }
  0x23   :  { %v3997_v42 = vld [vmem:[#allocation8 + $0x2a0] sm:$0xf]  ;;  %v5040_v43 = vld [vmem:[#allocation8 + $0x2a8] sm:$0xf0]  ;;  %806 = vmatpush.bf16.msra.mxu0 %v3722_v29  ;;  %v3902_v46 = vor.u32 %v5016_v41, %v3901_v40  ;;  %v3793_v49 = vld [vmem:[#allocation8 + $0x108] sm:$0xf]  ;;  %v3698_v56 = vor.u32 %v4965_v48, %v3697_v47 }
  0x24   :  { %835 = vmatpush.bf16.msra.mxu1 %v3818_v33  ;;  %v3998_v50 = vor.u32 %v5040_v43, %v3997_v42  ;;  %v4989_v51 = vld [vmem:[#allocation8 + $0x110] sm:$0xf0]  ;;  %v3889_v52 = vld [vmem:[#allocation8 + $0x1c8] sm:$0xf]  ;;  %v3685_v59 = vld [vmem:[#allocation8 + $0x30] sm:$0xf] }
  0x25   :  { %864 = vmatpush.bf16.msra.mxu2 %v3914_v34  ;;  %v5013_v53 = vld [vmem:[#allocation8 + $0x1d0] sm:$0xf0]  ;;  %v3985_v54 = vld [vmem:[#allocation8 + $0x288] sm:$0xf]  ;;  %v3794_v57 = vor.u32 %v4989_v51, %v3793_v49  ;;  %v4962_v60 = vld [vmem:[#allocation8 + $0x38] sm:$0xf0] }
  0x26   :  { %893 = vmatpush.bf16.msra.mxu3 %v4010_v38  ;;  %v5037_v55 = vld [vmem:[#allocation8 + $0x290] sm:$0xf0]  ;;  %v3890_v58 = vor.u32 %v5013_v53, %v3889_v52  ;;  %v3781_v61 = vld [vmem:[#allocation8 + $0xf0] sm:$0xf]  ;;  %v4986_v63 = vld [vmem:[#allocation8 + $0xf8] sm:$0xf0]  ;;  %v3686_v4 = vor.u32 %v4962_v60, %v3685_v59 }
  0x27   :  { %807 = vmatpush.bf16.msra.mxu0 %v3710_v44  ;;  %v3986_v62 = vor.u32 %v5037_v55, %v3985_v54  ;;  %v3877_v0 = vld [vmem:[#allocation8 + $0x1b0] sm:$0xf]  ;;  %v5010_v1 = vld [vmem:[#allocation8 + $0x1b8] sm:$0xf0]  ;;  %v3782_v5 = vor.u32 %v4986_v63, %v3781_v61  ;;  %v3673_v7 = vld [vmem:[#allocation8 + $0x18] sm:$0xf] }
  0x28   :  { %836 = vmatpush.bf16.msra.mxu1 %v3806_v45  ;;  %v3973_v2 = vld [vmem:[#allocation8 + $0x270] sm:$0xf]  ;;  %v5034_v3 = vld [vmem:[#allocation8 + $0x278] sm:$0xf0]  ;;  %v3878_v6 = vor.u32 %v5010_v1, %v3877_v0  ;;  %v4959_v8 = vld [vmem:[#allocation8 + $0x20] sm:$0xf0] }
  0x29   :  { %865 = vmatpush.bf16.msra.mxu2 %v3902_v46  ;;  %v3769_v9 = vld [vmem:[#allocation8 + $0xd8] sm:$0xf]  ;;  %v3974_v10 = vor.u32 %v5034_v3, %v3973_v2  ;;  %v4983_v11 = vld [vmem:[#allocation8 + $0xe0] sm:$0xf0]  ;;  %v3674_v16 = vor.u32 %v4959_v8, %v3673_v7  ;;  %v3661_v17 = vld [vmem:[#allocation8] sm:$0xf] }
  0x2a   :  { %894 = vmatpush.bf16.msra.mxu3 %v3998_v50  ;;  %v3865_v12 = vld [vmem:[#allocation8 + $0x198] sm:$0xf]  ;;  %v5007_v13 = vld [vmem:[#allocation8 + $0x1a0] sm:$0xf0]  ;;  %v4956_v18 = vld [vmem:[#allocation8 + $0x8] sm:$0xf0]  ;;  %v3770_v20 = vor.u32 %v4983_v11, %v3769_v9 }
  0x2b   :  { %808 = vmatpush.bf16.msra.mxu0 %v3698_v56  ;;  %v3961_v14 = vld [vmem:[#allocation8 + $0x258] sm:$0xf]  ;;  %v5031_v15 = vld [vmem:[#allocation8 + $0x260] sm:$0xf0]  ;;  %v3757_v19 = vld [vmem:[#allocation8 + $0xc0] sm:$0xf]  ;;  %v3866_v21 = vor.u32 %v5007_v13, %v3865_v12  ;;  %v3662_v32 = vor.u32 %v4956_v18, %v3661_v17 }
  0x2c   :  { %837 = vmatpush.bf16.msra.mxu1 %v3794_v57  ;;  %v4980_v22 = vld [vmem:[#allocation8 + $0xc8] sm:$0xf0]  ;;  %v3853_v23 = vld [vmem:[#allocation8 + $0x180] sm:$0xf]  ;;  %v3962_v25 = vor.u32 %v5031_v15, %v3961_v14  ;;  %v3747_v31 = vld [vmem:[#allocation8 + $0xb4] sm:$0xf0] }
  0x2d   :  { %866 = vmatpush.bf16.msra.mxu2 %v3890_v58  ;;  %v5004_v24 = vld [vmem:[#allocation8 + $0x188] sm:$0xf0]  ;;  %v3949_v26 = vld [vmem:[#allocation8 + $0x240] sm:$0xf]  ;;  %v3843_v35 = vld [vmem:[#allocation8 + $0x174] sm:$0xf0]  ;;  %v3758_v36 = vor.u32 %v4980_v22, %v3757_v19 }
  0x2e   :  { %895 = vmatpush.bf16.msra.mxu3 %v3986_v62  ;;  %v5028_v27 = vld [vmem:[#allocation8 + $0x248] sm:$0xf0]  ;;  %v108_v28 = vld [vmem:[#allocation5] sm:$0xff]  ;;  %v3854_v37 = vor.u32 %v5004_v24, %v3853_v23  ;;  %v110_v39 = vld [vmem:[#allocation5 + $0x10] sm:$0xff]  ;;  %s3637_s14 = sshll.u32 %s6111_s7, 4  ;;  %s3638_s14 = int_to_ptr.hbm [resolvable:$true] %s3637_s14 }
  0x2f   :  { %809 = vmatpush.bf16.msra.mxu0 %v3686_v4  ;;  %v112_v29 = vld [vmem:[#allocation5 + $0x20] sm:$0xff]  ;;  %v4976_v30 = vld [vmem:[#allocation8 + $0xac] sm:$0xf]  ;;  %v114_v40 = vld [vmem:[#allocation5 + $0x30] sm:$0xff]  ;;  %v3950_v41 = vor.u32 %v5028_v27, %v3949_v26 }
  0x30   :  { %838 = vmatpush.bf16.msra.mxu1 %v3782_v5  ;;  %v109_v33 = vld [vmem:[#allocation5 + $0x8] sm:$0xff]  ;;  %v3750_v42 = vor.u32 %v4976_v30, %v3747_v31  ;;  %v111_v43 = vld [vmem:[#allocation5 + $0x18] sm:$0xff]  ;;  %v4973_v45 = vld [vmem:[#allocation8 + $0x94] sm:$0xf]  ;;  %v5626_v46 = vpack.c.bf16 %v112_v29, %v108_v28  ;;  %v5630_v52 = vpack.c.bf16 %v114_v40, %v110_v39 }
  0x31   :  { %867 = vmatpush.bf16.msra.mxu2 %v3878_v6  ;;  %v5000_v34 = vld [vmem:[#allocation8 + $0x16c] sm:$0xf]  ;;  %v115_v44 = vld [vmem:[#allocation5 + $0x38] sm:$0xff]  ;;  %v3735_v47 = vld [vmem:[#allocation8 + $0x9c] sm:$0xf0] }
  0x32   :  { %896 = vmatpush.bf16.msra.mxu3 %v3974_v10  ;;  %v113_v38 = vld [vmem:[#allocation5 + $0x28] sm:$0xff]  ;;  %v3846_v48 = vor.u32 %v5000_v34, %v3843_v35  ;;  %v3939_v50 = vld [vmem:[#allocation8 + $0x234] sm:$0xf0]  ;;  %v4997_v53 = vld [vmem:[#allocation8 + $0x154] sm:$0xf]  ;;  %v5632_v55 = vpack.c.bf16 %v115_v44, %v111_v43  ;;  %v3738_v57 = vor.u32 %v4973_v45, %v3735_v47 }
  0x33   :  { %810 = vmatpush.bf16.msra.mxu0 %v3674_v16  ;;  %v5024_v49 = vld [vmem:[#allocation8 + $0x22c] sm:$0xf]  ;;  %v5628_v51 = vpack.c.bf16 %v113_v38, %v109_v33  ;;  %v3831_v54 = vld [vmem:[#allocation8 + $0x15c] sm:$0xf0]  ;;  %v5021_v58 = vld [vmem:[#allocation8 + $0x214] sm:$0xf] }
  0x34   :  { %839 = vmatpush.bf16.msra.mxu1 %v3770_v20  ;;  %v3942_v56 = vor.u32 %v5024_v49, %v3939_v50  ;;  %v3927_v59 = vld [vmem:[#allocation8 + $0x21c] sm:$0xf0]  ;;  %v4970_v60 = vld [vmem:[#allocation8 + $0x7c] sm:$0xf]  ;;  %v3723_v61 = vld [vmem:[#allocation8 + $0x84] sm:$0xf0]  ;;  %v3834_v62 = vor.u32 %v4997_v53, %v3831_v54 }
  0x35   :  { %868 = vmatpush.bf16.msra.mxu2 %v3866_v21  ;;  %v4994_v63 = vld [vmem:[#allocation8 + $0x13c] sm:$0xf]  ;;  %v3819_v0 = vld [vmem:[#allocation8 + $0x144] sm:$0xf0]  ;;  %v4967_v1 = vld [vmem:[#allocation8 + $0x64] sm:$0xf]  ;;  %v3930_v2 = vor.u32 %v5021_v58, %v3927_v59  ;;  %v3726_v4 = vor.u32 %v4970_v60, %v3723_v61 }
  0x36   :  { %897 = vmatpush.bf16.msra.mxu3 %v3962_v25  ;;  %v5048_v3 = vld [vmem:[#allocation8 + $0x2ec] sm:$0xf]  ;;  %v4035_v5 = vld [vmem:[#allocation8 + $0x2f4] sm:$0xf0]  ;;  %v5018_v6 = vld [vmem:[#allocation8 + $0x1fc] sm:$0xf]  ;;  %v3822_v9 = vor.u32 %v4994_v63, %v3819_v0 }
  0x37   :  { %811 = vmatpush.bf16.msra.mxu0 %v3662_v32  ;;  %v3915_v7 = vld [vmem:[#allocation8 + $0x204] sm:$0xf0]  ;;  %v3711_v8 = vld [vmem:[#allocation8 + $0x6c] sm:$0xf0]  ;;  %v4038_v10 = vor.u32 %v5048_v3, %v4035_v5  ;;  %v5045_v11 = vld [vmem:[#allocation8 + $0x2d4] sm:$0xf] }
  0x38   :  { %840 = vmatpush.bf16.msra.mxu1 %v3758_v36  ;;  %v4023_v12 = vld [vmem:[#allocation8 + $0x2dc] sm:$0xf0]  ;;  %v4991_v13 = vld [vmem:[#allocation8 + $0x124] sm:$0xf]  ;;  %v3807_v14 = vld [vmem:[#allocation8 + $0x12c] sm:$0xf0]  ;;  %v3918_v15 = vor.u32 %v5018_v6, %v3915_v7  ;;  %v3714_v20 = vor.u32 %v4967_v1, %v3711_v8 }
  0x39   :  { %869 = vmatpush.bf16.msra.mxu2 %v3854_v37  ;;  %v4026_v16 = vor.u32 %v5045_v11, %v4023_v12  ;;  %v5042_v17 = vld [vmem:[#allocation8 + $0x2bc] sm:$0xf]  ;;  %v116_v18 = vld [vmem:[#allocation5 + $0x40] sm:$0xff]  ;;  %v4011_v21 = vld [vmem:[#allocation8 + $0x2c4] sm:$0xf0]  ;;  %v3810_v26 = vor.u32 %v4991_v13, %v3807_v14 }
  0x3a   :  { %898 = vmatpush.bf16.msra.mxu3 %v3950_v41  ;;  %812 = vmatmul.bf16.vlgmr.msra.gmra.mxu0 %v5626_v46  ;;  %v120_v19 = vld [vmem:[#allocation5 + $0x60] sm:$0xff]  ;;  %v3903_v23 = vld [vmem:[#allocation8 + $0x1ec] sm:$0xf0]  ;;  %v4964_v24 = vld [vmem:[#allocation8 + $0x4c] sm:$0xf]  ;;  %v4014_v33 = vor.u32 %v5042_v17, %v4011_v21 }
  0x3b   :  { %920 = vmatpush.bf16.msrb.mxu0 %v3750_v42  ;;  %841 = vmatmul.bf16.vlgmr.msra.gmra.mxu1 %v5628_v51  ;;  %v5015_v22 = vld [vmem:[#allocation8 + $0x1e4] sm:$0xf]  ;;  %v3699_v25 = vld [vmem:[#allocation8 + $0x54] sm:$0xf0]  ;;  %v117_v27 = vld [vmem:[#allocation5 + $0x48] sm:$0xff]  ;;  %v5638_v39 = vpack.c.bf16 %v120_v19, %v116_v18 }
  0x3c   :  { %949 = vmatpush.bf16.msrb.mxu1 %v3846_v48  ;;  %870 = vmatmul.bf16.vlgmr.msra.gmra.mxu2 %v5630_v52  ;;  %v4988_v28 = vld [vmem:[#allocation8 + $0x10c] sm:$0xf]  ;;  %v3795_v29 = vld [vmem:[#allocation8 + $0x114] sm:$0xf0]  ;;  %v118_v31 = vld [vmem:[#allocation5 + $0x50] sm:$0xff]  ;;  %v3906_v34 = vor.u32 %v5015_v22, %v3903_v23  ;;  %v3702_v37 = vor.u32 %v4964_v24, %v3699_v25 }
  0x3d   :  { %899 = vmatmul.bf16.vlgmr.msra.gmra.mxu3 %v5632_v55  ;;  %978 = vmatpush.bf16.msrb.mxu2 %v3942_v56  ;;  %v121_v30 = vld [vmem:[#allocation5 + $0x68] sm:$0xff]  ;;  %v122_v32 = vld [vmem:[#allocation5 + $0x70] sm:$0xff]  ;;  %v119_v35 = vld [vmem:[#allocation5 + $0x58] sm:$0xff]  ;;  %v3798_v41 = vor.u32 %v4988_v28, %v3795_v29 }
  0x3e   :  { %1007 = vmatpush.bf16.msrb.mxu3 %v4038_v10  ;;  %v123_v36 = vld [vmem:[#allocation5 + $0x78] sm:$0xff]  ;;  %v4961_v38 = vld [vmem:[#allocation8 + $0x34] sm:$0xf]  ;;  %v3687_v40 = vld [vmem:[#allocation8 + $0x3c] sm:$0xf0]  ;;  %v5640_v44 = vpack.c.bf16 %v121_v30, %v117_v27  ;;  %v5642_v45 = vpack.c.bf16 %v122_v32, %v118_v31 }
  0x3f   :  { %921 = vmatpush.bf16.msrb.mxu0 %v3738_v57  ;;  %v5039_v42 = vld [vmem:[#allocation8 + $0x2a4] sm:$0xf]  ;;  %v3999_v43 = vld [vmem:[#allocation8 + $0x2ac] sm:$0xf0]  ;;  %v5644_v47 = vpack.c.bf16 %v123_v36, %v119_v35  ;;  %v3690_v48 = vor.u32 %v4961_v38, %v3687_v40  ;;  %v5012_v50 = vld [vmem:[#allocation8 + $0x1cc] sm:$0xf] }
  0x40   :  { %950 = vmatpush.bf16.msrb.mxu1 %v3834_v62  ;;  %v4002_v49 = vor.u32 %v5039_v42, %v3999_v43  ;;  %v3891_v53 = vld [vmem:[#allocation8 + $0x1d4] sm:$0xf0]  ;;  %v4958_v56 = vld [vmem:[#allocation8 + $0x1c] sm:$0xf]  ;;  %v3675_v57 = vld [vmem:[#allocation8 + $0x24] sm:$0xf0] }
  0x41   :  { %979 = vmatpush.bf16.msrb.mxu2 %v3930_v2  ;;  %v3894_v54 = vor.u32 %v5012_v50, %v3891_v53  ;;  %v4985_v58 = vld [vmem:[#allocation8 + $0xf4] sm:$0xf]  ;;  %v3783_v59 = vld [vmem:[#allocation8 + $0xfc] sm:$0xf0]  ;;  %v5036_v60 = vld [vmem:[#allocation8 + $0x28c] sm:$0xf]  ;;  %v3678_v62 = vor.u32 %v4958_v56, %v3675_v57 }
  0x42   :  { %1008 = vmatpush.bf16.msrb.mxu3 %v4026_v16  ;;  %v3987_v61 = vld [vmem:[#allocation8 + $0x294] sm:$0xf0]  ;;  %v3786_v63 = vor.u32 %v4985_v58, %v3783_v59  ;;  %v5009_v1 = vld [vmem:[#allocation8 + $0x1b4] sm:$0xf]  ;;  %v3879_v2 = vld [vmem:[#allocation8 + $0x1bc] sm:$0xf0] }
  0x43   :  { %922 = vmatpush.bf16.msrb.mxu0 %v3726_v4  ;;  %v3990_v0 = vor.u32 %v5036_v60, %v3987_v61  ;;  %v5033_v3 = vld [vmem:[#allocation8 + $0x274] sm:$0xf]  ;;  %v3882_v4 = vor.u32 %v5009_v1, %v3879_v2  ;;  %v3975_v5 = vld [vmem:[#allocation8 + $0x27c] sm:$0xf0]  ;;  %v4955_v6 = vld [vmem:[#allocation8 + $0x4] sm:$0xf] }
  0x44   :  { %951 = vmatpush.bf16.msrb.mxu1 %v3822_v9  ;;  %v3663_v7 = vld [vmem:[#allocation8 + $0xc] sm:$0xf0]  ;;  %v4982_v8 = vld [vmem:[#allocation8 + $0xdc] sm:$0xf]  ;;  %v3771_v9 = vld [vmem:[#allocation8 + $0xe4] sm:$0xf0]  ;;  %v3978_v13 = vor.u32 %v5033_v3, %v3975_v5 }
  0x45   :  { %980 = vmatpush.bf16.msrb.mxu2 %v3918_v15  ;;  %v5006_v10 = vld [vmem:[#allocation8 + $0x19c] sm:$0xf]  ;;  %v3774_v11 = vor.u32 %v4982_v8, %v3771_v9  ;;  %v3867_v12 = vld [vmem:[#allocation8 + $0x1a4] sm:$0xf0]  ;;  %v3666_v14 = vor.u32 %v4955_v6, %v3663_v7  ;;  %v4979_v16 = vld [vmem:[#allocation8 + $0xc4] sm:$0xf] }
  0x46   :  { %1009 = vmatpush.bf16.msrb.mxu3 %v4014_v33  ;;  %v3870_v15 = vor.u32 %v5006_v10, %v3867_v12  ;;  %v3759_v17 = vld [vmem:[#allocation8 + $0xcc] sm:$0xf0]  ;;  %v5003_v18 = vld [vmem:[#allocation8 + $0x184] sm:$0xf]  ;;  %v5030_v19 = vld [vmem:[#allocation8 + $0x25c] sm:$0xf] }
  0x47   :  { %923 = vmatpush.bf16.msrb.mxu0 %v3714_v20  ;;  %v3963_v20 = vld [vmem:[#allocation8 + $0x264] sm:$0xf0]  ;;  %v3855_v21 = vld [vmem:[#allocation8 + $0x18c] sm:$0xf0]  ;;  %v124_v22 = vld [vmem:[#allocation5 + $0x80] sm:$0xff]  ;;  %v3762_v25 = vor.u32 %v4979_v16, %v3759_v17 }
  0x48   :  { %952 = vmatpush.bf16.msrb.mxu1 %v3810_v26  ;;  %v128_v23 = vld [vmem:[#allocation5 + $0xa0] sm:$0xff]  ;;  %v125_v24 = vld [vmem:[#allocation5 + $0x88] sm:$0xff]  ;;  %v126_v27 = vld [vmem:[#allocation5 + $0x90] sm:$0xff]  ;;  %v3858_v29 = vor.u32 %v5003_v18, %v3855_v21  ;;  %v3966_v32 = vor.u32 %v5030_v19, %v3963_v20 }
  0x49   :  { %981 = vmatpush.bf16.msrb.mxu2 %v3906_v34  ;;  %v129_v26 = vld [vmem:[#allocation5 + $0xa8] sm:$0xff]  ;;  %v130_v28 = vld [vmem:[#allocation5 + $0xb0] sm:$0xff]  ;;  %v127_v30 = vld [vmem:[#allocation5 + $0x98] sm:$0xff]  ;;  %v5650_v33 = vpack.c.bf16 %v128_v23, %v124_v22 }
  0x4a   :  { %817 = vmatmul.bf16.gmra.mxu0 %v5638_v39  ;;  %1010 = vmatpush.bf16.msrb.mxu3 %v4002_v49  ;;  %v131_v31 = vld [vmem:[#allocation5 + $0xb8] sm:$0xff]  ;;  %v5027_v34 = vld [vmem:[#allocation8 + $0x244] sm:$0xf]  ;;  %v3951_v35 = vld [vmem:[#allocation8 + $0x24c] sm:$0xf0]  ;;  %v5652_v36 = vpack.c.bf16 %v129_v26, %v125_v24 }
  0x4b   :  { %924 = vmatpush.bf16.msrb.mxu0 %v3702_v37  ;;  %846 = vmatmul.bf16.gmra.mxu1 %v5640_v44  ;;  %v5654_v37 = vpack.c.bf16 %v130_v28, %v126_v27  ;;  %v5656_v38 = vpack.c.bf16 %v131_v31, %v127_v30  ;;  %v3954_v40 = vor.u32 %v5027_v34, %v3951_v35  ;;  %v4978_v42 = vld [vmem:[#allocation8 + $0xb8] sm:$0xf0]  ;;  %v4975_v49 = vld [vmem:[#allocation8 + $0xa0] sm:$0xf0]  ;;  %v3849_v50 = vld [vmem:[#allocation8 + $0x170] sm:$0xf] }
  0x4c   :  { %953 = vmatpush.bf16.msrb.mxu1 %v3798_v41  ;;  %875 = vmatmul.bf16.gmra.mxu2 %v5642_v45  ;;  %v3753_v41 = vld [vmem:[#allocation8 + $0xb0] sm:$0xf]  ;;  %v5002_v53 = vld [vmem:[#allocation8 + $0x178] sm:$0xf0]  ;;  %v132_v57 = vld [vmem:[#allocation5 + $0xc0] sm:$0xff] }
  0x4d   :  { %904 = vmatmul.bf16.gmra.mxu3 %v5644_v47  ;;  %982 = vmatpush.bf16.msrb.mxu2 %v3894_v54  ;;  %v3754_v43 = vor.u32 %v4978_v42, %v3753_v41  ;;  %v3850_v56 = vor.u32 %v5002_v53, %v3849_v50  ;;  %v136_v58 = vld [vmem:[#allocation5 + $0xe0] sm:$0xff]  ;;  %v133_v59 = vld [vmem:[#allocation5 + $0xc8] sm:$0xff]  ;;  %v134_v61 = vld [vmem:[#allocation5 + $0xd0] sm:$0xff] }
  0x4e   :  { %1011 = vmatpush.bf16.msrb.mxu3 %v3990_v0  ;;  %v137_v60 = vld [vmem:[#allocation5 + $0xe8] sm:$0xff]  ;;  %v139_v0 = vld [vmem:[#allocation5 + $0xf8] sm:$0xff]  ;;  %v5662_v1 = vpack.c.bf16 %v136_v58, %v132_v57  ;;  %v3729_v5 = vld [vmem:[#allocation8 + $0x80] sm:$0xf] }
  0x4f   :  { %925 = vmatpush.bf16.msrb.mxu0 %v3690_v48  ;;  %v3741_v48 = vld [vmem:[#allocation8 + $0x98] sm:$0xf]  ;;  %v5664_v2 = vpack.c.bf16 %v137_v60, %v133_v59  ;;  %v4972_v6 = vld [vmem:[#allocation8 + $0x88] sm:$0xf0]  ;;  %v4999_v9 = vld [vmem:[#allocation8 + $0x160] sm:$0xf0] }
  0x50   :  { %954 = vmatpush.bf16.msrb.mxu1 %v3786_v63  ;;  %v3742_v54 = vor.u32 %v4975_v49, %v3741_v48  ;;  %v135_v63 = vld [vmem:[#allocation5 + $0xd8] sm:$0xff]  ;;  %v3730_v8 = vor.u32 %v4972_v6, %v3729_v5  ;;  %v3945_v10 = vld [vmem:[#allocation8 + $0x230] sm:$0xf]  ;;  %v3825_v16 = vld [vmem:[#allocation8 + $0x140] sm:$0xf] }
  0x51   :  { %983 = vmatpush.bf16.msrb.mxu2 %v3882_v4  ;;  %v5668_v4 = vpack.c.bf16 %v139_v0, %v135_v63  ;;  %v3837_v7 = vld [vmem:[#allocation8 + $0x158] sm:$0xf]  ;;  %v4996_v18 = vld [vmem:[#allocation8 + $0x148] sm:$0xf0]  ;;  %v5023_v20 = vld [vmem:[#allocation8 + $0x220] sm:$0xf0] }
  0x52   :  { %1012 = vmatpush.bf16.msrb.mxu3 %v3978_v13  ;;  %v3838_v12 = vor.u32 %v4999_v9, %v3837_v7  ;;  %v3933_v19 = vld [vmem:[#allocation8 + $0x218] sm:$0xf]  ;;  %v3826_v21 = vor.u32 %v4996_v18, %v3825_v16  ;;  %v3705_v23 = vld [vmem:[#allocation8 + $0x50] sm:$0xf]  ;;  %v4966_v24 = vld [vmem:[#allocation8 + $0x58] sm:$0xf0] }
  0x53   :  { %926 = vmatpush.bf16.msrb.mxu0 %v3678_v62  ;;  %v138_v62 = vld [vmem:[#allocation5 + $0xf0] sm:$0xff]  ;;  %v3934_v22 = vor.u32 %v5023_v20, %v3933_v19  ;;  %v3706_v26 = vor.u32 %v4966_v24, %v3705_v23  ;;  %v5020_v34 = vld [vmem:[#allocation8 + $0x208] sm:$0xf0]  ;;  %v4029_v35 = vld [vmem:[#allocation8 + $0x2d8] sm:$0xf] }
  0x54   :  { %955 = vmatpush.bf16.msrb.mxu1 %v3774_v11  ;;  %v5666_v3 = vpack.c.bf16 %v138_v62, %v134_v61  ;;  %v5026_v11 = vld [vmem:[#allocation8 + $0x238] sm:$0xf0]  ;;  %v4993_v27 = vld [vmem:[#allocation8 + $0x130] sm:$0xf0]  ;;  %v4041_v28 = vld [vmem:[#allocation8 + $0x2f0] sm:$0xf] }
  0x55   :  { %984 = vmatpush.bf16.msrb.mxu2 %v3870_v15  ;;  %v3946_v13 = vor.u32 %v5026_v11, %v3945_v10  ;;  %v4969_v15 = vld [vmem:[#allocation8 + $0x70] sm:$0xf0]  ;;  %v5047_v41 = vld [vmem:[#allocation8 + $0x2e0] sm:$0xf0]  ;;  %v3693_v42 = vld [vmem:[#allocation8 + $0x38] sm:$0xf] }
  0x56   :  { %1013 = vmatpush.bf16.msrb.mxu3 %v3966_v32  ;;  %v3921_v32 = vld [vmem:[#allocation8 + $0x200] sm:$0xf]  ;;  %v4030_v48 = vor.u32 %v5047_v41, %v4029_v35  ;;  %v3801_v50 = vld [vmem:[#allocation8 + $0x110] sm:$0xf]  ;;  %v4990_v53 = vld [vmem:[#allocation8 + $0x118] sm:$0xf0] }
  0x57   :  { %927 = vmatpush.bf16.msrb.mxu0 %v3666_v14  ;;  %v3717_v14 = vld [vmem:[#allocation8 + $0x68] sm:$0xf]  ;;  %v5044_v57 = vld [vmem:[#allocation8 + $0x2c8] sm:$0xf0]  ;;  %v5017_v59 = vld [vmem:[#allocation8 + $0x1f0] sm:$0xf0] }
  0x58   :  { %956 = vmatpush.bf16.msrb.mxu1 %v3762_v25  ;;  %v3718_v17 = vor.u32 %v4969_v15, %v3717_v14  ;;  %v3813_v25 = vld [vmem:[#allocation8 + $0x128] sm:$0xf]  ;;  %v5041_v63 = vld [vmem:[#allocation8 + $0x2b0] sm:$0xf0]  ;;  %v3897_v5 = vld [vmem:[#allocation8 + $0x1d0] sm:$0xf] }
  0x59   :  { %985 = vmatpush.bf16.msrb.mxu2 %v3858_v29  ;;  %v5050_v29 = vld [vmem:[#allocation8 + $0x2f8] sm:$0xf0]  ;;  %v3814_v30 = vor.u32 %v4993_v27, %v3813_v25  ;;  %v3909_v58 = vld [vmem:[#allocation8 + $0x1e8] sm:$0xf]  ;;  %v4960_v9 = vld [vmem:[#allocation8 + $0x28] sm:$0xf0] }
  0x5a   :  { %822 = vmatmul.bf16.gmra.mxu0 %v5650_v33  ;;  %1014 = vmatpush.bf16.msrb.mxu3 %v3954_v40  ;;  %v4042_v31 = vor.u32 %v5050_v29, %v4041_v28  ;;  %v3922_v40 = vor.u32 %v5020_v34, %v3921_v32  ;;  %v3910_v60 = vor.u32 %v5017_v59, %v3909_v58  ;;  %v4005_v62 = vld [vmem:[#allocation8 + $0x2a8] sm:$0xf]  ;;  %v5014_v6 = vld [vmem:[#allocation8 + $0x1d8] sm:$0xf0]  ;;  %v3789_v10 = vld [vmem:[#allocation8 + $0xf8] sm:$0xf] }
  0x5b   :  { %851 = vmatmul.bf16.gmra.mxu1 %v5652_v36  ;;  %1036 = vmatpush.bf16.msra.mxu0 %v3754_v43  ;;  %v4963_v43 = vld [vmem:[#allocation8 + $0x40] sm:$0xf0]  ;;  %v4006_v0 = vor.u32 %v5041_v63, %v4005_v62  ;;  %v3898_v7 = vor.u32 %v5014_v6, %v3897_v5  ;;  %v5038_v14 = vld [vmem:[#allocation8 + $0x298] sm:$0xf0]  ;;  %v3981_v19 = vld [vmem:[#allocation8 + $0x278] sm:$0xf] }
  0x5c   :  { %880 = vmatmul.bf16.gmra.mxu2 %v5654_v37  ;;  %1065 = vmatpush.bf16.msra.mxu1 %v3850_v56  ;;  %v3694_v49 = vor.u32 %v4963_v43, %v3693_v42  ;;  %v3802_v56 = vor.u32 %v4990_v53, %v3801_v50  ;;  %v5011_v18 = vld [vmem:[#allocation8 + $0x1c0] sm:$0xf0]  ;;  %v4957_v23 = vld [vmem:[#allocation8 + $0x10] sm:$0xf0]  ;;  %v3777_v25 = vld [vmem:[#allocation8 + $0xe0] sm:$0xf] }
  0x5d   :  { %909 = vmatmul.bf16.gmra.mxu3 %v5656_v38  ;;  %1094 = vmatpush.bf16.msra.mxu2 %v3946_v13  ;;  %v3993_v13 = vld [vmem:[#allocation8 + $0x290] sm:$0xf]  ;;  %v3873_v27 = vld [vmem:[#allocation8 + $0x1a0] sm:$0xf]  ;;  %v5008_v29 = vld [vmem:[#allocation8 + $0x1a8] sm:$0xf0] }
  0x5e   :  { %1123 = vmatpush.bf16.msra.mxu3 %v4042_v31  ;;  %v3994_v16 = vor.u32 %v5038_v14, %v3993_v13  ;;  %v3874_v31 = vor.u32 %v5008_v29, %v3873_v27  ;;  %v3969_v32 = vld [vmem:[#allocation8 + $0x260] sm:$0xf]  ;;  %v5032_v34 = vld [vmem:[#allocation8 + $0x268] sm:$0xf0]  ;;  %v4981_v41 = vld [vmem:[#allocation8 + $0xd0] sm:$0xf0] }
  0x5f   :  { %1037 = vmatpush.bf16.msra.mxu0 %v3742_v54  ;;  %v4017_v54 = vld [vmem:[#allocation8 + $0x2c0] sm:$0xf]  ;;  %v3970_v35 = vor.u32 %v5032_v34, %v3969_v32  ;;  %v3861_v42 = vld [vmem:[#allocation8 + $0x188] sm:$0xf]  ;;  %v5029_v53 = vld [vmem:[#allocation8 + $0x250] sm:$0xf0] }
  0x60   :  { %1066 = vmatpush.bf16.msra.mxu1 %v3838_v12  ;;  %v4018_v61 = vor.u32 %v5044_v57, %v4017_v54  ;;  %v4987_v12 = vld [vmem:[#allocation8 + $0x100] sm:$0xf0]  ;;  %v3957_v50 = vld [vmem:[#allocation8 + $0x248] sm:$0xf]  ;;  %v5073_v57 = vld [vmem:[#allocation10 + $0xb0] sm:$0xf0] }
  0x61   :  { %1095 = vmatpush.bf16.msra.mxu2 %v3934_v22  ;;  %v3790_v15 = vor.u32 %v4987_v12, %v3789_v10  ;;  %v3669_v22 = vld [vmem:[#allocation8 + $0x8] sm:$0xf]  ;;  %v3958_v54 = vor.u32 %v5029_v53, %v3957_v50  ;;  %v4117_v59 = vld [vmem:[#allocation10 + $0x90] sm:$0xf]  ;;  %v4131_v63 = vld [vmem:[#allocation10 + $0xb4] sm:$0xf0] }
  0x62   :  { %1124 = vmatpush.bf16.msra.mxu3 %v4030_v48  ;;  %v3670_v24 = vor.u32 %v4957_v23, %v3669_v22  ;;  %v5005_v48 = vld [vmem:[#allocation8 + $0x190] sm:$0xf0]  ;;  %v4105_v5 = vld [vmem:[#allocation10 + $0x78] sm:$0xf]  ;;  %v5067_v6 = vld [vmem:[#allocation10 + $0x80] sm:$0xf0] }
  0x63   :  { %1038 = vmatpush.bf16.msra.mxu0 %v3730_v8  ;;  %v3681_v8 = vld [vmem:[#allocation8 + $0x20] sm:$0xf]  ;;  %v4137_v12 = vld [vmem:[#allocation10 + $0xb0] sm:$0xf]  ;;  %v5074_v13 = vld [vmem:[#allocation10 + $0xb8] sm:$0xf0] }
  0x64   :  { %1067 = vmatpush.bf16.msra.mxu1 %v3826_v21  ;;  %v3682_v11 = vor.u32 %v4960_v9, %v3681_v8  ;;  %v5035_v21 = vld [vmem:[#allocation8 + $0x280] sm:$0xf0]  ;;  %v4106_v8 = vor.u32 %v5067_v6, %v4105_v5  ;;  %v4119_v9 = vld [vmem:[#allocation10 + $0x9c] sm:$0xf0]  ;;  %v4081_v29 = vld [vmem:[#allocation10 + $0x48] sm:$0xf] }
  0x65   :  { %1096 = vmatpush.bf16.msra.mxu2 %v3922_v40  ;;  %v3765_v40 = vld [vmem:[#allocation8 + $0xc8] sm:$0xf]  ;;  %v4093_v14 = vld [vmem:[#allocation10 + $0x60] sm:$0xf]  ;;  %v5071_v27 = vld [vmem:[#allocation10 + $0xa0] sm:$0xf0] }
  0x66   :  { %1125 = vmatpush.bf16.msra.mxu3 %v4018_v61  ;;  %v3766_v43 = vor.u32 %v4981_v41, %v3765_v40  ;;  %v5072_v61 = vld [vmem:[#allocation10 + $0xac] sm:$0xf]  ;;  %v4095_v34 = vld [vmem:[#allocation10 + $0x6c] sm:$0xf0] }
  0x67   :  { %1039 = vmatpush.bf16.msra.mxu0 %v3718_v17  ;;  %v3885_v17 = vld [vmem:[#allocation8 + $0x1b8] sm:$0xf]  ;;  %v5068_v50 = vld [vmem:[#allocation10 + $0x88] sm:$0xf0]  ;;  %v4069_v53 = vld [vmem:[#allocation10 + $0x30] sm:$0xf] }
  0x68   :  { %1068 = vmatpush.bf16.msra.mxu1 %v3814_v30  ;;  %v3886_v20 = vor.u32 %v5011_v18, %v3885_v17  ;;  %v3982_v30 = vor.u32 %v5035_v21, %v3981_v19  ;;  %v5066_v17 = vld [vmem:[#allocation10 + $0x7c] sm:$0xf]  ;;  %v4107_v18 = vld [vmem:[#allocation10 + $0x84] sm:$0xf0] }
  0x69   :  { %1097 = vmatpush.bf16.msra.mxu2 %v3910_v60  ;;  %v5070_v60 = vld [vmem:[#allocation10 + $0x98] sm:$0xf0]  ;;  %v4110_v21 = vor.u32 %v5066_v17, %v4107_v18 }
  0x6a   :  { %827 = vmatmul.bf16.gmra.mxu0 %v5662_v1  ;;  %1126 = vmatpush.bf16.msra.mxu3 %v4006_v0  ;;  %v4118_v62 = vor.u32 %v5070_v60, %v4117_v59  ;;  %v4134_v0 = vor.u32 %v5072_v61, %v4131_v63 }
  0x6b   :  { %856 = vmatmul.bf16.gmra.mxu1 %v5664_v2  ;;  %1040 = vmatpush.bf16.msra.mxu0 %v3706_v26  ;;  %v4984_v26 = vld [vmem:[#allocation8 + $0xe8] sm:$0xf0] }
  0x6c   :  { %885 = vmatmul.bf16.gmra.mxu2 %v5666_v3  ;;  %1069 = vmatpush.bf16.msra.mxu1 %v3802_v56  ;;  %v3778_v28 = vor.u32 %v4984_v26, %v3777_v25  ;;  %v4129_v56 = vld [vmem:[#allocation10 + $0xa8] sm:$0xf]  ;;  %v4125_v26 = vld [vmem:[#allocation10 + $0x98] sm:$0xf] }
  0x6d   :  { %914 = vmatmul.bf16.gmra.mxu3 %v5668_v4  ;;  %1098 = vmatpush.bf16.msra.mxu2 %v3898_v7  ;;  %v4130_v58 = vor.u32 %v5073_v57, %v4129_v56  ;;  %v5069_v7 = vld [vmem:[#allocation10 + $0x94] sm:$0xf]  ;;  %v5060_v56 = vld [vmem:[#allocation10 + $0x4c] sm:$0xf]  ;;  %v4083_v57 = vld [vmem:[#allocation10 + $0x54] sm:$0xf0] }
  0x6e   :  { %1127 = vmatpush.bf16.msra.mxu3 %v3994_v16  ;;  %v4122_v10 = vor.u32 %v5069_v7, %v4119_v9  ;;  %v5064_v16 = vld [vmem:[#allocation10 + $0x68] sm:$0xf0]  ;;  %v4086_v59 = vor.u32 %v5060_v56, %v4083_v57  ;;  %v4101_v7 = vld [vmem:[#allocation10 + $0x68] sm:$0xf] }
  0x6f   :  { %1041 = vmatpush.bf16.msra.mxu0 %v3694_v49  ;;  %v3862_v49 = vor.u32 %v5005_v48, %v3861_v42 }
  0x70   :  { %1070 = vmatpush.bf16.msra.mxu1 %v3790_v15  ;;  %v4138_v15 = vor.u32 %v5074_v13, %v4137_v12  ;;  %v5055_v12 = vld [vmem:[#allocation10 + $0x20] sm:$0xf0]  ;;  %v5057_v13 = vld [vmem:[#allocation10 + $0x34] sm:$0xf] }
  0x71   :  { %1099 = vmatpush.bf16.msra.mxu2 %v3886_v20  ;;  %v4094_v20 = vor.u32 %v5064_v16, %v4093_v14 }
  0x72   :  { %1128 = vmatpush.bf16.msra.mxu3 %v3982_v30  ;;  %v5061_v30 = vld [vmem:[#allocation10 + $0x50] sm:$0xf0] }
  0x73   :  { %1042 = vmatpush.bf16.msra.mxu0 %v3682_v11  ;;  %v5690_v11 = vld [vmem:[#allocation13] sm:$0x7]  ;;  %v4082_v32 = vor.u32 %v5061_v30, %v4081_v29  ;;  %v5051_v29 = vld [vmem:[#allocation10 + $0x4] sm:$0xf]  ;;  %v4047_v30 = vld [vmem:[#allocation10 + $0xc] sm:$0xf0] }
  0x74   :  { %1071 = vmatpush.bf16.msra.mxu1 %v3778_v28  ;;  %v5693_v19 = vperm.slane %v5690_v11, 0  ;;  %v4126_v28 = vor.u32 %v5071_v27, %v4125_v26  ;;  %v5052_v27 = vld [vmem:[#allocation10 + $0x8] sm:$0xf0] }
  0x75   :  { %1100 = vmatpush.bf16.msra.mxu2 %v3874_v31  ;;  %v5063_v31 = vld [vmem:[#allocation10 + $0x64] sm:$0xf] }
  0x76   :  { %1129 = vmatpush.bf16.msra.mxu3 %v3970_v35  ;;  %v4098_v35 = vor.u32 %v5063_v31, %v4095_v34 }
  0x77   :  { %1043 = vmatpush.bf16.msra.mxu0 %v3670_v24 }
  0x78   :  { %1072 = vmatpush.bf16.msra.mxu1 %v3766_v43 }
  0x79   :  { %1101 = vmatpush.bf16.msra.mxu2 %v3862_v49  ;;  %v4113_v49 = vld [vmem:[#allocation10 + $0x80] sm:$0xf] }
  0x7a   :  { %928 = vmatmul.bf16.vlgmr.msrb.gmra.mxu0 %v5626_v46  ;;  %1130 = vmatpush.bf16.msra.mxu3 %v3958_v54  ;;  %v5058_v54 = vld [vmem:[#allocation10 + $0x38] sm:$0xf0] }
  0x7b   :  { %957 = vmatmul.bf16.vlgmr.msrb.gmra.mxu1 %v5628_v51  ;;  %1345 = vmatpush.bf16.msrb.mxu0 %v4130_v58  ;;  %v4070_v58 = vor.u32 %v5058_v54, %v4069_v53  ;;  %v5056_v54 = vld [vmem:[#allocation10 + $0x28] sm:$0xf0] }
  0x7c   :  { %986 = vmatmul.bf16.vlgmr.msrb.gmra.mxu2 %v5630_v52  ;;  %1358 = vmatpush.bf16.msrb.mxu1 %v4134_v0 }
  0x7d   :  { %1015 = vmatmul.bf16.vlgmr.msrb.gmra.mxu3 %v5632_v55  ;;  %1371 = vmatpush.bf16.msrb.mxu2 %v4138_v15  ;;  %v4071_v15 = vld [vmem:[#allocation10 + $0x3c] sm:$0xf0] }
  0x7e   :  { %v4074_v16 = vor.u32 %v5057_v13, %v4071_v15  ;;  %v5749_v13 = vperm.slane %v5690_v11, 1 }
  0x7f   :  { %1346 = vmatpush.bf16.msrb.mxu0 %v4118_v62 }
  0x80   :  { %1359 = vmatpush.bf16.msrb.mxu1 %v4122_v10  ;;  %v4057_v10 = vld [vmem:[#allocation10 + $0x18] sm:$0xf] }
  0x81   :  { %1372 = vmatpush.bf16.msrb.mxu2 %v4126_v28  ;;  %v4058_v14 = vor.u32 %v5055_v12, %v4057_v10 }
  0x83   :  { %1347 = vmatpush.bf16.msrb.mxu0 %v4106_v8  ;;  %v5065_v8 = vld [vmem:[#allocation10 + $0x70] sm:$0xf0] }
  0x84   :  { %1360 = vmatpush.bf16.msrb.mxu1 %v4110_v21  ;;  %v4102_v9 = vor.u32 %v5065_v8, %v4101_v7  ;;  %v5054_v21 = vld [vmem:[#allocation10 + $0x1c] sm:$0xf] }
  0x87   :  { %1348 = vmatpush.bf16.msrb.mxu0 %v4094_v20 }
  0x88   :  { %1361 = vmatpush.bf16.msrb.mxu1 %v4098_v35 }
  0x8a   :  { %933 = vmatmul.bf16.gmra.mxu0 %v5638_v39 }
  0x8b   :  { %962 = vmatmul.bf16.gmra.mxu1 %v5640_v44  ;;  %1349 = vmatpush.bf16.msrb.mxu0 %v4082_v32  ;;  %v4050_v32 = vor.u32 %v5051_v29, %v4047_v30 }
  0x8c   :  { %991 = vmatmul.bf16.gmra.mxu2 %v5642_v45  ;;  %1362 = vmatpush.bf16.msrb.mxu1 %v4086_v59 }
  0x8d   :  { %1020 = vmatmul.bf16.gmra.mxu3 %v5644_v47 }
  0x8f   :  { %1350 = vmatpush.bf16.msrb.mxu0 %v4070_v58  ;;  %v5053_v58 = vld [vmem:[#allocation10 + $0x10] sm:$0xf0] }
  0x90   :  { %1363 = vmatpush.bf16.msrb.mxu1 %v4074_v16  ;;  %v5566_v16 = vmov 0.0|0.0  }
  0x93   :  { %1351 = vmatpush.bf16.msrb.mxu0 %v4058_v14 }
  0x9a   :  { %938 = vmatmul.bf16.gmra.mxu0 %v5650_v33 }
  0x9b   :  { %967 = vmatmul.bf16.gmra.mxu1 %v5652_v36 }
  0x9c   :  { %996 = vmatmul.bf16.gmra.mxu2 %v5654_v37 }
  0x9d   :  { %1025 = vmatmul.bf16.gmra.mxu3 %v5656_v38 }
  0xaa   :  { %943 = vmatmul.bf16.gmra.mxu0 %v5662_v1 }
  0xab   :  { %972 = vmatmul.bf16.gmra.mxu1 %v5664_v2 }
  0xac   :  { %1001 = vmatmul.bf16.gmra.mxu2 %v5666_v3 }
  0xad   :  { %1030 = vmatmul.bf16.gmra.mxu3 %v5668_v4 }
  0xb7   :  { %v813_v22 = vpop.f32.mrf.mxu0 }
  0xb8   :  { %v814_v23 = vadd.f32 %v813_v22, %v5693_v19  ;;  %v842_v24 = vpop.f32.mrf.mxu1  ;;  %v4059_v22 = vld [vmem:[#allocation10 + $0x24] sm:$0xf0] }
  0xba   :  { %v843_v25 = vadd.f32 %v842_v24, %v814_v23  ;;  %1044 = vmatmul.bf16.vlgmr.msra.gmra.mxu0 %v5626_v46  ;;  %v4089_v23 = vld [vmem:[#allocation10 + $0x50] sm:$0xf]  ;;  %v5062_v24 = vld [vmem:[#allocation10 + $0x58] sm:$0xf0] }
  0xbb   :  { %1073 = vmatmul.bf16.vlgmr.msra.gmra.mxu1 %v5628_v51  ;;  %v4090_v26 = vor.u32 %v5062_v24, %v4089_v23 }
  0xbc   :  { %1102 = vmatmul.bf16.vlgmr.msra.gmra.mxu2 %v5630_v52 }
  0xbd   :  { %1131 = vmatmul.bf16.vlgmr.msra.gmra.mxu3 %v5632_v55  ;;  %v4114_v55 = vor.u32 %v5068_v50, %v4113_v49 }
  0xbf   :  { %v871_v40 = vpop.f32.mrf.mxu2  ;;  %v815_v46 = vpop.f32.mrf.mxu0  ;;  %1373 = vmatpush.bf16.msrb.mxu2 %v4114_v55  ;;  %v4065_v55 = vld [vmem:[#allocation10 + $0x20] sm:$0xf] }
  0xc0   :  { %v872_v41 = vadd.f32 %v871_v40, %v843_v25  ;;  %v900_v42 = vpop.f32.mrf.mxu3  ;;  %v816_v51 = vadd.f32 %v815_v46, %v5693_v19  ;;  %v844_v43 = vpop.f32.mrf.mxu1  ;;  %v4062_v25 = vor.u32 %v5054_v21, %v4059_v22 }
  0xc2   :  { %v5701_v52 = vadd.f32 %v900_v42, %v872_v41  ;;  %v845_v48 = vadd.f32 %v844_v43, %v816_v51  ;;  %1364 = vmatpush.bf16.msrb.mxu1 %v4062_v25  ;;  %v4077_v42 = vld [vmem:[#allocation10 + $0x38] sm:$0xf]  ;;  %v5059_v51 = vld [vmem:[#allocation10 + $0x40] sm:$0xf0] }
  0xc3   :  { %1374 = vmatpush.bf16.msrb.mxu2 %v4102_v9  ;;  %v4078_v43 = vor.u32 %v5059_v51, %v4077_v42 }
  0xc6   :  { %1365 = vmatpush.bf16.msrb.mxu1 %v4050_v32 }
  0xc7   :  { %v873_v60 = vpop.f32.mrf.mxu2  ;;  %v818_v62 = vpop.f32.mrf.mxu0  ;;  %1375 = vmatpush.bf16.msrb.mxu2 %v4090_v26 }
  0xc8   :  { %v5703_v61 = vadd.f32 %v873_v60, %v845_v48  ;;  %v5705_v63 = vpop.f32.mrf.mxu3  ;;  %v819_v0 = vadd.f32 %v818_v62, %v5693_v19  ;;  %v847_v5 = vpop.f32.mrf.mxu1 }
  0xca   :  { %v848_v6 = vadd.f32 %v847_v5, %v819_v0  ;;  %1049 = vmatmul.bf16.gmra.mxu0 %v5638_v39 }
  0xcb   :  { %1078 = vmatmul.bf16.gmra.mxu1 %v5640_v44  ;;  %1376 = vmatpush.bf16.msrb.mxu2 %v4078_v43 }
  0xcc   :  { %1107 = vmatmul.bf16.gmra.mxu2 %v5642_v45 }
  0xcd   :  { %1136 = vmatmul.bf16.gmra.mxu3 %v5644_v47  ;;  %v4045_v47 = vld [vmem:[#allocation10] sm:$0xf] }
  0xce   :  { %v4046_v28 = vor.u32 %v5052_v27, %v4045_v47 }
  0xcf   :  { %v876_v17 = vpop.f32.mrf.mxu2  ;;  %v5712_v39 = vpop.f32.mrf.mxu0 }
  0xd0   :  { %v877_v18 = vadd.f32 %v876_v17, %v848_v6  ;;  %v905_v20 = vpop.f32.mrf.mxu3  ;;  %v5714_v44 = vpop.f32.mrf.mxu1  ;;  %1352 = vmatpush.bf16.msrb.mxu0 %v4046_v28 }
  0xd2   :  { %v5716_v45 = vadd.f32 %v905_v20, %v877_v18 }
  0xd7   :  { %v5718_v31 = vpop.f32.mrf.mxu2  ;;  %v823_v34 = vpop.f32.mrf.mxu0 }
  0xd8   :  { %v5720_v35 = vpop.f32.mrf.mxu3  ;;  %v824_v40 = vadd.f32 %v823_v34, %v5693_v19  ;;  %v852_v41 = vpop.f32.mrf.mxu1 }
  0xda   :  { %v853_v46 = vadd.f32 %v852_v41, %v824_v40  ;;  %1054 = vmatmul.bf16.gmra.mxu0 %v5650_v33  ;;  %v4066_v33 = vor.u32 %v5056_v54, %v4065_v55 }
  0xdb   :  { %1083 = vmatmul.bf16.gmra.mxu1 %v5652_v36  ;;  %v4053_v36 = vld [vmem:[#allocation10 + $0x8] sm:$0xf] }
  0xdc   :  { %1112 = vmatmul.bf16.gmra.mxu2 %v5654_v37  ;;  %v4054_v37 = vor.u32 %v5053_v58, %v4053_v36 }
  0xdd   :  { %1141 = vmatmul.bf16.gmra.mxu3 %v5656_v38  ;;  %1377 = vmatpush.bf16.msrb.mxu2 %v4066_v33 }
  0xdf   :  { %v881_v48 = vpop.f32.mrf.mxu2  ;;  %v5727_v50 = vpop.f32.mrf.mxu0 }
  0xe0   :  { %v882_v49 = vadd.f32 %v881_v48, %v853_v46  ;;  %v910_v53 = vpop.f32.mrf.mxu3  ;;  %v5729_v56 = vpop.f32.mrf.mxu1 }
  0xe1   :  { %6112 = vst [vmem:[#allocation19_spill] sm:$0xff] %v5729_v56  ;;  %1378 = vmatpush.bf16.msrb.mxu2 %v4054_v37 }
  0xe2   :  { %v5731_v57 = vadd.f32 %v910_v53, %v882_v49 }
  0xe7   :  { %v5733_v59 = vpop.f32.mrf.mxu2  ;;  %v828_v38 = vpop.f32.mrf.mxu0 }
  0xe8   :  { %6113 = vst [vmem:[#allocation20_spill] sm:$0xff] %v5733_v59  ;;  %v5735_v60 = vpop.f32.mrf.mxu3  ;;  %v829_v62 = vadd.f32 %v828_v38, %v5693_v19  ;;  %v857_v0 = vpop.f32.mrf.mxu1 }
  0xe9   :  { %6114 = vst [vmem:[#allocation21_spill] sm:$0xff] %v5735_v60 }
  0xea   :  { %v858_v5 = vadd.f32 %v857_v0, %v829_v62  ;;  %1059 = vmatmul.bf16.gmra.mxu0 %v5662_v1 }
  0xeb   :  { %1088 = vmatmul.bf16.gmra.mxu1 %v5664_v2 }
  0xec   :  { %1117 = vmatmul.bf16.gmra.mxu2 %v5666_v3 }
  0xed   :  { %1146 = vmatmul.bf16.gmra.mxu3 %v5668_v4 }
  0xef   :  { %v886_v6 = vpop.f32.mrf.mxu2  ;;  %v5742_v8 = vpop.f32.mrf.mxu0 }
  0xf0   :  { %v887_v7 = vadd.f32 %v886_v6, %v858_v5  ;;  %6115 = vst [vmem:[#allocation22_spill] sm:$0xff] %v5742_v8  ;;  %v915_v9 = vpop.f32.mrf.mxu3  ;;  %v5744_v10 = vpop.f32.mrf.mxu1 }
  0xf1   :  { %6116 = vst [vmem:[#allocation23_spill] sm:$0xff] %v5744_v10 }
  0xf2   :  { %v5746_v12 = vadd.f32 %v915_v9, %v887_v7 }
  0xf4   :  { %6117 = vst [vmem:[#allocation24_spill] sm:$0xff] %v5746_v12  ;;  %v5095_v12 = vld [vmem:[#allocation10 + $0xa0] sm:$0xf0] }
  0xf7   :  { %v5751_v14 = vpop.f32.mrf.mxu2  ;;  %v929_v2 = vpop.f32.mrf.mxu0 }
  0xf8   :  { %6118 = vst [vmem:[#allocation25_spill] sm:$0xff] %v5751_v14  ;;  %v5753_v1 = vpop.f32.mrf.mxu3  ;;  %v930_v3 = vadd.f32 %v929_v2, %v5749_v13  ;;  %v958_v4 = vpop.f32.mrf.mxu1 }
  0xf9   :  { %6119 = vst [vmem:[#allocation26_spill] sm:$0xff] %v5753_v1  ;;  %v4229_v1 = vld [vmem:[#allocation10 + $0xb4] sm:$0xf0] }
  0xfa   :  { %v959_v15 = vadd.f32 %v958_v4, %v930_v3  ;;  %1353 = vmatmul.bf16.vlgmr.msrb.gmra.mxu0 %v5566_v16 }
  0xfb   :  { %1366 = vmatmul.bf16.vlgmr.msrb.gmra.mxu1 %v5566_v16 }
  0xfc   :  { %1379 = vmatmul.bf16.vlgmr.msrb.gmra.mxu2 %v5566_v16 }
  0xff   :  { %v987_v17 = vpop.f32.mrf.mxu2  ;;  %v5758_v20 = vpop.f32.mrf.mxu0 }
 0x100   :  { %v5756_v18 = vadd.f32 %v987_v17, %v959_v15  ;;  %v5760_v21 = vpop.f32.mrf.mxu3  ;;  %v5762_v22 = vpop.f32.mrf.mxu1  ;;  %v5798_v15 = vperm.slane %v5690_v11, 2 }
 0x107   :  { %v5764_v23 = vpop.f32.mrf.mxu2  ;;  %v934_v24 = vpop.f32.mrf.mxu0 }
 0x108   :  { %v5766_v47 = vpop.f32.mrf.mxu3  ;;  %v935_v25 = vadd.f32 %v934_v24, %v5749_v13  ;;  %v963_v26 = vpop.f32.mrf.mxu1 }
 0x10a   :  { %v964_v27 = vadd.f32 %v963_v26, %v935_v25 }
 0x10f   :  { %v992_v28 = vpop.f32.mrf.mxu2  ;;  %v5769_v30 = vpop.f32.mrf.mxu0 }
 0x110   :  { %v993_v29 = vadd.f32 %v992_v28, %v964_v27  ;;  %v1021_v32 = vpop.f32.mrf.mxu3  ;;  %v5771_v34 = vpop.f32.mrf.mxu1 }
 0x112   :  { %v5773_v40 = vadd.f32 %v1021_v32, %v993_v29 }
 0x117   :  { %v5775_v41 = vpop.f32.mrf.mxu2  ;;  %v939_v46 = vpop.f32.mrf.mxu0 }
 0x118   :  { %v5777_v42 = vpop.f32.mrf.mxu3  ;;  %v940_v51 = vadd.f32 %v939_v46, %v5749_v13  ;;  %v968_v43 = vpop.f32.mrf.mxu1 }
 0x11a   :  { %v969_v48 = vadd.f32 %v968_v43, %v940_v51 }
 0x11f   :  { %v997_v49 = vpop.f32.mrf.mxu2  ;;  %v5780_v55 = vpop.f32.mrf.mxu0 }
 0x120   :  { %v998_v53 = vadd.f32 %v997_v49, %v969_v48  ;;  %v1026_v54 = vpop.f32.mrf.mxu3  ;;  %v5782_v33 = vpop.f32.mrf.mxu1 }
 0x122   :  { %v5784_v36 = vadd.f32 %v1026_v54, %v998_v53 }
 0x127   :  { %v5786_v58 = vpop.f32.mrf.mxu2  ;;  %v944_v37 = vpop.f32.mrf.mxu0 }
 0x128   :  { %v5788_v38 = vpop.f32.mrf.mxu3  ;;  %v945_v62 = vadd.f32 %v944_v37, %v5749_v13  ;;  %v973_v0 = vpop.f32.mrf.mxu1  ;;  %v4227_v37 = vld [vmem:[#allocation10 + $0xa8] sm:$0xf] }
 0x129   :  { %6120 = vst [vmem:[#allocation27_spill] sm:$0xff] %v5788_v38  ;;  %v5089_v38 = vld [vmem:[#allocation10 + $0x70] sm:$0xf0] }
 0x12a   :  { %v974_v5 = vadd.f32 %v973_v0, %v945_v62  ;;  %v5097_v62 = vld [vmem:[#allocation10 + $0xb0] sm:$0xf0] }
 0x12b   :  { %v4228_v0 = vor.u32 %v5097_v62, %v4227_v37 }
 0x12d   :  { %1603 = vmatpush.bf16.msrb.mxu3 %v4228_v0 }
 0x12f   :  { %v1002_v6 = vpop.f32.mrf.mxu2  ;;  %v5791_v9 = vpop.f32.mrf.mxu0 }
 0x130   :  { %v1003_v7 = vadd.f32 %v1002_v6, %v974_v5  ;;  %6121 = vst [vmem:[#allocation28_spill] sm:$0xff] %v5791_v9  ;;  %v1031_v2 = vpop.f32.mrf.mxu3  ;;  %v5793_v3 = vpop.f32.mrf.mxu1  ;;  %v4235_v9 = vld [vmem:[#allocation10 + $0xb0] sm:$0xf] }
 0x131   :  { %6122 = vst [vmem:[#allocation29_spill] sm:$0xff] %v5793_v3 }
 0x132   :  { %v5795_v4 = vadd.f32 %v1031_v2, %v1003_v7 }
 0x134   :  { %6123 = vst [vmem:[#allocation30_spill] sm:$0xff] %v5795_v4  ;;  %v5098_v4 = vld [vmem:[#allocation10 + $0xb8] sm:$0xf0] }
 0x137   :  { %v5800_v16 = vpop.f32.mrf.mxu2  ;;  %v1045_v24 = vpop.f32.mrf.mxu0 }
 0x138   :  { %6124 = vst [vmem:[#allocation31_spill] sm:$0xff] %v5800_v16  ;;  %v5802_v17 = vpop.f32.mrf.mxu3  ;;  %v1046_v25 = vadd.f32 %v1045_v24, %v5798_v15  ;;  %v1074_v26 = vpop.f32.mrf.mxu1 }
 0x139   :  { %6125 = vst [vmem:[#allocation32_spill] sm:$0xff] %v5802_v17 }
 0x13a   :  { %v1075_v27 = vadd.f32 %v1074_v26, %v1046_v25  ;;  %v4215_v26 = vld [vmem:[#allocation10 + $0x90] sm:$0xf] }
 0x13f   :  { %v1103_v28 = vpop.f32.mrf.mxu2  ;;  %v5807_v32 = vpop.f32.mrf.mxu0 }
 0x140   :  { %v5805_v29 = vadd.f32 %v1103_v28, %v1075_v27  ;;  %v5809_v46 = vpop.f32.mrf.mxu3  ;;  %v5811_v51 = vpop.f32.mrf.mxu1  ;;  %v5094_v27 = vld [vmem:[#allocation10 + $0x98] sm:$0xf0] }
 0x141   :  { %v4216_v28 = vor.u32 %v5094_v27, %v4215_v26 }
 0x143   :  { %1604 = vmatpush.bf16.msrb.mxu3 %v4216_v28  ;;  %v5096_v28 = vld [vmem:[#allocation10 + $0xac] sm:$0xf] }
 0x147   :  { %v5813_v11 = vpop.f32.mrf.mxu2  ;;  %v1050_v43 = vpop.f32.mrf.mxu0 }
 0x148   :  { %v5815_v48 = vpop.f32.mrf.mxu3  ;;  %v1051_v49 = vadd.f32 %v1050_v43, %v5798_v15  ;;  %v1079_v53 = vpop.f32.mrf.mxu1 }
 0x14a   :  { %v1080_v54 = vadd.f32 %v1079_v53, %v1051_v49 }
 0x14f   :  { %v1108_v5 = vpop.f32.mrf.mxu2  ;;  %v5818_v7 = vpop.f32.mrf.mxu0 }
 0x150   :  { %v1109_v6 = vadd.f32 %v1108_v5, %v1080_v54  ;;  %v1137_v2 = vpop.f32.mrf.mxu3  ;;  %v5820_v24 = vpop.f32.mrf.mxu1 }
 0x152   :  { %v5822_v25 = vadd.f32 %v1137_v2, %v1109_v6 }
 0x157   :  { %v5824_v43 = vpop.f32.mrf.mxu2  ;;  %v1055_v49 = vpop.f32.mrf.mxu0 }
 0x158   :  { %v5826_v53 = vpop.f32.mrf.mxu3  ;;  %v1056_v37 = vadd.f32 %v1055_v49, %v5798_v15  ;;  %v1084_v62 = vpop.f32.mrf.mxu1  ;;  %v4232_v49 = vor.u32 %v5096_v28, %v4229_v1  ;;  %v5091_v1 = vld [vmem:[#allocation10 + $0x80] sm:$0xf0]  ;;  %v5090_v28 = vld [vmem:[#allocation10 + $0x7c] sm:$0xf] }
 0x15a   :  { %v1085_v54 = vadd.f32 %v1084_v62, %v1056_v37  ;;  %1616 = vmatpush.bf16.msra.mxu0 %v4232_v49  ;;  %v5092_v49 = vld [vmem:[#allocation10 + $0x88] sm:$0xf0] }
 0x15f   :  { %v1113_v0 = vpop.f32.mrf.mxu2  ;;  %v1057_v17 = vpop.f32.mrf.mxu0 }
 0x160   :  { %v1114_v5 = vadd.f32 %v1113_v0, %v1085_v54  ;;  %v1142_v16 = vpop.f32.mrf.mxu3  ;;  %v1058_v6 = vadd.f32 %v1057_v17, %v5798_v15  ;;  %v1086_v2 = vpop.f32.mrf.mxu1  ;;  %v4236_v54 = vor.u32 %v5098_v4, %v4235_v9  ;;  %v4211_v4 = vld [vmem:[#allocation10 + $0x80] sm:$0xf] }
 0x162   :  { %v5830_v3 = vadd.f32 %v1142_v16, %v1114_v5  ;;  %v1087_v26 = vadd.f32 %v1086_v2, %v1058_v6  ;;  %1629 = vmatpush.bf16.msra.mxu1 %v4236_v54  ;;  %v5093_v16 = vld [vmem:[#allocation10 + $0x94] sm:$0xf]  ;;  %v4217_v5 = vld [vmem:[#allocation10 + $0x9c] sm:$0xf0]  ;;  %v4223_v6 = vld [vmem:[#allocation10 + $0x98] sm:$0xf] }
 0x163   :  { %v4220_v2 = vor.u32 %v5093_v16, %v4217_v5  ;;  %v4224_v60 = vor.u32 %v5095_v12, %v4223_v6  ;;  %v4212_v16 = vor.u32 %v5092_v49, %v4211_v4  ;;  %v4191_v6 = vld [vmem:[#allocation10 + $0x60] sm:$0xf]  ;;  %v1017_v4 = vadd.f32 %v5760_v21, %v5756_v18  ;;  %v5081_v18 = vld [vmem:[#allocation10 + $0x34] sm:$0xf] }
 0x164   :  { %v4169_v21 = vld [vmem:[#allocation10 + $0x3c] sm:$0xf0] }
 0x165   :  { %1617 = vmatpush.bf16.msra.mxu0 %v4220_v2  ;;  %v5088_v2 = vld [vmem:[#allocation10 + $0x68] sm:$0xf0] }
 0x166   :  { %1630 = vmatpush.bf16.msra.mxu1 %v4224_v60  ;;  %v5087_v60 = vld [vmem:[#allocation10 + $0x64] sm:$0xf] }
 0x167   :  { %v1115_v27 = vpop.f32.mrf.mxu2  ;;  %v1060_v10 = vpop.f32.mrf.mxu0 }
 0x168   :  { %v1116_v14 = vadd.f32 %v1115_v27, %v1087_v26  ;;  %v1144_v8 = vpop.f32.mrf.mxu3  ;;  %v1061_v37 = vadd.f32 %v1060_v10, %v5798_v15  ;;  %v1089_v62 = vpop.f32.mrf.mxu1  ;;  %v4203_v27 = vld [vmem:[#allocation10 + $0x78] sm:$0xf] }
 0x16a   :  { %v5833_v0 = vadd.f32 %v1144_v8, %v1116_v14  ;;  %v1090_v17 = vadd.f32 %v1089_v62, %v1061_v37  ;;  %v4204_v8 = vor.u32 %v5091_v1, %v4203_v27  ;;  %v4205_v14 = vld [vmem:[#allocation10 + $0x84] sm:$0xf0]  ;;  %1631 = vmatpush.bf16.msra.mxu1 %v4212_v16  ;;  %v5085_v27 = vld [vmem:[#allocation10 + $0x50] sm:$0xf0]  ;;  %v4193_v1 = vld [vmem:[#allocation10 + $0x6c] sm:$0xf0] }
 0x16b   :  { %v4208_v54 = vor.u32 %v5090_v28, %v4205_v14  ;;  %v4196_v56 = vor.u32 %v5087_v60, %v4193_v1  ;;  %v5083_v1 = vld [vmem:[#allocation10 + $0x40] sm:$0xf0] }
 0x16c   :  { %6126 = vst [vmem:[#allocation33_spill] sm:$0xff] %v5833_v0  ;;  %1605 = vmatpush.bf16.msrb.mxu3 %v4204_v8  ;;  %v4199_v0 = vld [vmem:[#allocation10 + $0x68] sm:$0xf]  ;;  %v4187_v8 = vld [vmem:[#allocation10 + $0x50] sm:$0xf] }
 0x16d   :  { %1618 = vmatpush.bf16.msra.mxu0 %v4208_v54  ;;  %v4200_v28 = vor.u32 %v5089_v38, %v4199_v0  ;;  %v5086_v54 = vld [vmem:[#allocation10 + $0x58] sm:$0xf0]  ;;  %v4167_v0 = vld [vmem:[#allocation10 + $0x30] sm:$0xf] }
 0x16f   :  { %v1118_v26 = vpop.f32.mrf.mxu2  ;;  %v1062_v59 = vpop.f32.mrf.mxu0  ;;  %1632 = vmatpush.bf16.msra.mxu1 %v4200_v28 }
 0x170   :  { %v1119_v10 = vadd.f32 %v1118_v26, %v1090_v17  ;;  %v1147_v9 = vpop.f32.mrf.mxu3  ;;  %v1063_v37 = vadd.f32 %v1062_v59, %v5798_v15  ;;  %v1091_v62 = vpop.f32.mrf.mxu1  ;;  %v4192_v17 = vor.u32 %v5088_v2, %v4191_v6  ;;  %v4179_v26 = vld [vmem:[#allocation10 + $0x48] sm:$0xf]  ;;  %v4188_v2 = vor.u32 %v5086_v54, %v4187_v8 }
 0x171   :  { %v4180_v59 = vor.u32 %v5085_v27, %v4179_v26  ;;  %1619 = vmatpush.bf16.msra.mxu0 %v4196_v56  ;;  %v4172_v56 = vor.u32 %v5081_v18, %v4169_v21  ;;  %v4145_v18 = vld [vmem:[#allocation10 + $0xc] sm:$0xf0] }
 0x172   :  { %v5836_v5 = vadd.f32 %v1147_v9, %v1119_v10  ;;  %v1092_v12 = vadd.f32 %v1091_v62, %v1063_v37  ;;  %1606 = vmatpush.bf16.msrb.mxu3 %v4192_v17  ;;  %v5084_v10 = vld [vmem:[#allocation10 + $0x4c] sm:$0xf]  ;;  %v4181_v9 = vld [vmem:[#allocation10 + $0x54] sm:$0xf0]  ;;  %v5082_v17 = vld [vmem:[#allocation10 + $0x38] sm:$0xf0] }
 0x173   :  { %v4184_v62 = vor.u32 %v5084_v10, %v4181_v9  ;;  %v4168_v27 = vor.u32 %v5082_v17, %v4167_v0  ;;  %1633 = vmatpush.bf16.msra.mxu1 %v4188_v2  ;;  %v5079_v10 = vld [vmem:[#allocation10 + $0x20] sm:$0xf0] }
 0x174   :  { %v5075_v0 = vld [vmem:[#allocation10 + $0x4] sm:$0xf] }
 0x175   :  { %1620 = vmatpush.bf16.msra.mxu0 %v4184_v62  ;;  %v5080_v62 = vld [vmem:[#allocation10 + $0x28] sm:$0xf0] }
 0x176   :  { %1607 = vmatpush.bf16.msrb.mxu3 %v4180_v59  ;;  %v5078_v59 = vld [vmem:[#allocation10 + $0x1c] sm:$0xf] }
 0x177   :  { %v1120_v14 = vpop.f32.mrf.mxu2  ;;  %v1354_v37 = vpop.f32.mrf.mxu0 }
 0x178   :  { %v5840_v49 = vadd.f32 %v1120_v14, %v1092_v12  ;;  %v1384_v16 = vadd.f32 %v1354_v37, %v5701_v52  ;;  %v1367_v6 = vpop.f32.mrf.mxu1  ;;  %v4175_v12 = vld [vmem:[#allocation10 + $0x38] sm:$0xf]  ;;  %v4163_v37 = vld [vmem:[#allocation10 + $0x20] sm:$0xf] }
 0x179   :  { %v1404_v60 = vadd.f32 %v1367_v6, %v1017_v4  ;;  %v4176_v52 = vor.u32 %v5083_v1, %v4175_v12  ;;  %v4155_v14 = vld [vmem:[#allocation10 + $0x18] sm:$0xf]  ;;  %1621 = vmatpush.bf16.msra.mxu0 %v4172_v56  ;;  %v4157_v4 = vld [vmem:[#allocation10 + $0x24] sm:$0xf0]  ;;  %v4164_v6 = vor.u32 %v5080_v62, %v4163_v37  ;;  %v4148_v56 = vor.u32 %v5075_v0, %v4145_v18  ;;  %v5077_v1 = vld [vmem:[#allocation10 + $0x10] sm:$0xf0] }
 0x17a   :  { %v4139_v38 = vmul.f32 -1.442695, %v1384_v16  ;;  %1608 = vmatpush.bf16.msrb.mxu3 %v4168_v27  ;;  %v4156_v8 = vor.u32 %v5079_v10, %v4155_v14  ;;  %v4160_v16 = vor.u32 %v5078_v59, %v4157_v4  ;;  %v4151_v12 = vld [vmem:[#allocation10 + $0x8] sm:$0xf]  ;;  %v5846_v37 = vld [vmem:[%s6109_s5] ss:$0 sm:$0xff] }
 0x17b   :  { %v4140_v26 = vmul.f32 -1.442695, %v1404_v60  ;;  %1634 = vmatpush.bf16.msra.mxu1 %v4176_v52  ;;  %v4143_v60 = vld [vmem:[#allocation10] sm:$0xf]  ;;  %v4152_v14 = vor.u32 %v5077_v1, %v4151_v12 }
 0x17c   :  { %5289 = vpow2.f32 %v4139_v38  ;;  %v5076_v38 = vld [vmem:[#allocation10 + $0x8] sm:$0xf0] }
 0x17d   :  { %5291 = vpow2.f32 %v4140_v26  ;;  %v4144_v27 = vor.u32 %v5076_v38, %v4143_v60  ;;  %1622 = vmatpush.bf16.msra.mxu0 %v4160_v16 }
 0x17e   :  { %1609 = vmatpush.bf16.msrb.mxu3 %v4156_v8 }
 0x17f   :  { %v1380_v28 = vpop.f32.mrf.mxu2  ;;  %v1356_v9 = vpop.f32.mrf.mxu0  ;;  %1635 = vmatpush.bf16.msra.mxu1 %v4164_v6 }
 0x180   :  { %v1369_v54 = vpop.f32.mrf.mxu1  ;;  %v1427_v38 = vadd.f32 %v5846_v37, %v1380_v28 }
 0x181   :  { %1623 = vmatpush.bf16.msra.mxu0 %v4148_v56  ;;  %v1133_v56 = vadd.f32 %v5809_v46, %v5805_v29  ;;  %v932_v46 = vadd.f32 %v5758_v20, %v5749_v13  ;;  %v4321_v20 = vld [vmem:[#allocation10 + $0x98] sm:$0xf] }
 0x182   :  { %v5290_v2 = vpop.eup %5289  ;;  %1610 = vmatpush.bf16.msrb.mxu3 %v4144_v27 }
 0x183   :  { %v5292_v17 = vpop.eup %5291  ;;  %v1388_v26 = vadd.f32 1.0, %v5290_v2  ;;  %1636 = vmatpush.bf16.msra.mxu1 %v4152_v14 }
 0x184   :  { %v1408_v21 = vadd.f32 1.0, %v5292_v17 }
 0x185   :  { %5293 = vrcp.f32 %v1388_v26  ;;  %v1400_v54 = vand.u32 2147483648, %v1388_v26  ;;  %v1398_v6 = vand.u32 2147483647, %v1388_v26  ;;  %vm1394_vm1 = vweird.f32 %v1388_v26 }
 0x186   :  { %5295 = vrcp.f32 %v1408_v21  ;;  %v1420_v12 = vand.u32 2147483648, %v1408_v21  ;;  %vm1414_vm5 = vweird.f32 %v1408_v21 }
 0x187   :  { %v1382_v52 = vpop.f32.mrf.mxu2  ;;  %v1401_v0 = vor.u32 1.1754944e-38, %v1400_v54  ;;  %vm1399_vm3 = vcmp.eq.f32.partialorder %v1398_v6, 8.507059e+37 }
 0x188   :  { %v1418_v52 = vand.u32 2147483647, %v1408_v21 }
 0x18a   :  { %vm1419_vm7 = vcmp.eq.f32.partialorder %v1418_v52, 8.507059e+37  ;;  %v4315_v52 = vld [vmem:[#allocation10 + $0x9c] sm:$0xf0] }
 0x18b   :  { %v5294_v10 = vpop.eup %5293 }
 0x18c   :  { %v5296_v59 = vpop.eup %5295  ;;  %v1390_v9 = vmul.f32 %v5294_v10, %v1388_v26  ;;  %vm1395_vm0 = vweird.f32 %v5294_v10  ;;  %v1421_v26 = vor.u32 1.1754944e-38, %v1420_v12  ;;  %v5117_v12 = vld [vmem:[#allocation10 + $0x94] sm:$0xf] }
 0x18d   :  { %v1410_v8 = vmul.f32 %v5296_v59, %v1408_v21  ;;  %vm1396_vm2 = vmor %vm1394_vm1, %vm1395_vm0  ;;  %vm1415_vm4 = vweird.f32 %v5296_v59  ;;  %v4325_v21 = vld [vmem:[#allocation10 + $0xa8] sm:$0xf] }
 0x18e   :  { %v1391_v4 = vsub.f32 1.0, %v1390_v9  ;;  %vm1416_vm6 = vmor %vm1414_vm5, %vm1415_vm4 }
 0x18f   :  { %v1411_v62 = vsub.f32 1.0, %v1410_v8 }
 0x190   :  { %v1392_v16 = vmul.f32 %v5294_v10, %v1391_v4 }
 0x191   :  { %v1412_v2 = vmul.f32 %v5296_v59, %v1411_v62 }
 0x192   :  { %v1393_v60 = vadd.f32 %v5294_v10, %v1392_v16  ;;  %v5120_v16 = vld [vmem:[#allocation10 + $0xac] sm:$0xf] }
 0x193   :  { %v1413_v27 = vadd.f32 %v5296_v59, %v1412_v2  ;;  %v4327_v2 = vld [vmem:[#allocation10 + $0xb4] sm:$0xf0] }
 0x194   :  { %v1397_v17 = vsel %vm1396_vm2, %v5294_v10, %v1393_v60  ;;  %v4333_v60 = vld [vmem:[#allocation10 + $0xb0] sm:$0xf] }
 0x195   :  { %v1402_v18 = vsel %vm1399_vm3, %v1401_v0, %v1397_v17  ;;  %v1417_v9 = vsel %vm1416_vm6, %v5296_v59, %v1413_v27  ;;  %v5121_v59 = vld [vmem:[#allocation10 + $0xb0] sm:$0xf0]  ;;  %v4330_v0 = vor.u32 %v5120_v16, %v4327_v2  ;;  %v961_v27 = vadd.f32 %v5762_v22, %v932_v46  ;;  %v5859_v22 = vpop.f32.mrf.mxu3  ;;  %v4309_v46 = vld [vmem:[#allocation10 + $0x80] sm:$0xf] }
 0x196   :  { %v1428_v1 = vmul.f32 %v1427_v38, %v1402_v18  ;;  %v1422_v28 = vsel %vm1419_vm7, %v1421_v26, %v1417_v9  ;;  %v4326_v6 = vor.u32 %v5121_v59, %v4325_v21  ;;  %v5122_v38 = vld [vmem:[#allocation10 + $0xb8] sm:$0xf0]  ;;  %v4313_v18 = vld [vmem:[#allocation10 + $0x90] sm:$0xf]  ;;  %v4318_v26 = vor.u32 %v5117_v12, %v4315_v52  ;;  %v5116_v21 = vld [vmem:[#allocation10 + $0x88] sm:$0xf0] }
 0x197   :  { %v1431_v8 = vsub.f32 1.0, %v1422_v28  ;;  %v1433_v62 = vmul.f32 0.0, %v1422_v28  ;;  %v4334_v17 = vor.u32 %v5122_v38, %v4333_v60  ;;  %1872 = vmatpush.bf16.msra.mxu3 %v4330_v0  ;;  %v990_v9 = vadd.f32 %v5764_v23, %v961_v27  ;;  %v4289_v38 = vld [vmem:[#allocation10 + $0x60] sm:$0xf]  ;;  %v5112_v0 = vld [vmem:[#allocation10 + $0x68] sm:$0xf0] }
 0x198   :  { %v1429_v14 = vadd.f32 %v1428_v1, %v1133_v56  ;;  %1859 = vmatpush.bf16.msra.mxu2 %v4326_v6  ;;  %v5118_v56 = vld [vmem:[#allocation10 + $0x98] sm:$0xf0]  ;;  %v4310_v6 = vor.u32 %v5116_v21, %v4309_v46  ;;  %v4290_v27 = vor.u32 %v5112_v0, %v4289_v38  ;;  %v5113_v12 = vld [vmem:[#allocation10 + $0x70] sm:$0xf0]  ;;  %v4267_v38 = vld [vmem:[#allocation10 + $0x3c] sm:$0xf0] }
 0x199   :  { %1885 = vmatpush.bf16.msrb.mxu0 %v4334_v17  ;;  %v4314_v1 = vor.u32 %v5118_v56, %v4313_v18  ;;  %v1019_v59 = vadd.f32 %v5766_v47, %v990_v9  ;;  %v5111_v17 = vld [vmem:[#allocation10 + $0x64] sm:$0xf]  ;;  %v4291_v18 = vld [vmem:[#allocation10 + $0x6c] sm:$0xf0]  ;;  %v4297_v56 = vld [vmem:[#allocation10 + $0x68] sm:$0xf]  ;;  %v903_v47 = vadd.f32 %v5705_v63, %v5703_v61 }
 0x19a   :  { %5297 = vtanh.f32 %v1429_v14  ;;  %v5119_v14 = vld [vmem:[#allocation10 + $0xa0] sm:$0xf0]  ;;  %v4294_v52 = vor.u32 %v5111_v17, %v4291_v18  ;;  %v5109_v9 = vld [vmem:[#allocation10 + $0x50] sm:$0xf0]  ;;  %v4265_v61 = vld [vmem:[#allocation10 + $0x30] sm:$0xf] }
 0x19b   :  { %v4322_v28 = vor.u32 %v5119_v14, %v4321_v20  ;;  %1873 = vmatpush.bf16.msra.mxu3 %v4318_v26  ;;  %v4298_v20 = vor.u32 %v5113_v12, %v4297_v56  ;;  %v4277_v14 = vld [vmem:[#allocation10 + $0x48] sm:$0xf]  ;;  %v5108_v26 = vld [vmem:[#allocation10 + $0x4c] sm:$0xf]  ;;  %v5106_v63 = vld [vmem:[#allocation10 + $0x38] sm:$0xf0] }
 0x19c   :  { %1860 = vmatpush.bf16.msra.mxu2 %v4314_v1  ;;  %v4273_v0 = vld [vmem:[#allocation10 + $0x38] sm:$0xf]  ;;  %v5107_v18 = vld [vmem:[#allocation10 + $0x40] sm:$0xf0] }
 0x19d   :  { %1886 = vmatpush.bf16.msrb.mxu0 %v4322_v28  ;;  %v4253_v56 = vld [vmem:[#allocation10 + $0x18] sm:$0xf]  ;;  %v5103_v12 = vld [vmem:[#allocation10 + $0x20] sm:$0xf0] }
 0x1a0   :  { %v5298_v10 = vpop.eup %5297 }
 0x1a1   :  { %v1432_v4 = vmul.f32 %v5298_v10, %v1431_v8  ;;  %v4301_v8 = vld [vmem:[#allocation10 + $0x78] sm:$0xf]  ;;  %v5115_v10 = vld [vmem:[#allocation10 + $0x80] sm:$0xf0]  ;;  %1887 = vmatpush.bf16.msrb.mxu0 %v4310_v6 }
 0x1a3   :  { %v5851_v54 = vadd.f32 %v1433_v62, %v1432_v4  ;;  %v5114_v4 = vld [vmem:[#allocation10 + $0x7c] sm:$0xf]  ;;  %v4302_v62 = vor.u32 %v5115_v10, %v4301_v8  ;;  %v4278_v8 = vor.u32 %v5109_v9, %v4277_v14  ;;  %v4279_v10 = vld [vmem:[#allocation10 + $0x54] sm:$0xf0]  ;;  %v4255_v14 = vld [vmem:[#allocation10 + $0x24] sm:$0xf0] }
 0x1a4   :  { %v4282_v46 = vor.u32 %v5108_v26, %v4279_v10  ;;  %v4261_v26 = vld [vmem:[#allocation10 + $0x20] sm:$0xf] }
 0x1a5   :  { %v1442_v29 = vpack.c.bf16 %v5851_v54, %v5851_v54  ;;  %1861 = vmatpush.bf16.msra.mxu2 %v4302_v62  ;;  %1888 = vmatpush.bf16.msrb.mxu0 %v4298_v20  ;;  %v5110_v62 = vld [vmem:[#allocation10 + $0x58] sm:$0xf0]  ;;  %v4254_v20 = vor.u32 %v5103_v12, %v4253_v56 }
 0x1a7   :  { %1611 = vmatmul.bf16.vlgmr.msrb.gmra.mxu3 %v1442_v29  ;;  %1624 = vmatmul.bf16.vlgmr.msra.gmra.mxu0 %v1442_v29 }
 0x1a8   :  { %1637 = vmatmul.bf16.vlgmr.msra.gmra.mxu1 %v1442_v29  ;;  %v4303_v29 = vld [vmem:[#allocation10 + $0x84] sm:$0xf0] }
 0x1a9   :  { %v4306_v16 = vor.u32 %v5114_v4, %v4303_v29  ;;  %1862 = vmatpush.bf16.msra.mxu2 %v4290_v27  ;;  %v4285_v4 = vld [vmem:[#allocation10 + $0x50] sm:$0xf] }
 0x1aa   :  { %v4286_v21 = vor.u32 %v5110_v62, %v4285_v4  ;;  %v5100_v4 = vld [vmem:[#allocation10 + $0x8] sm:$0xf0] }
 0x1ab   :  { %1874 = vmatpush.bf16.msra.mxu3 %v4306_v16 }
 0x1ac   :  { %1889 = vmatpush.bf16.msrb.mxu0 %v4286_v21  ;;  %v4249_v21 = vld [vmem:[#allocation10 + $0x8] sm:$0xf] }
 0x1ad   :  { %1863 = vmatpush.bf16.msra.mxu2 %v4278_v8  ;;  %v4241_v8 = vld [vmem:[#allocation10] sm:$0xf] }
 0x1af   :  { %1875 = vmatpush.bf16.msra.mxu3 %v4294_v52  ;;  %v4274_v52 = vor.u32 %v5107_v18, %v4273_v0 }
 0x1b1   :  { %1890 = vmatpush.bf16.msrb.mxu0 %v4274_v52 }
 0x1b3   :  { %1876 = vmatpush.bf16.msra.mxu3 %v4282_v46  ;;  %v4243_v46 = vld [vmem:[#allocation10 + $0xc] sm:$0xf0] }
 0x224   :  { %v1625_v2 = vpop.f32.mrf.mxu0 }
 0x225   :  { %v1662_v23 = vadd.f32 %v1625_v2, %v1019_v59  ;;  %v5862_v60 = vpop.f32.mrf.mxu1  ;;  %v4266_v2 = vor.u32 %v5106_v63, %v4265_v61 }
 0x227   :  { %v4238_v1 = vmul.f32 -1.442695, %v1662_v23  ;;  %v5105_v23 = vld [vmem:[#allocation10 + $0x34] sm:$0xf]  ;;  %1864 = vmatpush.bf16.msra.mxu2 %v4266_v2 }
 0x228   :  { %v4270_v27 = vor.u32 %v5105_v23, %v4267_v38 }
 0x229   :  { %5299 = vpow2.f32 %v4238_v1 }
 0x22a   :  { %v1612_v28 = vpop.f32.mrf.mxu3  ;;  %1877 = vmatpush.bf16.msra.mxu3 %v4270_v27 }
 0x22b   :  { %v1642_v29 = vadd.f32 %v1612_v28, %v903_v47  ;;  %v5102_v47 = vld [vmem:[#allocation10 + $0x1c] sm:$0xf]  ;;  %v5104_v28 = vld [vmem:[#allocation10 + $0x28] sm:$0xf0]  ;;  %1865 = vmatpush.bf16.msra.mxu2 %v4254_v20 }
 0x22c   :  { %v1627_v59 = vpop.f32.mrf.mxu0  ;;  %v4258_v9 = vor.u32 %v5102_v47, %v4255_v14  ;;  %v4262_v62 = vor.u32 %v5104_v28, %v4261_v26 }
 0x22d   :  { %v4237_v16 = vmul.f32 -1.442695, %v1642_v29  ;;  %v1640_v6 = vpop.f32.mrf.mxu1  ;;  %v5099_v29 = vld [vmem:[#allocation10 + $0x4] sm:$0xf]  ;;  %v4242_v59 = vor.u32 %v5100_v4, %v4241_v8  ;;  %v1682_v8 = vadd.f32 %v5846_v37, %v5862_v60 }
 0x22e   :  { %1878 = vmatpush.bf16.msra.mxu3 %v4258_v9  ;;  %v4246_v61 = vor.u32 %v5099_v29, %v4243_v46  ;;  %1891 = vmatpush.bf16.msrb.mxu0 %v4262_v62 }
 0x22f   :  { %v5300_v17 = vpop.eup %5299  ;;  %5301 = vpow2.f32 %v4237_v16  ;;  %v5101_v16 = vld [vmem:[#allocation10 + $0x10] sm:$0xf0]  ;;  %1866 = vmatpush.bf16.msra.mxu2 %v4242_v59 }
 0x230   :  { %v5866_v1 = vadd.f32 1.0, %v5300_v17  ;;  %v4250_v2 = vor.u32 %v5101_v16, %v4249_v21  ;;  %v1048_v17 = vadd.f32 %v5807_v32, %v5798_v15 }
 0x232   :  { %v1614_v10 = vpop.f32.mrf.mxu3  ;;  %5303 = vrcp.f32 %v5866_v1  ;;  %1879 = vmatpush.bf16.msra.mxu3 %v4246_v61  ;;  %1892 = vmatpush.bf16.msrb.mxu0 %v4250_v2  ;;  %v1077_v52 = vadd.f32 %v5811_v51, %v1048_v17  ;;  %v1678_v62 = vand.u32 2147483648, %v5866_v1  ;;  %vm1672_vm13 = vweird.f32 %v5866_v1  ;;  %v4425_v17 = vld [vmem:[#allocation10 + $0xb4] sm:$0xf0] }
 0x234   :  { %v1106_v9 = vadd.f32 %v5813_v11, %v1077_v52  ;;  %v1676_v11 = vand.u32 2147483647, %v5866_v1  ;;  %v1679_v59 = vor.u32 1.1754944e-38, %v1678_v62  ;;  %v4411_v52 = vld [vmem:[#allocation10 + $0x90] sm:$0xf] }
 0x235   :  { %v5302_v6 = vpop.eup %5301 }
 0x236   :  { %v1646_v63 = vadd.f32 1.0, %v5302_v6  ;;  %v1135_v51 = vadd.f32 %v5815_v48, %v1106_v9  ;;  %vm1677_vm15 = vcmp.eq.f32.partialorder %v1676_v11, 8.507059e+37  ;;  %v4413_v9 = vld [vmem:[#allocation10 + $0x9c] sm:$0xf0] }
 0x237   :  { %v4407_v11 = vld [vmem:[#allocation10 + $0x80] sm:$0xf] }
 0x238   :  { %5305 = vrcp.f32 %v1646_v63  ;;  %v5304_v23 = vpop.eup %5303  ;;  %v1658_v12 = vand.u32 2147483648, %v1646_v63  ;;  %v1656_v47 = vand.u32 2147483647, %v1646_v63  ;;  %vm1652_vm9 = vweird.f32 %v1646_v63 }
 0x239   :  { %v1668_v38 = vmul.f32 %v5304_v23, %v5866_v1  ;;  %vm1673_vm12 = vweird.f32 %v5304_v23  ;;  %v4423_v1 = vld [vmem:[#allocation10 + $0xa8] sm:$0xf] }
 0x23a   :  { %v1659_v28 = vor.u32 1.1754944e-38, %v1658_v12  ;;  %vm1657_vm11 = vcmp.eq.f32.partialorder %v1656_v47, 8.507059e+37  ;;  %vm1674_vm14 = vmor %vm1672_vm13, %vm1673_vm12  ;;  %v5141_v47 = vld [vmem:[#allocation10 + $0x94] sm:$0xf] }
 0x23b   :  { %v1669_v18 = vsub.f32 1.0, %v1668_v38  ;;  %v5145_v38 = vld [vmem:[#allocation10 + $0xb0] sm:$0xf0] }
 0x23d   :  { %v1670_v14 = vmul.f32 %v5304_v23, %v1669_v18  ;;  %v5146_v18 = vld [vmem:[#allocation10 + $0xb8] sm:$0xf0] }
 0x23e   :  { %v5306_v0 = vpop.eup %5305 }
 0x23f   :  { %v1648_v27 = vmul.f32 %v5306_v0, %v1646_v63  ;;  %vm1653_vm8 = vweird.f32 %v5306_v0  ;;  %v1671_v10 = vadd.f32 %v5304_v23, %v1670_v14 }
 0x240   :  { %vm1654_vm10 = vmor %vm1652_vm9, %vm1653_vm8 }
 0x241   :  { %v1649_v56 = vsub.f32 1.0, %v1648_v27  ;;  %v1675_v21 = vsel %vm1674_vm14, %v5304_v23, %v1671_v10  ;;  %v5144_v23 = vld [vmem:[#allocation10 + $0xac] sm:$0xf]  ;;  %v4431_v27 = vld [vmem:[#allocation10 + $0xb0] sm:$0xf] }
 0x242   :  { %v1680_v60 = vsel %vm1677_vm15, %v1679_v59, %v1675_v21  ;;  %v4432_v12 = vor.u32 %v5146_v18, %v4431_v27  ;;  %v4399_v10 = vld [vmem:[#allocation10 + $0x78] sm:$0xf]  ;;  %v5133_v27 = vld [vmem:[#allocation10 + $0x50] sm:$0xf0]  ;;  %v5132_v18 = vld [vmem:[#allocation10 + $0x4c] sm:$0xf] }
 0x243   :  { %v1650_v20 = vmul.f32 %v5306_v0, %v1649_v56  ;;  %v1686_v16 = vsub.f32 1.0, %v1680_v60  ;;  %v1688_v63 = vmul.f32 %v1680_v60, %v5851_v54  ;;  %v4428_v56 = vor.u32 %v5144_v23, %v4425_v17  ;;  %v4375_v17 = vld [vmem:[#allocation10 + $0x48] sm:$0xf] }
 0x244   :  { %2141 = vmatpush.bf16.msrb.mxu3 %v4432_v12 }
 0x245   :  { %v1651_v26 = vadd.f32 %v5306_v0, %v1650_v20  ;;  %2128 = vmatpush.bf16.msrb.mxu2 %v4428_v56  ;;  %v5142_v20 = vld [vmem:[#allocation10 + $0x98] sm:$0xf0] }
 0x246   :  { %v4412_v14 = vor.u32 %v5142_v20, %v4411_v52  ;;  %v4376_v52 = vor.u32 %v5133_v27, %v4375_v17  ;;  %v4377_v20 = vld [vmem:[#allocation10 + $0x54] sm:$0xf0] }
 0x247   :  { %v1655_v32 = vsel %vm1654_vm10, %v5306_v0, %v1651_v26  ;;  %v4424_v0 = vor.u32 %v5145_v38, %v4423_v1  ;;  %v4419_v26 = vld [vmem:[#allocation10 + $0x98] sm:$0xf]  ;;  %v4395_v1 = vld [vmem:[#allocation10 + $0x68] sm:$0xf]  ;;  %v5137_v38 = vld [vmem:[#allocation10 + $0x70] sm:$0xf0] }
 0x248   :  { %v1660_v4 = vsel %vm1657_vm11, %v1659_v28, %v1655_v32  ;;  %v5143_v28 = vld [vmem:[#allocation10 + $0xa0] sm:$0xf0] }
 0x249   :  { %v1683_v29 = vmul.f32 %v1682_v8, %v1660_v4  ;;  %2115 = vmatpush.bf16.msrb.mxu1 %v4424_v0  ;;  %v4416_v8 = vor.u32 %v5141_v47, %v4413_v9  ;;  %v4420_v32 = vor.u32 %v5143_v28, %v4419_v26  ;;  %v5139_v4 = vld [vmem:[#allocation10 + $0x80] sm:$0xf0]  ;;  %v4396_v0 = vor.u32 %v5137_v38, %v4395_v1  ;;  %v4383_v47 = vld [vmem:[#allocation10 + $0x50] sm:$0xf]  ;;  %v4359_v38 = vld [vmem:[#allocation10 + $0x20] sm:$0xf] }
 0x24a   :  { %v4400_v62 = vor.u32 %v5139_v4, %v4399_v10  ;;  %v4380_v28 = vor.u32 %v5132_v18, %v4377_v20  ;;  %v4347_v20 = vld [vmem:[#allocation10 + $0x8] sm:$0xf] }
 0x24b   :  { %v1684_v46 = vadd.f32 %v1683_v29, %v1135_v51  ;;  %2129 = vmatpush.bf16.msrb.mxu2 %v4416_v8  ;;  %2142 = vmatpush.bf16.msrb.mxu3 %v4420_v32  ;;  %v5138_v51 = vld [vmem:[#allocation10 + $0x7c] sm:$0xf]  ;;  %v4401_v29 = vld [vmem:[#allocation10 + $0x84] sm:$0xf0] }
 0x24c   :  { %v4404_v21 = vor.u32 %v5138_v51, %v4401_v29  ;;  %v4363_v51 = vld [vmem:[#allocation10 + $0x30] sm:$0xf]  ;;  %v5129_v29 = vld [vmem:[#allocation10 + $0x34] sm:$0xf] }
 0x24d   :  { %5307 = vtanh.f32 %v1684_v46  ;;  %2116 = vmatpush.bf16.msrb.mxu1 %v4412_v14  ;;  %v5140_v46 = vld [vmem:[#allocation10 + $0x88] sm:$0xf0]  ;;  %v5134_v14 = vld [vmem:[#allocation10 + $0x58] sm:$0xf0] }
 0x24e   :  { %v4408_v59 = vor.u32 %v5140_v46, %v4407_v11  ;;  %v4384_v8 = vor.u32 %v5134_v14, %v4383_v47  ;;  %v4365_v11 = vld [vmem:[#allocation10 + $0x3c] sm:$0xf0]  ;;  %v5125_v47 = vld [vmem:[#allocation10 + $0x10] sm:$0xf0] }
 0x24f   :  { %2130 = vmatpush.bf16.msrb.mxu2 %v4404_v21  ;;  %v4368_v21 = vor.u32 %v5129_v29, %v4365_v11 }
 0x250   :  { %2143 = vmatpush.bf16.msrb.mxu3 %v4408_v59  ;;  %v4371_v59 = vld [vmem:[#allocation10 + $0x38] sm:$0xf] }
 0x251   :  { %2117 = vmatpush.bf16.msrb.mxu1 %v4400_v62  ;;  %v5130_v62 = vld [vmem:[#allocation10 + $0x38] sm:$0xf0] }
 0x252   :  { %v4364_v46 = vor.u32 %v5130_v62, %v4363_v51 }
 0x253   :  { %v5308_v6 = vpop.eup %5307 }
 0x254   :  { %v1687_v61 = vmul.f32 %v5308_v6, %v1686_v16  ;;  %v4387_v16 = vld [vmem:[#allocation10 + $0x60] sm:$0xf]  ;;  %v5136_v6 = vld [vmem:[#allocation10 + $0x68] sm:$0xf0]  ;;  %2144 = vmatpush.bf16.msrb.mxu3 %v4396_v0 }
 0x255   :  { %v4339_v0 = vld [vmem:[#allocation10] sm:$0xf] }
 0x256   :  { %v5881_v48 = vadd.f32 %v1688_v63, %v1687_v61  ;;  %v5135_v61 = vld [vmem:[#allocation10 + $0x64] sm:$0xf]  ;;  %v4388_v63 = vor.u32 %v5136_v6, %v4387_v16 }
 0x257   :  { %v5131_v16 = vld [vmem:[#allocation10 + $0x40] sm:$0xf0] }
 0x258   :  { %v1698_v2 = vpack.c.bf16 %v5881_v48, %v5881_v48  ;;  %2118 = vmatpush.bf16.msrb.mxu1 %v4388_v63  ;;  %2145 = vmatpush.bf16.msrb.mxu3 %v4384_v8  ;;  %v5127_v6 = vld [vmem:[#allocation10 + $0x20] sm:$0xf0]  ;;  %v4353_v63 = vld [vmem:[#allocation10 + $0x24] sm:$0xf0] }
 0x25a   :  { %1867 = vmatmul.bf16.vlgmr.msra.gmra.mxu2 %v1698_v2  ;;  %1880 = vmatmul.bf16.vlgmr.msra.gmra.mxu3 %v1698_v2 }
 0x25b   :  { %1893 = vmatmul.bf16.vlgmr.msrb.gmra.mxu0 %v1698_v2  ;;  %v4389_v2 = vld [vmem:[#allocation10 + $0x6c] sm:$0xf0] }
 0x25c   :  { %v4392_v23 = vor.u32 %v5135_v61, %v4389_v2  ;;  %2119 = vmatpush.bf16.msrb.mxu1 %v4376_v52  ;;  %v5126_v61 = vld [vmem:[#allocation10 + $0x1c] sm:$0xf]  ;;  %v4341_v52 = vld [vmem:[#allocation10 + $0xc] sm:$0xf0] }
 0x25d   :  { %v4356_v1 = vor.u32 %v5126_v61, %v4353_v63 }
 0x25e   :  { %2131 = vmatpush.bf16.msrb.mxu2 %v4392_v23  ;;  %v5128_v23 = vld [vmem:[#allocation10 + $0x28] sm:$0xf0] }
 0x25f   :  { %v4360_v18 = vor.u32 %v5128_v23, %v4359_v38 }
 0x260   :  { %2120 = vmatpush.bf16.msrb.mxu1 %v4364_v46 }
 0x262   :  { %2132 = vmatpush.bf16.msrb.mxu2 %v4380_v28 }
 0x266   :  { %2133 = vmatpush.bf16.msrb.mxu2 %v4368_v21 }
 0x26a   :  { %2134 = vmatpush.bf16.msrb.mxu2 %v4356_v1 }
 0x2d8   :  { %v5885_v60 = vpop.f32.mrf.mxu0 }
 0x2d9   :  { %v1938_v61 = vadd.f32 %v5846_v37, %v5885_v60 }
 0x2dd   :  { %v1868_v56 = vpop.f32.mrf.mxu2  ;;  %v1881_v12 = vpop.f32.mrf.mxu3 }
 0x2de   :  { %v1898_v9 = vadd.f32 %v1868_v56, %v5716_v45  ;;  %v1918_v26 = vadd.f32 %v1881_v12, %v5773_v40  ;;  %v4351_v45 = vld [vmem:[#allocation10 + $0x18] sm:$0xf]  ;;  %v4372_v40 = vor.u32 %v5131_v16, %v4371_v59  ;;  %v5124_v56 = vld [vmem:[#allocation10 + $0x8] sm:$0xf0]  ;;  %v5123_v12 = vld [vmem:[#allocation10 + $0x4] sm:$0xf] }
 0x2df   :  { %v4352_v2 = vor.u32 %v5127_v6, %v4351_v45 }
 0x2e0   :  { %v4335_v32 = vmul.f32 -1.442695, %v1898_v9  ;;  %v4336_v10 = vmul.f32 -1.442695, %v1918_v26  ;;  %v1896_v4 = vpop.f32.mrf.mxu0  ;;  %2146 = vmatpush.bf16.msrb.mxu3 %v4372_v40  ;;  %v4340_v9 = vor.u32 %v5124_v56, %v4339_v0  ;;  %v4344_v26 = vor.u32 %v5123_v12, %v4341_v52 }
 0x2e1   :  { %2121 = vmatpush.bf16.msrb.mxu1 %v4352_v2 }
 0x2e2   :  { %5309 = vpow2.f32 %v4335_v32  ;;  %v4348_v32 = vor.u32 %v5125_v47, %v4347_v20  ;;  %2135 = vmatpush.bf16.msrb.mxu2 %v4344_v26  ;;  %v5168_v26 = vld [vmem:[#allocation10 + $0xac] sm:$0xf] }
 0x2e3   :  { %5311 = vpow2.f32 %v4336_v10 }
 0x2e4   :  { %2147 = vmatpush.bf16.msrb.mxu3 %v4360_v18 }
 0x2e5   :  { %v1870_v17 = vpop.f32.mrf.mxu2  ;;  %v1883_v27 = vpop.f32.mrf.mxu3  ;;  %2122 = vmatpush.bf16.msrb.mxu1 %v4340_v9  ;;  %v5169_v9 = vld [vmem:[#allocation10 + $0xb0] sm:$0xf0] }
 0x2e8   :  { %v5310_v14 = vpop.eup %5309  ;;  %2148 = vmatpush.bf16.msrb.mxu3 %v4348_v32  ;;  %v4529_v32 = vld [vmem:[#allocation10 + $0xb0] sm:$0xf] }
 0x2e9   :  { %v5312_v28 = vpop.eup %5311  ;;  %v1902_v8 = vadd.f32 1.0, %v5310_v14 }
 0x2ea   :  { %v1922_v10 = vadd.f32 1.0, %v5312_v28 }
 0x2eb   :  { %5313 = vrcp.f32 %v1902_v8  ;;  %v1914_v46 = vand.u32 2147483648, %v1902_v8  ;;  %v1912_v16 = vand.u32 2147483647, %v1902_v8  ;;  %vm1908_vm1 = vweird.f32 %v1902_v8 }
 0x2ec   :  { %5315 = vrcp.f32 %v1922_v10  ;;  %v1934_v23 = vand.u32 2147483648, %v1922_v10  ;;  %vm1928_vm5 = vweird.f32 %v1922_v10  ;;  %v1932_v0 = vand.u32 2147483647, %v1922_v10 }
 0x2ed   :  { %v1915_v6 = vor.u32 1.1754944e-38, %v1914_v46  ;;  %vm1913_vm3 = vcmp.eq.f32.partialorder %v1912_v16, 8.507059e+37  ;;  %v5167_v16 = vld [vmem:[#allocation10 + $0xa0] sm:$0xf0] }
 0x2ee   :  { %v1935_v18 = vor.u32 1.1754944e-38, %v1934_v23  ;;  %vm1933_vm7 = vcmp.eq.f32.partialorder %v1932_v0, 8.507059e+37  ;;  %v4505_v23 = vld [vmem:[#allocation10 + $0x80] sm:$0xf]  ;;  %v5164_v0 = vld [vmem:[#allocation10 + $0x88] sm:$0xf0] }
 0x2f1   :  { %v5314_v4 = vpop.eup %5313 }
 0x2f2   :  { %v5316_v51 = vpop.eup %5315  ;;  %v1904_v62 = vmul.f32 %v5314_v4, %v1902_v8  ;;  %vm1909_vm0 = vweird.f32 %v5314_v4  ;;  %v4523_v8 = vld [vmem:[#allocation10 + $0xb4] sm:$0xf0] }
 0x2f3   :  { %v1924_v29 = vmul.f32 %v5316_v51, %v1922_v10  ;;  %vm1910_vm2 = vmor %vm1908_vm1, %vm1909_vm0  ;;  %vm1929_vm4 = vweird.f32 %v5316_v51  ;;  %v5170_v10 = vld [vmem:[#allocation10 + $0xb8] sm:$0xf0] }
 0x2f4   :  { %v1905_v11 = vsub.f32 1.0, %v1904_v62  ;;  %vm1930_vm6 = vmor %vm1928_vm5, %vm1929_vm4  ;;  %v4509_v62 = vld [vmem:[#allocation10 + $0x90] sm:$0xf] }
 0x2f5   :  { %v1925_v21 = vsub.f32 1.0, %v1924_v29  ;;  %v5166_v29 = vld [vmem:[#allocation10 + $0x98] sm:$0xf0] }
 0x2f6   :  { %v1906_v59 = vmul.f32 %v5314_v4, %v1905_v11  ;;  %v5165_v11 = vld [vmem:[#allocation10 + $0x94] sm:$0xf]  ;;  %v4510_v46 = vor.u32 %v5166_v29, %v4509_v62  ;;  %v4481_v62 = vld [vmem:[#allocation10 + $0x50] sm:$0xf]  ;;  %v5158_v29 = vld [vmem:[#allocation10 + $0x58] sm:$0xf0] }
 0x2f7   :  { %v1926_v45 = vmul.f32 %v5316_v51, %v1925_v21  ;;  %v4511_v21 = vld [vmem:[#allocation10 + $0x9c] sm:$0xf0] }
 0x2f8   :  { %v1907_v40 = vadd.f32 %v5314_v4, %v1906_v59  ;;  %v4517_v59 = vld [vmem:[#allocation10 + $0x98] sm:$0xf] }
 0x2f9   :  { %v1927_v1 = vadd.f32 %v5316_v51, %v1926_v45  ;;  %v821_v45 = vadd.f32 %v5712_v39, %v5693_v19  ;;  %v937_v39 = vadd.f32 %v5769_v30, %v5749_v13  ;;  %v5157_v30 = vld [vmem:[#allocation10 + $0x50] sm:$0xf0] }
 0x2fa   :  { %v1911_v63 = vsel %vm1910_vm2, %v5314_v4, %v1907_v40  ;;  %v4526_v4 = vor.u32 %v5168_v26, %v4523_v8  ;;  %v4514_v40 = vor.u32 %v5165_v11, %v4511_v21 }
 0x2fb   :  { %v1916_v2 = vsel %vm1913_vm3, %v1915_v6, %v1911_v63  ;;  %v1931_v27 = vsel %vm1930_vm6, %v5316_v51, %v1927_v1  ;;  %v4530_v51 = vor.u32 %v5170_v10, %v4529_v32  ;;  %v4518_v6 = vor.u32 %v5167_v16, %v4517_v59  ;;  %v5163_v63 = vld [vmem:[#allocation10 + $0x80] sm:$0xf0]  ;;  %v5156_v32 = vld [vmem:[#allocation10 + $0x4c] sm:$0xf] }
 0x2fc   :  { %v1939_v38 = vmul.f32 %v1938_v61, %v1916_v2  ;;  %v1936_v56 = vsel %vm1933_vm7, %v1935_v18, %v1931_v27  ;;  %2384 = vmatpush.bf16.msra.mxu1 %v4526_v4  ;;  %v4497_v61 = vld [vmem:[#allocation10 + $0x78] sm:$0xf]  ;;  %v5162_v2 = vld [vmem:[#allocation10 + $0x7c] sm:$0xf]  ;;  %v4506_v18 = vor.u32 %v5164_v0, %v4505_v23  ;;  %v966_v8 = vadd.f32 %v5771_v34, %v937_v39 }
 0x2fd   :  { %v1942_v12 = vsub.f32 1.0, %v1936_v56  ;;  %v1944_v20 = vmul.f32 %v1936_v56, %v5881_v48  ;;  %2397 = vmatpush.bf16.msra.mxu2 %v4530_v51  ;;  %v4498_v1 = vor.u32 %v5163_v63, %v4497_v61  ;;  %v4475_v51 = vld [vmem:[#allocation10 + $0x54] sm:$0xf0]  ;;  %v4482_v59 = vor.u32 %v5158_v29, %v4481_v62  ;;  %v5154_v34 = vld [vmem:[#allocation10 + $0x38] sm:$0xf0] }
 0x2fe   :  { %v1940_v17 = vadd.f32 %v1939_v38, %v5822_v25  ;;  %v4521_v25 = vld [vmem:[#allocation10 + $0xa8] sm:$0xf]  ;;  %v995_v11 = vadd.f32 %v5775_v41, %v966_v8  ;;  %v4478_v21 = vor.u32 %v5156_v32, %v4475_v51  ;;  %v4469_v61 = vld [vmem:[#allocation10 + $0x38] sm:$0xf] }
 0x2ff   :  { %v4522_v28 = vor.u32 %v5169_v9, %v4521_v25  ;;  %v4499_v38 = vld [vmem:[#allocation10 + $0x84] sm:$0xf0]  ;;  %v5161_v9 = vld [vmem:[#allocation10 + $0x70] sm:$0xf0] }
 0x300   :  { %5317 = vtanh.f32 %v1940_v17  ;;  %2385 = vmatpush.bf16.msra.mxu1 %v4514_v40  ;;  %v850_v17 = vadd.f32 %v5714_v44, %v821_v45  ;;  %v4502_v27 = vor.u32 %v5162_v2, %v4499_v38  ;;  %v4493_v25 = vld [vmem:[#allocation10 + $0x68] sm:$0xf]  ;;  %v5153_v40 = vld [vmem:[#allocation10 + $0x34] sm:$0xf]  ;;  %v1024_v63 = vadd.f32 %v5777_v42, %v995_v11 }
 0x301   :  { %2371 = vmatpush.bf16.msra.mxu0 %v4522_v28  ;;  %2398 = vmatpush.bf16.msra.mxu2 %v4518_v6  ;;  %v4494_v28 = vor.u32 %v5161_v9, %v4493_v25  ;;  %v4463_v6 = vld [vmem:[#allocation10 + $0x3c] sm:$0xf0] }
 0x302   :  { %v879_v56 = vadd.f32 %v5718_v31, %v850_v17  ;;  %v4473_v31 = vld [vmem:[#allocation10 + $0x48] sm:$0xf]  ;;  %v4466_v2 = vor.u32 %v5153_v40, %v4463_v6  ;;  %v4449_v17 = vld [vmem:[#allocation10 + $0x18] sm:$0xf]  ;;  %v4437_v9 = vld [vmem:[#allocation10] sm:$0xf] }
 0x303   :  { %v4474_v4 = vor.u32 %v5157_v30, %v4473_v31  ;;  %v4439_v31 = vld [vmem:[#allocation10 + $0xc] sm:$0xf0]  ;;  %v4445_v30 = vld [vmem:[#allocation10 + $0x8] sm:$0xf] }
 0x304   :  { %2386 = vmatpush.bf16.msra.mxu1 %v4502_v27  ;;  %v908_v44 = vadd.f32 %v5720_v35, %v879_v56  ;;  %v4461_v35 = vld [vmem:[#allocation10 + $0x30] sm:$0xf]  ;;  %v5151_v27 = vld [vmem:[#allocation10 + $0x20] sm:$0xf0] }
 0x305   :  { %2372 = vmatpush.bf16.msra.mxu0 %v4510_v46  ;;  %2399 = vmatpush.bf16.msra.mxu2 %v4506_v18  ;;  %v4462_v45 = vor.u32 %v5154_v34, %v4461_v35  ;;  %v5150_v18 = vld [vmem:[#allocation10 + $0x1c] sm:$0xf]  ;;  %v4450_v39 = vor.u32 %v5151_v27, %v4449_v17 }
 0x306   :  { %v5318_v52 = vpop.eup %5317 }
 0x307   :  { %v1943_v60 = vmul.f32 %v5318_v52, %v1942_v12  ;;  %v4485_v12 = vld [vmem:[#allocation10 + $0x60] sm:$0xf]  ;;  %v5160_v52 = vld [vmem:[#allocation10 + $0x68] sm:$0xf0] }
 0x309   :  { %v5893_v47 = vadd.f32 %v1944_v20, %v1943_v60  ;;  %2373 = vmatpush.bf16.msra.mxu0 %v4498_v1  ;;  %v5159_v60 = vld [vmem:[#allocation10 + $0x64] sm:$0xf]  ;;  %v4486_v20 = vor.u32 %v5160_v52, %v4485_v12  ;;  %2400 = vmatpush.bf16.msra.mxu2 %v4494_v28  ;;  %v4451_v12 = vld [vmem:[#allocation10 + $0x24] sm:$0xf0]  ;;  %v4457_v52 = vld [vmem:[#allocation10 + $0x20] sm:$0xf] }
 0x30a   :  { %v5155_v1 = vld [vmem:[#allocation10 + $0x40] sm:$0xf0]  ;;  %v4454_v42 = vor.u32 %v5150_v18, %v4451_v12 }
 0x30b   :  { %v1954_v14 = vpack.c.bf16 %v5893_v47, %v5893_v47  ;;  %v4470_v41 = vor.u32 %v5155_v1, %v4469_v61  ;;  %v5147_v28 = vld [vmem:[#allocation10 + $0x4] sm:$0xf] }
 0x30c   :  { %v4442_v32 = vor.u32 %v5147_v28, %v4439_v31  ;;  %v4621_v28 = vld [vmem:[#allocation10 + $0xb4] sm:$0xf0] }
 0x30d   :  { %2123 = vmatmul.bf16.vlgmr.msrb.gmra.mxu1 %v1954_v14  ;;  %2136 = vmatmul.bf16.vlgmr.msrb.gmra.mxu2 %v1954_v14 }
 0x30e   :  { %2149 = vmatmul.bf16.vlgmr.msrb.gmra.mxu3 %v1954_v14  ;;  %v4487_v14 = vld [vmem:[#allocation10 + $0x6c] sm:$0xf0]  ;;  %2374 = vmatpush.bf16.msra.mxu0 %v4486_v20 }
 0x30f   :  { %v4490_v26 = vor.u32 %v5159_v60, %v4487_v14  ;;  %2401 = vmatpush.bf16.msra.mxu2 %v4482_v59  ;;  %v5152_v60 = vld [vmem:[#allocation10 + $0x28] sm:$0xf0] }
 0x310   :  { %v4458_v14 = vor.u32 %v5152_v60, %v4457_v52 }
 0x311   :  { %2387 = vmatpush.bf16.msra.mxu1 %v4490_v26  ;;  %v5148_v26 = vld [vmem:[#allocation10 + $0x8] sm:$0xf0] }
 0x312   :  { %2375 = vmatpush.bf16.msra.mxu0 %v4474_v4  ;;  %v4438_v8 = vor.u32 %v5148_v26, %v4437_v9  ;;  %v5192_v9 = vld [vmem:[#allocation10 + $0xac] sm:$0xf] }
 0x313   :  { %2402 = vmatpush.bf16.msra.mxu2 %v4470_v41  ;;  %v4624_v31 = vor.u32 %v5192_v9, %v4621_v28  ;;  %v5178_v28 = vld [vmem:[#allocation10 + $0x38] sm:$0xf0] }
 0x315   :  { %2388 = vmatpush.bf16.msra.mxu1 %v4478_v21  ;;  %v1053_v21 = vadd.f32 %v5818_v7, %v5798_v15 }
 0x316   :  { %2376 = vmatpush.bf16.msra.mxu0 %v4462_v45 }
 0x317   :  { %2403 = vmatpush.bf16.msra.mxu2 %v4458_v14  ;;  %v1082_v35 = vadd.f32 %v5820_v24, %v1053_v21  ;;  %v4619_v14 = vld [vmem:[#allocation10 + $0xa8] sm:$0xf] }
 0x319   :  { %2389 = vmatpush.bf16.msra.mxu1 %v4466_v2  ;;  %v1111_v61 = vadd.f32 %v5824_v43, %v1082_v35  ;;  %v5186_v35 = vld [vmem:[#allocation10 + $0x7c] sm:$0xf] }
 0x31a   :  { %2377 = vmatpush.bf16.msra.mxu0 %v4450_v39 }
 0x31b   :  { %v1140_v7 = vadd.f32 %v5826_v53, %v1111_v61 }
 0x31d   :  { %2390 = vmatpush.bf16.msra.mxu1 %v4454_v42 }
 0x31e   :  { %2378 = vmatpush.bf16.msra.mxu0 %v4438_v8  ;;  %v5194_v8 = vld [vmem:[#allocation10 + $0xb8] sm:$0xf0] }
 0x321   :  { %2391 = vmatpush.bf16.msra.mxu1 %v4442_v32  ;;  %v4607_v32 = vld [vmem:[#allocation10 + $0x90] sm:$0xf] }
 0x322   :  { %2640 = vmatpush.bf16.msrb.mxu0 %v4624_v31 }
 0x38a   :  { %v2124_v10 = vpop.f32.mrf.mxu1 }
 0x38b   :  { %v2154_v46 = vadd.f32 %v2124_v10, %v908_v44  ;;  %v5149_v10 = vld [vmem:[#allocation10 + $0x10] sm:$0xf0] }
 0x38c   :  { %v4446_v62 = vor.u32 %v5149_v10, %v4445_v30  ;;  %v5190_v10 = vld [vmem:[#allocation10 + $0x98] sm:$0xf0] }
 0x38d   :  { %v4433_v16 = vmul.f32 -1.442695, %v2154_v46 }
 0x38e   :  { %2404 = vmatpush.bf16.msra.mxu2 %v4446_v62  ;;  %v4609_v62 = vld [vmem:[#allocation10 + $0x9c] sm:$0xf0] }
 0x38f   :  { %5319 = vpow2.f32 %v4433_v16 }
 0x390   :  { %v2137_v38 = vpop.f32.mrf.mxu2 }
 0x391   :  { %v2174_v23 = vadd.f32 %v2137_v38, %v1024_v63  ;;  %v2150_v0 = vpop.f32.mrf.mxu3 }
 0x392   :  { %v2126_v56 = vpop.f32.mrf.mxu1  ;;  %v2194_v15 = vadd.f32 %v5846_v37, %v2150_v0 }
 0x393   :  { %v4434_v20 = vmul.f32 -1.442695, %v2174_v23 }
 0x395   :  { %v5320_v25 = vpop.eup %5319  ;;  %5321 = vpow2.f32 %v4434_v20 }
 0x396   :  { %v2158_v44 = vadd.f32 1.0, %v5320_v25  ;;  %v5193_v25 = vld [vmem:[#allocation10 + $0xb0] sm:$0xf0] }
 0x397   :  { %v4620_v26 = vor.u32 %v5193_v25, %v4619_v14 }
 0x398   :  { %5323 = vrcp.f32 %v2158_v44  ;;  %v2139_v4 = vpop.f32.mrf.mxu2  ;;  %v2170_v34 = vand.u32 2147483648, %v2158_v44  ;;  %v2168_v40 = vand.u32 2147483647, %v2158_v44  ;;  %vm2164_vm9 = vweird.f32 %v2158_v44 }
 0x399   :  { %v2152_v51 = vpop.f32.mrf.mxu3  ;;  %2627 = vmatpush.bf16.msra.mxu3 %v4620_v26  ;;  %v5189_v4 = vld [vmem:[#allocation10 + $0x94] sm:$0xf]  ;;  %v4559_v26 = vld [vmem:[#allocation10 + $0x30] sm:$0xf] }
 0x39a   :  { %v2171_v1 = vor.u32 1.1754944e-38, %v2170_v34  ;;  %vm2169_vm11 = vcmp.eq.f32.partialorder %v2168_v40, 8.507059e+37  ;;  %v4608_v51 = vor.u32 %v5190_v10, %v4607_v32  ;;  %v4603_v40 = vld [vmem:[#allocation10 + $0x80] sm:$0xf]  ;;  %v4560_v31 = vor.u32 %v5178_v28, %v4559_v26  ;;  %v4567_v32 = vld [vmem:[#allocation10 + $0x38] sm:$0xf] }
 0x39b   :  { %v5322_v29 = vpop.eup %5321  ;;  %v5179_v10 = vld [vmem:[#allocation10 + $0x40] sm:$0xf0] }
 0x39c   :  { %v2178_v11 = vadd.f32 1.0, %v5322_v29  ;;  %v4615_v29 = vld [vmem:[#allocation10 + $0x98] sm:$0xf] }
 0x39d   :  { %2628 = vmatpush.bf16.msra.mxu3 %v4608_v51  ;;  %v5175_v51 = vld [vmem:[#allocation10 + $0x20] sm:$0xf0] }
 0x39e   :  { %v5324_v46 = vpop.eup %5323  ;;  %5325 = vrcp.f32 %v2178_v11  ;;  %v2190_v17 = vand.u32 2147483648, %v2178_v11  ;;  %v2188_v18 = vand.u32 2147483647, %v2178_v11  ;;  %vm2184_vm13 = vweird.f32 %v2178_v11 }
 0x39f   :  { %v2160_v59 = vmul.f32 %v5324_v46, %v2158_v44  ;;  %vm2165_vm8 = vweird.f32 %v5324_v46  ;;  %v4627_v44 = vld [vmem:[#allocation10 + $0xb0] sm:$0xf] }
 0x3a0   :  { %vm2166_vm10 = vmor %vm2164_vm9, %vm2165_vm8  ;;  %v2191_v39 = vor.u32 1.1754944e-38, %v2190_v17  ;;  %vm2189_vm15 = vcmp.eq.f32.partialorder %v2188_v18, 8.507059e+37  ;;  %v4628_v30 = vor.u32 %v5194_v8, %v4627_v44  ;;  %v5181_v18 = vld [vmem:[#allocation10 + $0x50] sm:$0xf0]  ;;  %v4561_v8 = vld [vmem:[#allocation10 + $0x3c] sm:$0xf0] }
 0x3a1   :  { %v2161_v16 = vsub.f32 1.0, %v2160_v59  ;;  %v4595_v59 = vld [vmem:[#allocation10 + $0x78] sm:$0xf]  ;;  %v5177_v44 = vld [vmem:[#allocation10 + $0x34] sm:$0xf] }
 0x3a2   :  { %2653 = vmatpush.bf16.msrb.mxu1 %v4628_v30  ;;  %v4564_v30 = vor.u32 %v5177_v44, %v4561_v8 }
 0x3a3   :  { %v2162_v45 = vmul.f32 %v5324_v46, %v2161_v16  ;;  %v5187_v16 = vld [vmem:[#allocation10 + $0x80] sm:$0xf0] }
 0x3a4   :  { %v5326_v6 = vpop.eup %5325  ;;  %v4596_v34 = vor.u32 %v5187_v16, %v4595_v59  ;;  %v4555_v59 = vld [vmem:[#allocation10 + $0x20] sm:$0xf]  ;;  %v5176_v16 = vld [vmem:[#allocation10 + $0x28] sm:$0xf0] }
 0x3a5   :  { %v2180_v63 = vmul.f32 %v5326_v6, %v2178_v11  ;;  %v2163_v2 = vadd.f32 %v5324_v46, %v2162_v45  ;;  %vm2185_vm12 = vweird.f32 %v5326_v6  ;;  %v5191_v11 = vld [vmem:[#allocation10 + $0xa0] sm:$0xf0]  ;;  %v4597_v45 = vld [vmem:[#allocation10 + $0x84] sm:$0xf0] }
 0x3a6   :  { %vm2186_vm14 = vmor %vm2184_vm13, %vm2185_vm12  ;;  %v4616_v21 = vor.u32 %v5191_v11, %v4615_v29  ;;  %v4600_v61 = vor.u32 %v5186_v35, %v4597_v45  ;;  %2629 = vmatpush.bf16.msra.mxu3 %v4596_v34  ;;  %v4556_v34 = vor.u32 %v5176_v16, %v4555_v59  ;;  %v4713_v59 = vld [vmem:[#allocation10 + $0x98] sm:$0xf]  ;;  %v5215_v16 = vld [vmem:[#allocation10 + $0xa0] sm:$0xf0] }
 0x3a7   :  { %v2181_v38 = vsub.f32 1.0, %v2180_v63  ;;  %v2167_v41 = vsel %vm2166_vm10, %v5324_v46, %v2163_v2  ;;  %v4612_v46 = vor.u32 %v5189_v4, %v4609_v62  ;;  %v4583_v2 = vld [vmem:[#allocation10 + $0x60] sm:$0xf]  ;;  %v5174_v62 = vld [vmem:[#allocation10 + $0x1c] sm:$0xf] }
 0x3a8   :  { %v2172_v24 = vsel %vm2169_vm11, %v2171_v1, %v2167_v41  ;;  %2654 = vmatpush.bf16.msrb.mxu1 %v4616_v21  ;;  %v5184_v1 = vld [vmem:[#allocation10 + $0x68] sm:$0xf0]  ;;  %v4549_v21 = vld [vmem:[#allocation10 + $0x24] sm:$0xf0] }
 0x3a9   :  { %v2182_v23 = vmul.f32 %v5326_v6, %v2181_v38  ;;  %v2195_v27 = vmul.f32 %v2194_v15, %v2172_v24  ;;  %2641 = vmatpush.bf16.msrb.mxu0 %v4612_v46  ;;  %v5183_v38 = vld [vmem:[#allocation10 + $0x64] sm:$0xf]  ;;  %v4584_v41 = vor.u32 %v5184_v1, %v4583_v2  ;;  %v4585_v15 = vld [vmem:[#allocation10 + $0x6c] sm:$0xf0]  ;;  %v5185_v24 = vld [vmem:[#allocation10 + $0x70] sm:$0xf0]  ;;  %v4552_v35 = vor.u32 %v5174_v62, %v4549_v21 }
 0x3ab   :  { %v2183_v56 = vadd.f32 %v5326_v6, %v2182_v23  ;;  %v2196_v43 = vadd.f32 %v2195_v27, %v1140_v7  ;;  %v4591_v7 = vld [vmem:[#allocation10 + $0x68] sm:$0xf]  ;;  %v4588_v23 = vor.u32 %v5183_v38, %v4585_v15  ;;  %2630 = vmatpush.bf16.msra.mxu3 %v4584_v41  ;;  %v4537_v38 = vld [vmem:[#allocation10 + $0xc] sm:$0xf0] }
 0x3ac   :  { %v4592_v17 = vor.u32 %v5185_v24, %v4591_v7  ;;  %v4571_v27 = vld [vmem:[#allocation10 + $0x48] sm:$0xf]  ;;  %v5173_v24 = vld [vmem:[#allocation10 + $0x10] sm:$0xf0] }
 0x3ad   :  { %v2187_v12 = vsel %vm2186_vm14, %v5326_v6, %v2183_v56  ;;  %5327 = vtanh.f32 %v2196_v43  ;;  %v5188_v6 = vld [vmem:[#allocation10 + $0x88] sm:$0xf0]  ;;  %2642 = vmatpush.bf16.msrb.mxu0 %v4600_v61  ;;  %v5171_v61 = vld [vmem:[#allocation10 + $0x4] sm:$0xf]  ;;  %v4543_v7 = vld [vmem:[#allocation10 + $0x8] sm:$0xf] }
 0x3ae   :  { %v2192_v52 = vsel %vm2189_vm15, %v2191_v39, %v2187_v12  ;;  %v4604_v63 = vor.u32 %v5188_v6, %v4603_v40  ;;  %v5180_v56 = vld [vmem:[#allocation10 + $0x4c] sm:$0xf]  ;;  %v4572_v12 = vor.u32 %v5181_v18, %v4571_v27  ;;  %v4535_v40 = vld [vmem:[#allocation10] sm:$0xf]  ;;  %v4540_v15 = vor.u32 %v5171_v61, %v4537_v38  ;;  %v5209_v61 = vld [vmem:[#allocation10 + $0x70] sm:$0xf0] }
 0x3af   :  { %v2198_v60 = vsub.f32 1.0, %v2192_v52  ;;  %v2200_v53 = vmul.f32 %v2192_v52, %v5893_v47  ;;  %v4573_v52 = vld [vmem:[#allocation10 + $0x54] sm:$0xf0]  ;;  %v5172_v6 = vld [vmem:[#allocation10 + $0x8] sm:$0xf0] }
 0x3b0   :  { %2655 = vmatpush.bf16.msrb.mxu1 %v4604_v63  ;;  %2631 = vmatpush.bf16.msra.mxu3 %v4572_v12  ;;  %v4536_v1 = vor.u32 %v5172_v6, %v4535_v40  ;;  %v4689_v6 = vld [vmem:[#allocation10 + $0x68] sm:$0xf]  ;;  %v5217_v38 = vld [vmem:[#allocation10 + $0xb0] sm:$0xf0] }
 0x3b1   :  { %2643 = vmatpush.bf16.msrb.mxu0 %v4588_v23 }
 0x3b3   :  { %v5328_v20 = vpop.eup %5327 }
 0x3b4   :  { %v2199_v37 = vmul.f32 %v5328_v20, %v2198_v60  ;;  %2656 = vmatpush.bf16.msrb.mxu1 %v4592_v17  ;;  %v4579_v60 = vld [vmem:[#allocation10 + $0x50] sm:$0xf]  ;;  %v5182_v20 = vld [vmem:[#allocation10 + $0x58] sm:$0xf0]  ;;  %2632 = vmatpush.bf16.msra.mxu3 %v4560_v31  ;;  %v4544_v17 = vor.u32 %v5173_v24, %v4543_v7  ;;  %v4719_v7 = vld [vmem:[#allocation10 + $0xb4] sm:$0xf0] }
 0x3b5   :  { %v4580_v14 = vor.u32 %v5182_v20, %v4579_v60 }
 0x3b6   :  { %v5914_v0 = vadd.f32 %v2200_v53, %v2199_v37 }
 0x3b8   :  { %v2210_v42 = vpack.c.bf16 %v5914_v0, %v5914_v0  ;;  %2657 = vmatpush.bf16.msrb.mxu1 %v4580_v14 }
 0x3ba   :  { %2379 = vmatmul.bf16.vlgmr.msra.gmra.mxu0 %v2210_v42  ;;  %2392 = vmatmul.bf16.vlgmr.msra.gmra.mxu1 %v2210_v42 }
 0x3bb   :  { %2405 = vmatmul.bf16.vlgmr.msra.gmra.mxu2 %v2210_v42  ;;  %v4576_v42 = vor.u32 %v5180_v56, %v4573_v52 }
 0x3bd   :  { %2644 = vmatpush.bf16.msrb.mxu0 %v4576_v42 }
 0x3c1   :  { %2645 = vmatpush.bf16.msrb.mxu0 %v4564_v30 }
 0x3c5   :  { %2646 = vmatpush.bf16.msrb.mxu0 %v4552_v35  ;;  %v4714_v35 = vor.u32 %v5215_v16, %v4713_v59  ;;  %v4683_v59 = vld [vmem:[#allocation10 + $0x6c] sm:$0xf0] }
 0x3c9   :  { %2647 = vmatpush.bf16.msrb.mxu0 %v4540_v15 }
 0x437   :  { %v2380_v43 = vpop.f32.mrf.mxu0  ;;  %v2393_v39 = vpop.f32.mrf.mxu1 }
 0x438   :  { %v2410_v37 = vadd.f32 %v2380_v43, %v5731_v57  ;;  %v2430_v53 = vadd.f32 %v2393_v39, %v5784_v36  ;;  %v4568_v57 = vor.u32 %v5179_v10, %v4567_v32  ;;  %v4547_v36 = vld [vmem:[#allocation10 + $0x18] sm:$0xf] }
 0x439   :  { %v4548_v46 = vor.u32 %v5175_v51, %v4547_v36 }
 0x43a   :  { %v4531_v25 = vmul.f32 -1.442695, %v2410_v37  ;;  %v4532_v9 = vmul.f32 -1.442695, %v2430_v53  ;;  %2658 = vmatpush.bf16.msrb.mxu1 %v4568_v57 }
 0x43b   :  { %2633 = vmatpush.bf16.msra.mxu3 %v4548_v46  ;;  %v4725_v46 = vld [vmem:[#allocation10 + $0xb0] sm:$0xf] }
 0x43c   :  { %5329 = vpow2.f32 %v4531_v25  ;;  %v5923_v25 = vld [vmem:[%s6109_s5] ss:$0 sm:$0xff] }
 0x43d   :  { %5331 = vpow2.f32 %v4532_v9 }
 0x43e   :  { %v2406_v4 = vpop.f32.mrf.mxu2  ;;  %2659 = vmatpush.bf16.msrb.mxu1 %v4556_v34  ;;  %v4701_v34 = vld [vmem:[#allocation10 + $0x80] sm:$0xf] }
 0x43f   :  { %v2382_v29 = vpop.f32.mrf.mxu0  ;;  %v2395_v11 = vpop.f32.mrf.mxu1  ;;  %2634 = vmatpush.bf16.msra.mxu3 %v4536_v1  ;;  %v2450_v9 = vadd.f32 %v5923_v25, %v2406_v4  ;;  %v4717_v1 = vld [vmem:[#allocation10 + $0xa8] sm:$0xf] }
 0x440   :  { %v4718_v15 = vor.u32 %v5217_v38, %v4717_v1  ;;  %v5204_v1 = vld [vmem:[#allocation10 + $0x4c] sm:$0xf] }
 0x442   :  { %v5330_v45 = vpop.eup %5329  ;;  %2660 = vmatpush.bf16.msrb.mxu1 %v4544_v17  ;;  %2883 = vmatpush.bf16.msrb.mxu2 %v4718_v15  ;;  %v5206_v17 = vld [vmem:[#allocation10 + $0x58] sm:$0xf0]  ;;  %v4671_v15 = vld [vmem:[#allocation10 + $0x54] sm:$0xf0] }
 0x443   :  { %v5332_v63 = vpop.eup %5331  ;;  %v2414_v2 = vadd.f32 1.0, %v5330_v45  ;;  %v5212_v45 = vld [vmem:[#allocation10 + $0x88] sm:$0xf0] }
 0x444   :  { %v2434_v41 = vadd.f32 1.0, %v5332_v63  ;;  %v4702_v40 = vor.u32 %v5212_v45, %v4701_v34  ;;  %v942_v63 = vadd.f32 %v5780_v55, %v5749_v13  ;;  %v4707_v55 = vld [vmem:[#allocation10 + $0x9c] sm:$0xf0]  ;;  %v4641_v34 = vld [vmem:[#allocation10 + $0x8] sm:$0xf] }
 0x445   :  { %5333 = vrcp.f32 %v2414_v2  ;;  %v2426_v52 = vand.u32 2147483648, %v2414_v2  ;;  %v2424_v20 = vand.u32 2147483647, %v2414_v2  ;;  %vm2420_vm1 = vweird.f32 %v2414_v2  ;;  %v5197_v45 = vld [vmem:[#allocation10 + $0x10] sm:$0xf0] }
 0x446   :  { %5335 = vrcp.f32 %v2434_v41  ;;  %v2408_v23 = vpop.f32.mrf.mxu2  ;;  %v2446_v44 = vand.u32 2147483648, %v2434_v41  ;;  %vm2440_vm5 = vweird.f32 %v2434_v41  ;;  %v2444_v31 = vand.u32 2147483647, %v2434_v41 }
 0x447   :  { %v2427_v42 = vor.u32 1.1754944e-38, %v2426_v52  ;;  %vm2425_vm3 = vcmp.eq.f32.partialorder %v2424_v20, 8.507059e+37  ;;  %v4677_v23 = vld [vmem:[#allocation10 + $0x50] sm:$0xf]  ;;  %v826_v52 = vadd.f32 %v5727_v50, %v5693_v19 }
 0x448   :  { %v2447_v10 = vor.u32 1.1754944e-38, %v2446_v44  ;;  %vm2445_vm7 = vcmp.eq.f32.partialorder %v2444_v31, 8.507059e+37  ;;  %v6127_v44 = vld [vmem:[#allocation19_spill] sm:$0xff] }
 0x449   :  { %v6128_v31 = vld [vmem:[#allocation27_spill] sm:$0xff] }
 0x44b   :  { %v5334_v27 = vpop.eup %5333 }
 0x44c   :  { %v5336_v18 = vpop.eup %5335  ;;  %v2416_v56 = vmul.f32 %v5334_v27, %v2414_v2  ;;  %vm2421_vm0 = vweird.f32 %v5334_v27  ;;  %v4690_v2 = vor.u32 %v5209_v61, %v4689_v6  ;;  %v4642_v61 = vor.u32 %v5197_v45, %v4641_v34  ;;  %v4877_v34 = vld [vmem:[#allocation11 + $0x60] sm:$0xf]  ;;  %v5257_v45 = vld [vmem:[#allocation11 + $0x6c] sm:$0xf0] }
 0x44d   :  { %v2436_v43 = vmul.f32 %v5336_v18, %v2434_v41  ;;  %vm2422_vm2 = vmor %vm2420_vm1, %vm2421_vm0  ;;  %vm2441_vm4 = vweird.f32 %v5336_v18  ;;  %v5216_v41 = vld [vmem:[#allocation10 + $0xac] sm:$0xf] }
 0x44e   :  { %v2417_v39 = vsub.f32 1.0, %v2416_v56  ;;  %vm2442_vm6 = vmor %vm2440_vm5, %vm2441_vm4  ;;  %v4722_v24 = vor.u32 %v5216_v41, %v4719_v7  ;;  %v4705_v56 = vld [vmem:[#allocation10 + $0x90] sm:$0xf]  ;;  %v4941_v7 = vld [vmem:[#allocation11 + $0xe0] sm:$0xf] }
 0x44f   :  { %v2437_v12 = vsub.f32 1.0, %v2436_v43  ;;  %v5214_v43 = vld [vmem:[#allocation10 + $0x98] sm:$0xf0] }
 0x450   :  { %v2418_v60 = vmul.f32 %v5334_v27, %v2417_v39  ;;  %2896 = vmatpush.bf16.msrb.mxu3 %v4722_v24  ;;  %v5213_v39 = vld [vmem:[#allocation10 + $0x94] sm:$0xf]  ;;  %v5273_v24 = vld [vmem:[#allocation11 + $0xec] sm:$0xf0] }
 0x451   :  { %v2438_v37 = vmul.f32 %v5336_v18, %v2437_v12  ;;  %v4706_v12 = vor.u32 %v5214_v43, %v4705_v56  ;;  %v4710_v20 = vor.u32 %v5213_v39, %v4707_v55  ;;  %v4657_v39 = vld [vmem:[#allocation10 + $0x30] sm:$0xf] }
 0x452   :  { %v2419_v53 = vadd.f32 %v5334_v27, %v2418_v60 }
 0x453   :  { %v2439_v26 = vadd.f32 %v5336_v18, %v2438_v37  ;;  %2884 = vmatpush.bf16.msrb.mxu2 %v4706_v12  ;;  %v4665_v37 = vld [vmem:[#allocation10 + $0x38] sm:$0xf]  ;;  %v5202_v12 = vld [vmem:[#allocation10 + $0x38] sm:$0xf0] }
 0x454   :  { %v2423_v14 = vsel %vm2422_vm2, %v5334_v27, %v2419_v53  ;;  %v971_v27 = vadd.f32 %v5782_v33, %v942_v63  ;;  %v5203_v53 = vld [vmem:[#allocation10 + $0x40] sm:$0xf0]  ;;  %2897 = vmatpush.bf16.msrb.mxu3 %v4710_v20  ;;  %v4693_v33 = vld [vmem:[#allocation10 + $0x78] sm:$0xf]  ;;  %v4669_v63 = vld [vmem:[#allocation10 + $0x48] sm:$0xf]  ;;  %v4658_v55 = vor.u32 %v5202_v12, %v4657_v39 }
 0x455   :  { %v2428_v28 = vsel %vm2425_vm3, %v2427_v42, %v2423_v14  ;;  %v2443_v32 = vsel %vm2442_vm6, %v5336_v18, %v2439_v26  ;;  %v4678_v18 = vor.u32 %v5206_v17, %v4677_v23  ;;  %v4666_v42 = vor.u32 %v5203_v53, %v4665_v37  ;;  %v5211_v14 = vld [vmem:[#allocation10 + $0x80] sm:$0xf0]  ;;  %v4925_v20 = vld [vmem:[#allocation11 + $0xc0] sm:$0xf] }
 0x456   :  { %v2451_v8 = vmul.f32 %v2450_v9, %v2428_v28  ;;  %v2448_v57 = vsel %vm2445_vm7, %v2447_v10, %v2443_v32  ;;  %v1000_v60 = vadd.f32 %v5786_v58, %v971_v27  ;;  %v5210_v9 = vld [vmem:[#allocation10 + $0x7c] sm:$0xf]  ;;  %v4694_v26 = vor.u32 %v5211_v14, %v4693_v33  ;;  %v4695_v28 = vld [vmem:[#allocation10 + $0x84] sm:$0xf0]  ;;  %v4653_v58 = vld [vmem:[#allocation10 + $0x20] sm:$0xf] }
 0x457   :  { %v2454_v36 = vsub.f32 1.0, %v2448_v57  ;;  %v2456_v4 = vmul.f32 %v2448_v57, %v5914_v0  ;;  %v4698_v50 = vor.u32 %v5210_v9, %v4695_v28  ;;  %v5200_v10 = vld [vmem:[#allocation10 + $0x28] sm:$0xf0]  ;;  %v4674_v17 = vor.u32 %v5204_v1, %v4671_v15  ;;  %v4645_v33 = vld [vmem:[#allocation10 + $0x18] sm:$0xf] }
 0x458   :  { %v2452_v30 = vadd.f32 %v2451_v8, %v5830_v3  ;;  %v5218_v3 = vld [vmem:[#allocation10 + $0xb8] sm:$0xf0]  ;;  %v855_v8 = vadd.f32 %v6127_v44, %v826_v52  ;;  %2885 = vmatpush.bf16.msrb.mxu2 %v4694_v26  ;;  %v6129_v57 = vld [vmem:[#allocation20_spill] sm:$0xff]  ;;  %v4942_v27 = vor.u32 %v5273_v24, %v4941_v7  ;;  %v5201_v52 = vld [vmem:[#allocation10 + $0x34] sm:$0xf] }
 0x459   :  { %v4726_v21 = vor.u32 %v5218_v3, %v4725_v46  ;;  %2898 = vmatpush.bf16.msrb.mxu3 %v4698_v50  ;;  %v5208_v46 = vld [vmem:[#allocation10 + $0x68] sm:$0xf0]  ;;  %v5207_v3 = vld [vmem:[#allocation10 + $0x64] sm:$0xf]  ;;  %v5198_v44 = vld [vmem:[#allocation10 + $0x1c] sm:$0xf] }
 0x45a   :  { %5337 = vtanh.f32 %v2452_v30  ;;  %v1029_v30 = vadd.f32 %v6128_v31, %v1000_v60  ;;  %v4659_v60 = vld [vmem:[#allocation10 + $0x3c] sm:$0xf0]  ;;  %v5199_v14 = vld [vmem:[#allocation10 + $0x20] sm:$0xf0]  ;;  %v5265_v50 = vld [vmem:[#allocation11 + $0xac] sm:$0xf0] }
 0x45b   :  { %2909 = vmatpush.bf16.msra.mxu0 %v4726_v21  ;;  %v4662_v53 = vor.u32 %v5201_v52, %v4659_v60  ;;  %v4646_v28 = vor.u32 %v5199_v14, %v4645_v33  ;;  %v5249_v15 = vld [vmem:[#allocation11 + $0x2c] sm:$0xf0] }
 0x45f   :  { %2910 = vmatpush.bf16.msra.mxu0 %v4714_v35  ;;  %v4686_v35 = vor.u32 %v5207_v3, %v4683_v59 }
 0x460   :  { %v5338_v51 = vpop.eup %5337 }
 0x461   :  { %v2455_v62 = vmul.f32 %v5338_v51, %v2454_v36  ;;  %v884_v36 = vadd.f32 %v6129_v57, %v855_v8  ;;  %2899 = vmatpush.bf16.msrb.mxu3 %v4686_v35  ;;  %v4647_v8 = vld [vmem:[#allocation10 + $0x24] sm:$0xf0] }
 0x462   :  { %v4650_v31 = vor.u32 %v5198_v44, %v4647_v8 }
 0x463   :  { %v5928_v29 = vadd.f32 %v2456_v4, %v2455_v62  ;;  %2911 = vmatpush.bf16.msra.mxu0 %v4702_v40  ;;  %v4654_v4 = vor.u32 %v5200_v10, %v4653_v58  ;;  %v6130_v40 = vld [vmem:[#allocation21_spill] sm:$0xff]  ;;  %v5196_v10 = vld [vmem:[#allocation10 + $0x8] sm:$0xf0] }
 0x464   :  { %v913_v6 = vadd.f32 %v6130_v40, %v884_v36  ;;  %v5195_v36 = vld [vmem:[#allocation10 + $0x4] sm:$0xf]  ;;  %v4878_v40 = vor.u32 %v5257_v45, %v4877_v34  ;;  %v5242_v34 = vld [vmem:[#allocation10 + $0xb8] sm:$0xf0] }
 0x465   :  { %v2466_v11 = vpack.c.bf16 %v5928_v29, %v5928_v29  ;;  %2900 = vmatpush.bf16.msrb.mxu3 %v4674_v17 }
 0x467   :  { %2635 = vmatmul.bf16.vlgmr.msra.gmra.mxu3 %v2466_v11  ;;  %2648 = vmatmul.bf16.vlgmr.msrb.gmra.mxu0 %v2466_v11 }
 0x468   :  { %2661 = vmatmul.bf16.vlgmr.msrb.gmra.mxu1 %v2466_v11  ;;  %2912 = vmatpush.bf16.msra.mxu0 %v4690_v2  ;;  %v4681_v11 = vld [vmem:[#allocation10 + $0x60] sm:$0xf]  ;;  %v5205_v2 = vld [vmem:[#allocation10 + $0x50] sm:$0xf0] }
 0x469   :  { %v4682_v21 = vor.u32 %v5208_v46, %v4681_v11  ;;  %v4670_v41 = vor.u32 %v5205_v2, %v4669_v63  ;;  %2901 = vmatpush.bf16.msrb.mxu3 %v4662_v53  ;;  %v5261_v46 = vld [vmem:[#allocation11 + $0x8c] sm:$0xf0] }
 0x46b   :  { %2886 = vmatpush.bf16.msrb.mxu2 %v4682_v21 }
 0x46c   :  { %2913 = vmatpush.bf16.msra.mxu0 %v4678_v18 }
 0x46d   :  { %2902 = vmatpush.bf16.msrb.mxu3 %v4650_v31 }
 0x46f   :  { %2887 = vmatpush.bf16.msrb.mxu2 %v4670_v41  ;;  %v4845_v41 = vld [vmem:[#allocation11 + $0x20] sm:$0xf] }
 0x470   :  { %2914 = vmatpush.bf16.msra.mxu0 %v4666_v42  ;;  %v5269_v42 = vld [vmem:[#allocation11 + $0xcc] sm:$0xf0]  ;;  %v4846_v17 = vor.u32 %v5249_v15, %v4845_v41  ;;  %v4791_v15 = vld [vmem:[#allocation10 + $0x78] sm:$0xf] }
 0x471   :  { %v4926_v26 = vor.u32 %v5269_v42, %v4925_v20 }
 0x473   :  { %2888 = vmatpush.bf16.msrb.mxu2 %v4658_v55 }
 0x474   :  { %2915 = vmatpush.bf16.msra.mxu0 %v4654_v4  ;;  %v4893_v4 = vld [vmem:[#allocation11 + $0x80] sm:$0xf] }
 0x477   :  { %2889 = vmatpush.bf16.msrb.mxu2 %v4646_v28 }
 0x478   :  { %2916 = vmatpush.bf16.msra.mxu0 %v4642_v61  ;;  %v5253_v61 = vld [vmem:[#allocation11 + $0x4c] sm:$0xf0] }
 0x47c   :  { %3451 = vmatpush.bf16.msrb.mxu0 %v4942_v27 }
 0x480   :  { %3452 = vmatpush.bf16.msrb.mxu0 %v4926_v26  ;;  %v6131_v26 = vld [vmem:[#allocation33_spill] sm:$0xff] }
 0x4e4   :  { %v2649_v32 = vpop.f32.mrf.mxu0 }
 0x4e5   :  { %v2686_v51 = vadd.f32 %v2649_v32, %v1029_v30  ;;  %v5941_v62 = vpop.f32.mrf.mxu1  ;;  %v4909_v30 = vld [vmem:[#allocation11 + $0xa0] sm:$0xf] }
 0x4e6   :  { %v4633_v32 = vld [vmem:[#allocation10] sm:$0xf]  ;;  %v4910_v57 = vor.u32 %v5265_v50, %v4909_v30  ;;  %v2706_v60 = vadd.f32 %v5923_v25, %v5941_v62 }
 0x4e7   :  { %v4630_v16 = vmul.f32 -1.442695, %v2686_v51  ;;  %v4635_v51 = vld [vmem:[#allocation10 + $0xc] sm:$0xf0]  ;;  %v4634_v11 = vor.u32 %v5196_v10, %v4633_v32 }
 0x4e8   :  { %v4638_v21 = vor.u32 %v5195_v36, %v4635_v51  ;;  %3453 = vmatpush.bf16.msrb.mxu0 %v4910_v57  ;;  %v3237_v57 = vmax.f32 %v5851_v54, 0.0  ;;  %v3240_v51 = vmax.f32 %v5914_v0, 0.0  ;;  %v4815_v54 = vld [vmem:[#allocation10 + $0xa8] sm:$0xf]  ;;  %v4823_v0 = vld [vmem:[#allocation10 + $0xb0] sm:$0xf] }
 0x4e9   :  { %5339 = vpow2.f32 %v4630_v16  ;;  %v4894_v16 = vor.u32 %v5261_v46, %v4893_v4  ;;  %2890 = vmatpush.bf16.msrb.mxu2 %v4634_v11  ;;  %v3239_v4 = vmax.f32 %v5893_v47, 0.0  ;;  %v4824_v45 = vor.u32 %v5242_v34, %v4823_v0  ;;  %v4745_v0 = vld [vmem:[#allocation10 + $0x24] sm:$0xf0]  ;;  %v4751_v34 = vld [vmem:[#allocation10 + $0x20] sm:$0xf] }
 0x4ea   :  { %v2636_v38 = vpop.f32.mrf.mxu3  ;;  %2903 = vmatpush.bf16.msrb.mxu3 %v4638_v21 }
 0x4eb   :  { %v2666_v23 = vadd.f32 %v2636_v38, %v913_v6  ;;  %v4861_v6 = vld [vmem:[#allocation11 + $0x40] sm:$0xf]  ;;  %v5966_v11 = vpack.c.bf16 %v3240_v51, %v3239_v4  ;;  %v4763_v51 = vld [vmem:[#allocation10 + $0x38] sm:$0xf]  ;;  %v5227_v4 = vld [vmem:[#allocation10 + $0x40] sm:$0xf0] }
 0x4ec   :  { %v2651_v18 = vpop.f32.mrf.mxu0  ;;  %3454 = vmatpush.bf16.msrb.mxu0 %v4894_v16  ;;  %v4862_v1 = vor.u32 %v5253_v61, %v4861_v6  ;;  %v5238_v6 = vld [vmem:[#allocation10 + $0x98] sm:$0xf0]  ;;  %v5237_v61 = vld [vmem:[#allocation10 + $0x94] sm:$0xf] }
 0x4ed   :  { %v4629_v56 = vmul.f32 -1.442695, %v2666_v23  ;;  %v2664_v43 = vpop.f32.mrf.mxu1 }
 0x4ee   :  { %v5245_v43 = vld [vmem:[#allocation11 + $0xc] sm:$0xf0]  ;;  %3165 = vmatpush.bf16.msra.mxu3 %v4824_v45 }
 0x4ef   :  { %v5340_v37 = vpop.eup %5339  ;;  %5341 = vpow2.f32 %v4629_v56  ;;  %v4829_v56 = vld [vmem:[#allocation11] sm:$0xf] }
 0x4f0   :  { %v5944_v9 = vadd.f32 1.0, %v5340_v37  ;;  %3455 = vmatpush.bf16.msrb.mxu0 %v4878_v40  ;;  %v4830_v52 = vor.u32 %v5245_v43, %v4829_v56  ;;  %v4803_v40 = vld [vmem:[#allocation10 + $0x90] sm:$0xf] }
 0x4f2   :  { %v2638_v58 = vpop.f32.mrf.mxu3  ;;  %5343 = vrcp.f32 %v5944_v9  ;;  %v2702_v42 = vand.u32 2147483648, %v5944_v9  ;;  %vm2696_vm13 = vweird.f32 %v5944_v9  ;;  %v2700_v14 = vand.u32 2147483647, %v5944_v9 }
 0x4f4   :  { %3456 = vmatpush.bf16.msrb.mxu0 %v4862_v1  ;;  %v2703_v8 = vor.u32 1.1754944e-38, %v2702_v42  ;;  %vm2701_vm15 = vcmp.eq.f32.partialorder %v2700_v14, 8.507059e+37  ;;  %v5239_v1 = vld [vmem:[#allocation10 + $0xa0] sm:$0xf0]  ;;  %v5229_v14 = vld [vmem:[#allocation10 + $0x50] sm:$0xf0] }
 0x4f5   :  { %v5342_v3 = vpop.eup %5341 }
 0x4f6   :  { %v2670_v59 = vadd.f32 1.0, %v5342_v3  ;;  %v3241_v3 = vmax.f32 %v5928_v29, 0.0 }
 0x4f8   :  { %5345 = vrcp.f32 %v2670_v59  ;;  %v5344_v35 = vpop.eup %5343  ;;  %v2682_v23 = vand.u32 2147483648, %v2670_v59  ;;  %v2680_v18 = vand.u32 2147483647, %v2670_v59  ;;  %vm2676_vm9 = vweird.f32 %v2670_v59  ;;  %3457 = vmatpush.bf16.msrb.mxu0 %v4846_v17  ;;  %v4793_v17 = vld [vmem:[#allocation10 + $0x84] sm:$0xf0] }
 0x4f9   :  { %v2692_v63 = vmul.f32 %v5344_v35, %v5944_v9  ;;  %vm2697_vm12 = vweird.f32 %v5344_v35  ;;  %v3238_v9 = vmax.f32 %v5881_v48, 0.0  ;;  %v5241_v48 = vld [vmem:[#allocation10 + $0xb0] sm:$0xf0] }
 0x4fa   :  { %v2683_v55 = vor.u32 1.1754944e-38, %v2682_v23  ;;  %vm2681_vm11 = vcmp.eq.f32.partialorder %v2680_v18, 8.507059e+37  ;;  %vm2698_vm14 = vmor %vm2696_vm13, %vm2697_vm12  ;;  %v4816_v16 = vor.u32 %v5241_v48, %v4815_v54  ;;  %v5236_v18 = vld [vmem:[#allocation10 + $0x88] sm:$0xf0]  ;;  %v4743_v48 = vld [vmem:[#allocation10 + $0x18] sm:$0xf] }
 0x4fb   :  { %v2693_v7 = vsub.f32 1.0, %v2692_v63  ;;  %v5961_v36 = vpack.c.bf16 %v3238_v9, %v3237_v57  ;;  %v4805_v63 = vld [vmem:[#allocation10 + $0x9c] sm:$0xf0] }
 0x4fc   :  { %3458 = vmatpush.bf16.msrb.mxu0 %v4830_v52  ;;  %3139 = vmatpush.bf16.msra.mxu1 %v4816_v16  ;;  %v4757_v57 = vld [vmem:[#allocation10 + $0x3c] sm:$0xf0]  ;;  %v5222_v16 = vld [vmem:[#allocation10 + $0x1c] sm:$0xf] }
 0x4fd   :  { %v2694_v39 = vmul.f32 %v5344_v35, %v2693_v7  ;;  %v5235_v7 = vld [vmem:[#allocation10 + $0x80] sm:$0xf0]  ;;  %v4748_v45 = vor.u32 %v5222_v16, %v4745_v0  ;;  %v4919_v16 = vld [vmem:[#allocation11 + $0xb8] sm:$0xf0] }
 0x4fe   :  { %v5346_v2 = vpop.eup %5345  ;;  %v4792_v23 = vor.u32 %v5235_v7, %v4791_v15 }
 0x4ff   :  { %v2672_v38 = vmul.f32 %v5346_v2, %v2670_v59  ;;  %vm2677_vm8 = vweird.f32 %v5346_v2  ;;  %v2695_v37 = vadd.f32 %v5344_v35, %v2694_v39  ;;  %v5240_v59 = vld [vmem:[#allocation10 + $0xac] sm:$0xf]  ;;  %v4779_v39 = vld [vmem:[#allocation10 + $0x60] sm:$0xf] }
 0x500   :  { %vm2678_vm10 = vmor %vm2676_vm9, %vm2677_vm8 }
 0x501   :  { %v2673_v24 = vsub.f32 1.0, %v2672_v38  ;;  %v2699_v44 = vsel %vm2698_vm14, %v5344_v35, %v2695_v37  ;;  %v4817_v35 = vld [vmem:[#allocation10 + $0xb4] sm:$0xf0]  ;;  %v4808_v38 = vor.u32 %v5237_v61, %v4805_v63  ;;  %v5233_v37 = vld [vmem:[#allocation10 + $0x70] sm:$0xf0] }
 0x502   :  { %v2704_v62 = vsel %vm2701_vm15, %v2703_v8, %v2699_v44  ;;  %v4820_v47 = vor.u32 %v5240_v59, %v4817_v35  ;;  %v4769_v44 = vld [vmem:[#allocation10 + $0x54] sm:$0xf0]  ;;  %v4775_v8 = vld [vmem:[#allocation10 + $0x50] sm:$0xf]  ;;  %v5223_v59 = vld [vmem:[#allocation10 + $0x20] sm:$0xf0] }
 0x503   :  { %v2674_v27 = vmul.f32 %v5346_v2, %v2673_v24  ;;  %v2710_v31 = vsub.f32 1.0, %v2704_v62  ;;  %v2712_v32 = vmul.f32 %v2704_v62, %v5928_v29  ;;  %v4804_v29 = vor.u32 %v5238_v6, %v4803_v40  ;;  %v5234_v24 = vld [vmem:[#allocation10 + $0x7c] sm:$0xf]  ;;  %v5220_v63 = vld [vmem:[#allocation10 + $0x8] sm:$0xf0] }
 0x504   :  { %3152 = vmatpush.bf16.msra.mxu2 %v4820_v47  ;;  %v4796_v56 = vor.u32 %v5234_v24, %v4793_v17  ;;  %v5230_v62 = vld [vmem:[#allocation10 + $0x58] sm:$0xf0]  ;;  %v4744_v35 = vor.u32 %v5223_v59, %v4743_v48  ;;  %v5224_v47 = vld [vmem:[#allocation10 + $0x28] sm:$0xf0]  ;;  %v4733_v24 = vld [vmem:[#allocation10 + $0xc] sm:$0xf0] }
 0x505   :  { %v2675_v12 = vadd.f32 %v5346_v2, %v2674_v27  ;;  %3140 = vmatpush.bf16.msra.mxu1 %v4804_v29  ;;  %v4799_v27 = vld [vmem:[#allocation10 + $0x80] sm:$0xf]  ;;  %v4752_v40 = vor.u32 %v5224_v47, %v4751_v34  ;;  %v5221_v17 = vld [vmem:[#allocation10 + $0x10] sm:$0xf0]  ;;  %v5266_v48 = vld [vmem:[#allocation11 + $0xb4] sm:$0xf0] }
 0x506   :  { %v4800_v43 = vor.u32 %v5236_v18, %v4799_v27  ;;  %v4731_v29 = vld [vmem:[#allocation10] sm:$0xf]  ;;  %v5264_v59 = vld [vmem:[#allocation11 + $0xac] sm:$0xf] }
 0x507   :  { %v2679_v20 = vsel %vm2678_vm10, %v5346_v2, %v2675_v12  ;;  %v4811_v2 = vld [vmem:[#allocation10 + $0x98] sm:$0xf]  ;;  %v5232_v12 = vld [vmem:[#allocation10 + $0x68] sm:$0xf0]  ;;  %v4732_v7 = vor.u32 %v5220_v63, %v4731_v29  ;;  %v4922_v47 = vor.u32 %v5264_v59, %v4919_v16  ;;  %v5259_v29 = vld [vmem:[#allocation11 + $0x84] sm:$0xf] }
 0x508   :  { %v2684_v53 = vsel %vm2681_vm11, %v2683_v55, %v2679_v20  ;;  %v4812_v41 = vor.u32 %v5239_v1, %v4811_v2  ;;  %3153 = vmatpush.bf16.msra.mxu2 %v4808_v38  ;;  %v5231_v55 = vld [vmem:[#allocation10 + $0x64] sm:$0xf]  ;;  %v4780_v52 = vor.u32 %v5232_v12, %v4779_v39  ;;  %v4787_v20 = vld [vmem:[#allocation10 + $0x68] sm:$0xf]  ;;  %v6132_v1 = vld [vmem:[#allocation24_spill] sm:$0xff] }
 0x509   :  { %v2707_v33 = vmul.f32 %v2706_v60, %v2684_v53  ;;  %3141 = vmatpush.bf16.msra.mxu1 %v4792_v23  ;;  %v4781_v60 = vld [vmem:[#allocation10 + $0x6c] sm:$0xf0]  ;;  %v4788_v42 = vor.u32 %v5233_v37, %v4787_v20  ;;  %v5219_v2 = vld [vmem:[#allocation10 + $0x4] sm:$0xf]  ;;  %v4739_v23 = vld [vmem:[#allocation10 + $0x8] sm:$0xf] }
 0x50a   :  { %3166 = vmatpush.bf16.msra.mxu3 %v4812_v41  ;;  %v4784_v53 = vor.u32 %v5231_v55, %v4781_v60  ;;  %v6133_v41 = vld [vmem:[#allocation30_spill] sm:$0xff]  ;;  %v4736_v27 = vor.u32 %v5219_v2, %v4733_v24  ;;  %v4740_v18 = vor.u32 %v5221_v17, %v4739_v23  ;;  %v4949_v39 = vld [vmem:[#allocation11 + $0xe8] sm:$0xf]  ;;  %v5274_v20 = vld [vmem:[#allocation11 + $0xf4] sm:$0xf0] }
 0x50b   :  { %v2708_v28 = vadd.f32 %v2707_v33, %v6131_v26  ;;  %v4767_v33 = vld [vmem:[#allocation10 + $0x48] sm:$0xf]  ;;  %v5228_v26 = vld [vmem:[#allocation10 + $0x4c] sm:$0xf]  ;;  %v5981_v37 = vld [vmem:[%s6110_s6] sm:$0xf] }
 0x50c   :  { %3154 = vmatpush.bf16.msra.mxu2 %v4796_v56  ;;  %v5271_v56 = vld [vmem:[#allocation11 + $0xe4] sm:$0xf]  ;;  %v4895_v63 = vld [vmem:[#allocation11 + $0x90] sm:$0xf0]  ;;  %v4901_v2 = vld [vmem:[#allocation11 + $0x88] sm:$0xf] }
 0x50d   :  { %5347 = vtanh.f32 %v2708_v28  ;;  %3142 = vmatpush.bf16.msra.mxu1 %v4780_v52  ;;  %v4768_v28 = vor.u32 %v5229_v14, %v4767_v33  ;;  %v4951_v33 = vld [vmem:[#allocation11 + $0xf8] sm:$0xf0]  ;;  %v5247_v59 = vld [vmem:[#allocation11 + $0x24] sm:$0xf]  ;;  %v4847_v16 = vld [vmem:[#allocation11 + $0x30] sm:$0xf0] }
 0x50e   :  { %3167 = vmatpush.bf16.msra.mxu3 %v4800_v43  ;;  %v4943_v43 = vld [vmem:[#allocation11 + $0xf0] sm:$0xf0]  ;;  %v4903_v24 = vld [vmem:[#allocation11 + $0x98] sm:$0xf0] }
 0x50f   :  { %v4946_v60 = vor.u32 %v5271_v56, %v4943_v43  ;;  %v4885_v43 = vld [vmem:[#allocation11 + $0x68] sm:$0xf] }
 0x510   :  { %3155 = vmatpush.bf16.msra.mxu2 %v4784_v53  ;;  %v4950_v53 = vor.u32 %v5274_v20, %v4949_v39  ;;  %v5258_v39 = vld [vmem:[#allocation11 + $0x74] sm:$0xf0] }
 0x511   :  { %3143 = vmatpush.bf16.msra.mxu1 %v4768_v28  ;;  %v4927_v28 = vld [vmem:[#allocation11 + $0xd0] sm:$0xf0] }
 0x512   :  { %3168 = vmatpush.bf16.msra.mxu3 %v4788_v42  ;;  %v5272_v42 = vld [vmem:[#allocation11 + $0xec] sm:$0xf] }
 0x513   :  { %v5348_v30 = vpop.eup %5347  ;;  %v4954_v14 = vor.u32 %v5272_v42, %v4951_v33 }
 0x514   :  { %v2711_v50 = vmul.f32 %v5348_v30, %v2710_v31  ;;  %v4772_v31 = vor.u32 %v5228_v26, %v4769_v44  ;;  %v4776_v30 = vor.u32 %v5230_v62, %v4775_v8  ;;  %v5267_v26 = vld [vmem:[#allocation11 + $0xc4] sm:$0xf]  ;;  %v4933_v44 = vld [vmem:[#allocation11 + $0xc8] sm:$0xf]  ;;  %v5270_v62 = vld [vmem:[#allocation11 + $0xd4] sm:$0xf0] }
 0x515   :  { %v4930_v8 = vor.u32 %v5267_v26, %v4927_v28  ;;  %v5251_v26 = vld [vmem:[#allocation11 + $0x44] sm:$0xf]  ;;  %v4863_v28 = vld [vmem:[#allocation11 + $0x50] sm:$0xf0] }
 0x516   :  { %v5955_v58 = vadd.f32 %v2712_v32, %v2711_v50  ;;  %3156 = vmatpush.bf16.msra.mxu2 %v4772_v31  ;;  %3169 = vmatpush.bf16.msra.mxu3 %v4776_v30  ;;  %v4755_v50 = vld [vmem:[#allocation10 + $0x30] sm:$0xf]  ;;  %v5226_v32 = vld [vmem:[#allocation10 + $0x38] sm:$0xf0]  ;;  %v5268_v31 = vld [vmem:[#allocation11 + $0xcc] sm:$0xf] }
 0x517   :  { %v4756_v9 = vor.u32 %v5226_v32, %v4755_v50  ;;  %v4935_v30 = vld [vmem:[#allocation11 + $0xd8] sm:$0xf0]  ;;  %v5984_v50 = vperm.slane %v5981_v37, 0  ;;  %v4934_v32 = vor.u32 %v5270_v62, %v4933_v44  ;;  %v4869_v44 = vld [vmem:[#allocation11 + $0x48] sm:$0xf] }
 0x518   :  { %v2722_v10 = vpack.c.bf16 %v5955_v58, %v5955_v58  ;;  %v3242_v46 = vmax.f32 %v5955_v58, 0.0 }
 0x519   :  { %3144 = vmatpush.bf16.msra.mxu1 %v4756_v9 }
 0x51a   :  { %2891 = vmatmul.bf16.vlgmr.msrb.gmra.mxu2 %v2722_v10  ;;  %2904 = vmatmul.bf16.vlgmr.msrb.gmra.mxu3 %v2722_v10  ;;  %v5971_v21 = vpack.c.bf16 %v3242_v46, %v3241_v3  ;;  %v4764_v3 = vor.u32 %v5227_v4, %v4763_v51  ;;  %v5263_v51 = vld [vmem:[#allocation11 + $0xa4] sm:$0xf]  ;;  %v4911_v4 = vld [vmem:[#allocation11 + $0xb0] sm:$0xf0] }
 0x51b   :  { %2917 = vmatmul.bf16.vlgmr.msra.gmra.mxu0 %v2722_v10  ;;  %v5225_v10 = vld [vmem:[#allocation10 + $0x34] sm:$0xf] }
 0x51c   :  { %v4760_v46 = vor.u32 %v5225_v10, %v4757_v57  ;;  %3170 = vmatpush.bf16.msra.mxu3 %v4764_v3  ;;  %v4938_v10 = vor.u32 %v5268_v31, %v4935_v30  ;;  %v4914_v3 = vor.u32 %v5263_v51, %v4911_v4  ;;  %v5371_v31 = vld [vmem:[#allocation5 + $0x20] sm:$0xff] }
 0x51d   :  { %3145 = vmatpush.bf16.msra.mxu1 %v4744_v35 }
 0x51e   :  { %3157 = vmatpush.bf16.msra.mxu2 %v4760_v46  ;;  %v4917_v46 = vld [vmem:[#allocation11 + $0xa8] sm:$0xf] }
 0x51f   :  { %v4918_v35 = vor.u32 %v5266_v48, %v4917_v46  ;;  %v4871_v46 = vld [vmem:[#allocation11 + $0x58] sm:$0xf0] }
 0x520   :  { %3171 = vmatpush.bf16.msra.mxu3 %v4752_v40 }
 0x521   :  { %3146 = vmatpush.bf16.msra.mxu1 %v4732_v7  ;;  %v5260_v7 = vld [vmem:[#allocation11 + $0x8c] sm:$0xf] }
 0x522   :  { %3158 = vmatpush.bf16.msra.mxu2 %v4748_v45  ;;  %v4906_v17 = vor.u32 %v5260_v7, %v4903_v24  ;;  %v4831_v7 = vld [vmem:[#allocation11 + $0x10] sm:$0xf0]  ;;  %v4837_v24 = vld [vmem:[#allocation11 + $0x8] sm:$0xf] }
 0x524   :  { %3172 = vmatpush.bf16.msra.mxu3 %v4740_v18  ;;  %v4879_v18 = vld [vmem:[#allocation11 + $0x70] sm:$0xf0] }
 0x525   :  { %3480 = vmatpush.bf16.msrb.mxu1 %v4946_v60  ;;  %v4887_v60 = vld [vmem:[#allocation11 + $0x78] sm:$0xf0] }
 0x526   :  { %3159 = vmatpush.bf16.msra.mxu2 %v4736_v27  ;;  %v5255_v27 = vld [vmem:[#allocation11 + $0x64] sm:$0xf] }
 0x527   :  { %v4882_v56 = vor.u32 %v5255_v27, %v4879_v18  ;;  %v5244_v27 = vld [vmem:[#allocation11 + $0xc] sm:$0xf]  ;;  %v4839_v18 = vld [vmem:[#allocation11 + $0x18] sm:$0xf0] }
 0x528   :  { %3538 = vmatpush.bf16.msrb.mxu3 %v4954_v14 }
 0x529   :  { %3481 = vmatpush.bf16.msrb.mxu1 %v4930_v8 }
 0x52a   :  { %3509 = vmatpush.bf16.msrb.mxu2 %v4950_v53 }
 0x52b   :  { %3459 = vmatmul.bf16.vlgmr.msrb.gmra.mxu0 %v5961_v36 }
 0x52c   :  { %3539 = vmatpush.bf16.msrb.mxu3 %v4938_v10  ;;  %v5254_v10 = vld [vmem:[#allocation11 + $0x54] sm:$0xf0] }
 0x52d   :  { %3482 = vmatpush.bf16.msrb.mxu1 %v4914_v3  ;;  %v4870_v4 = vor.u32 %v5254_v10, %v4869_v44 }
 0x52e   :  { %3510 = vmatpush.bf16.msrb.mxu2 %v4934_v32  ;;  %v4866_v32 = vor.u32 %v5251_v26, %v4863_v28 }
 0x530   :  { %3540 = vmatpush.bf16.msrb.mxu3 %v4922_v47  ;;  %v5248_v47 = vld [vmem:[#allocation11 + $0x2c] sm:$0xf] }
 0x532   :  { %3511 = vmatpush.bf16.msrb.mxu2 %v4918_v35 }
 0x534   :  { %3541 = vmatpush.bf16.msrb.mxu3 %v4906_v17  ;;  %v5246_v17 = vld [vmem:[#allocation11 + $0x14] sm:$0xf0] }
 0x53b   :  { %3464 = vmatmul.bf16.gmra.mxu0 %v5966_v11 }
 0x54b   :  { %3469 = vmatmul.bf16.gmra.mxu0 %v5971_v21 }
 0x598   :  { %v5974_v54 = vpop.f32.mrf.mxu0 }
 0x59d   :  { %v2892_v6 = vpop.f32.mrf.mxu2  ;;  %v2905_v61 = vpop.f32.mrf.mxu3 }
 0x59e   :  { %v2922_v38 = vadd.f32 %v2892_v6, %v6132_v1  ;;  %v2942_v15 = vadd.f32 %v2905_v61, %v6133_v41  ;;  %v5262_v1 = vld [vmem:[#allocation11 + $0x94] sm:$0xf0] }
 0x59f   :  { %v4902_v23 = vor.u32 %v5262_v1, %v4901_v2  ;;  %v4855_v2 = vld [vmem:[#allocation11 + $0x38] sm:$0xf0] }
 0x5a0   :  { %v4727_v12 = vmul.f32 -1.442695, %v2922_v38  ;;  %v4728_v55 = vmul.f32 -1.442695, %v2942_v15  ;;  %v2920_v52 = vpop.f32.mrf.mxu0  ;;  %v5370_v38 = vld [vmem:[#allocation5] sm:$0xff]  ;;  %v4898_v15 = vor.u32 %v5259_v29, %v4895_v63  ;;  %v4850_v63 = vor.u32 %v5247_v59, %v4847_v16 }
 0x5a1   :  { %3512 = vmatpush.bf16.msrb.mxu2 %v4902_v23  ;;  %v5256_v52 = vld [vmem:[#allocation11 + $0x6c] sm:$0xf]  ;;  %v5375_v59 = vld [vmem:[#allocation5 + $0xa0] sm:$0xff] }
 0x5a2   :  { %5349 = vpow2.f32 %v4727_v12  ;;  %3483 = vmatpush.bf16.msrb.mxu1 %v4898_v15  ;;  %v4890_v42 = vor.u32 %v5256_v52, %v4887_v60  ;;  %v5243_v15 = vld [vmem:[#allocation11 + $0x4] sm:$0xf] }
 0x5a3   :  { %5351 = vpow2.f32 %v4728_v55  ;;  %v4886_v55 = vor.u32 %v5258_v39, %v4885_v43  ;;  %v4834_v60 = vor.u32 %v5243_v15, %v4831_v7 }
 0x5a4   :  { %3542 = vmatpush.bf16.msrb.mxu3 %v4890_v42 }
 0x5a5   :  { %v2894_v9 = vpop.f32.mrf.mxu2  ;;  %v2907_v57 = vpop.f32.mrf.mxu3  ;;  %3513 = vmatpush.bf16.msrb.mxu2 %v4886_v55  ;;  %v5372_v55 = vld [vmem:[#allocation5 + $0x40] sm:$0xff] }
 0x5a6   :  { %3484 = vmatpush.bf16.msrb.mxu1 %v4882_v56  ;;  %v5252_v9 = vld [vmem:[#allocation11 + $0x4c] sm:$0xf]  ;;  %v2962_v56 = vadd.f32 %v5923_v25, %v5974_v54  ;;  %v4842_v25 = vor.u32 %v5244_v27, %v4839_v18 }
 0x5a7   :  { %v4874_v48 = vor.u32 %v5252_v9, %v4871_v46 }
 0x5a8   :  { %v5350_v0 = vpop.eup %5349  ;;  %v3460_v34 = vpop.f32.mrf.mxu0 }
 0x5a9   :  { %v5352_v45 = vpop.eup %5351  ;;  %v5986_v40 = vadd.f32 1.0, %v5350_v0  ;;  %v3461_v6 = vadd.f32 %v3460_v34, %v5984_v50  ;;  %v4853_v0 = vld [vmem:[#allocation11 + $0x28] sm:$0xf]  ;;  %v5250_v34 = vld [vmem:[#allocation11 + $0x34] sm:$0xf0]  ;;  %3514 = vmatpush.bf16.msrb.mxu2 %v4870_v4  ;;  %3543 = vmatpush.bf16.msrb.mxu3 %v4874_v48 }
 0x5aa   :  { %v5989_v61 = vadd.f32 1.0, %v5352_v45  ;;  %3485 = vmatpush.bf16.msrb.mxu1 %v4866_v32 }
 0x5ab   :  { %5353 = vrcp.f32 %v5986_v40  ;;  %v3567_v41 = vadd.f32 %v5370_v38, %v3461_v6  ;;  %v2938_v8 = vand.u32 2147483648, %v5986_v40  ;;  %v2936_v51 = vand.u32 2147483647, %v5986_v40 }
 0x5ac   :  { %5355 = vrcp.f32 %v5989_v61  ;;  %vm2932_vm1 = vweird.f32 %v5986_v40  ;;  %v2958_v42 = vand.u32 2147483648, %v5989_v61  ;;  %vm2952_vm5 = vweird.f32 %v5989_v61 }
 0x5ad   :  { %3599 = vst [vmem:[#allocation14] sm:$0xff] %v3567_v41  ;;  %v2939_v6 = vor.u32 1.1754944e-38, %v2938_v8  ;;  %v4854_v41 = vor.u32 %v5250_v34, %v4853_v0  ;;  %vm2937_vm3 = vcmp.eq.f32.partialorder %v2936_v51, 8.507059e+37  ;;  %v2956_v54 = vand.u32 2147483647, %v5989_v61  ;;  %v5374_v51 = vld [vmem:[#allocation5 + $0x80] sm:$0xff] }
 0x5ae   :  { %3486 = vmatpush.bf16.msrb.mxu1 %v4850_v63  ;;  %v2959_v28 = vor.u32 1.1754944e-38, %v2958_v42  ;;  %v6137_v0 = vld [vmem:[#allocation23_spill] sm:$0xff] }
 0x5af   :  { %3515 = vmatpush.bf16.msrb.mxu2 %v4854_v41  ;;  %vm2957_vm7 = vcmp.eq.f32.partialorder %v2956_v54, 8.507059e+37  ;;  %v6060_v54 = vperm.slane %v5981_v37, 3 }
 0x5b0   :  { %v3462_v12 = vpop.f32.mrf.mxu0 }
 0x5b1   :  { %v5354_v20 = vpop.eup %5353  ;;  %v3463_v53 = vadd.f32 %v3462_v12, %v5984_v50 }
 0x5b2   :  { %v5994_v33 = vpop.eup %5355  ;;  %v2928_v14 = vmul.f32 %v5354_v20, %v5986_v40  ;;  %vm2933_vm0 = vweird.f32 %v5354_v20  ;;  %v4858_v40 = vor.u32 %v5248_v47, %v4855_v2  ;;  %3487 = vmatpush.bf16.msrb.mxu1 %v4834_v60  ;;  %v6138_v47 = vld [vmem:[#allocation25_spill] sm:$0xff] }
 0x5b3   :  { %v2948_v62 = vmul.f32 %v5994_v33, %v5989_v61  ;;  %v3571_v30 = vadd.f32 %v5371_v31, %v3463_v53  ;;  %vm6003_vm2 = vmor %vm2932_vm1, %vm2933_vm0  ;;  %vm2953_vm4 = vweird.f32 %v5994_v33  ;;  %v5373_v31 = vld [vmem:[#allocation5 + $0x60] sm:$0xff]  ;;  %v6141_v2 = vld [vmem:[#allocation29_spill] sm:$0xff] }
 0x5b4   :  { %v2929_v57 = vsub.f32 1.0, %v2928_v14  ;;  %3544 = vmatpush.bf16.msrb.mxu3 %v4858_v40  ;;  %v4838_v14 = vor.u32 %v5246_v17, %v4837_v24  ;;  %vm2954_vm6 = vmor %vm2952_vm5, %vm2953_vm4 }
 0x5b5   :  { %v2949_v3 = vsub.f32 1.0, %v2948_v62  ;;  %3603 = vst [vmem:[#allocation14 + $0x20] sm:$0xff] %v3571_v30 }
 0x5b6   :  { %v2930_v35 = vmul.f32 %v5354_v20, %v2929_v57  ;;  %3516 = vmatpush.bf16.msrb.mxu2 %v4838_v14  ;;  %v6056_v14 = vperm.slane %v5981_v37, 2 }
 0x5b7   :  { %v2950_v29 = vmul.f32 %v5994_v33, %v2949_v3 }
 0x5b8   :  { %v2931_v1 = vadd.f32 %v5354_v20, %v2930_v35  ;;  %v3465_v38 = vpop.f32.mrf.mxu0  ;;  %3545 = vmatpush.bf16.msrb.mxu3 %v4842_v25 }
 0x5b9   :  { %v3466_v23 = vadd.f32 %v3465_v38, %v5984_v50  ;;  %v2951_v12 = vadd.f32 %v5994_v33, %v2950_v29  ;;  %v6140_v29 = vld [vmem:[#allocation26_spill] sm:$0xff]  ;;  %v6142_v38 = vld [vmem:[#allocation31_spill] sm:$0xff] }
 0x5ba   :  { %v2935_v43 = vsel %vm6003_vm2, %v5354_v20, %v2931_v1 }
 0x5bb   :  { %v2940_v39 = vsel %vm2937_vm3, %v2939_v6, %v2935_v43  ;;  %v3575_v52 = vadd.f32 %v5372_v55, %v3466_v23  ;;  %v2955_v26 = vsel %vm2954_vm6, %v5994_v33, %v2951_v12 }
 0x5bc   :  { %v2963_v53 = vmul.f32 %v2962_v56, %v2940_v39  ;;  %v2960_v62 = vsel %vm2957_vm7, %v2959_v28, %v2955_v26  ;;  %v6050_v56 = vperm.slane %v5981_v37, 1 }
 0x5bd   :  { %3607 = vst [vmem:[#allocation14 + $0x40] sm:$0xff] %v3575_v52  ;;  %v2966_v30 = vsub.f32 1.0, %v2960_v62  ;;  %v2968_v10 = vmul.f32 %v2960_v62, %v5955_v58  ;;  %v6136_v58 = vld [vmem:[#allocation22_spill] sm:$0xff] }
 0x5be   :  { %v2964_v20 = vadd.f32 %v2963_v53, %v5836_v5  ;;  %v831_v35 = vadd.f32 %v6136_v58, %v5693_v19  ;;  %v5376_v53 = vld [vmem:[#allocation5 + $0x8] sm:$0xff] }
 0x5c0   :  { %5357 = vtanh.f32 %v2964_v20  ;;  %v3467_v44 = vpop.f32.mrf.mxu0  ;;  %v860_v34 = vadd.f32 %v6137_v0, %v831_v35  ;;  %v5380_v35 = vld [vmem:[%s6109_s5] ss:$0 sm:$0xff]  ;;  %s5567_s5 = smov [#allocation14]  }
 0x5c1   :  { %v3468_v8 = vadd.f32 %v3467_v44, %v5984_v50  ;;  %s3635_s11 = sshll.u32 %s5567_s5, 4  ;;  %s3636_s11 = int_to_ptr.vmem [resolvable:$true] %s3635_s11 }
 0x5c2   :  { %v889_v45 = vadd.f32 %v6138_v47, %v860_v34  ;;  %v1150_v34 = vadd.f32 %v5859_v22, %v5840_v49 }
 0x5c3   :  { %v3579_v61 = vadd.f32 %v5373_v31, %v3468_v8 }
 0x5c4   :  { %v918_v63 = vadd.f32 %v6140_v29, %v889_v45 }
 0x5c5   :  { %3611 = vst [vmem:[#allocation14 + $0x60] sm:$0xff] %v3579_v61 }
 0x5c6   :  { %v5358_v5 = vpop.eup %5357 }
 0x5c7   :  { %v2967_v32 = vmul.f32 %v5358_v5, %v2966_v30 }
 0x5c8   :  { %v3470_v9 = vpop.f32.mrf.mxu0 }
 0x5c9   :  { %v3471_v33 = vadd.f32 %v3470_v9, %v5984_v50  ;;  %v6025_v57 = vadd.f32 %v2968_v10, %v2967_v32  ;;  %v5377_v32 = vld [vmem:[#allocation5 + $0x10] sm:$0xff] }
 0x5cb   :  { %v3583_v4 = vadd.f32 %v5374_v51, %v3471_v33  ;;  %v2978_v46 = vpack.c.bf16 %v6025_v57, %v6025_v57  ;;  %v5378_v33 = vld [vmem:[#allocation5 + $0x18] sm:$0xff] }
 0x5cd   :  { %3615 = vst [vmem:[#allocation14 + $0x80] sm:$0xff] %v3583_v4  ;;  %3147 = vmatmul.bf16.vlgmr.msra.gmra.mxu1 %v2978_v46  ;;  %3160 = vmatmul.bf16.vlgmr.msra.gmra.mxu2 %v2978_v46 }
 0x5ce   :  { %3173 = vmatmul.bf16.vlgmr.msra.gmra.mxu3 %v2978_v46 }
 0x5d0   :  { %v3472_v3 = vpop.f32.mrf.mxu0 }
 0x5d1   :  { %v3473_v48 = vadd.f32 %v3472_v3, %v5984_v50  ;;  %v5379_v3 = vld [vmem:[#allocation5 + $0x28] sm:$0xff] }
 0x5d3   :  { %v3587_v16 = vadd.f32 %v5375_v59, %v3473_v48 }
 0x5d5   :  { %3619 = vst [vmem:[#allocation14 + $0xa0] sm:$0xff] %v3587_v16 }
 0x5dd   :  { %3488 = vmatmul.bf16.vlgmr.msrb.gmra.mxu1 %v5961_v36  ;;  %3517 = vmatmul.bf16.vlgmr.msrb.gmra.mxu2 %v5961_v36 }
 0x5de   :  { %3546 = vmatmul.bf16.vlgmr.msrb.gmra.mxu3 %v5961_v36  ;;  %v6139_v36 = vld [vmem:[#allocation28_spill] sm:$0xff] }
 0x5df   :  { %v947_v6 = vadd.f32 %v6139_v36, %v5749_v13 }
 0x5ed   :  { %3493 = vmatmul.bf16.gmra.mxu1 %v5966_v11  ;;  %3522 = vmatmul.bf16.gmra.mxu2 %v5966_v11 }
 0x5ee   :  { %3551 = vmatmul.bf16.gmra.mxu3 %v5966_v11  ;;  %v976_v11 = vadd.f32 %v6141_v2, %v947_v6 }
 0x5f0   :  { %v1005_v41 = vadd.f32 %v6142_v38, %v976_v11 }
 0x5fd   :  { %3498 = vmatmul.bf16.gmra.mxu1 %v5971_v21  ;;  %3527 = vmatmul.bf16.gmra.mxu2 %v5971_v21 }
 0x5fe   :  { %3556 = vmatmul.bf16.gmra.mxu3 %v5971_v21  ;;  %v6143_v21 = vld [vmem:[#allocation32_spill] sm:$0xff] }
 0x5ff   :  { %v1034_v7 = vadd.f32 %v6143_v21, %v1005_v41  ;;  %v5382_v21 = vld [vmem:[#allocation5 + $0x38] sm:$0xff] }
 0x64a   :  { %v3148_v1 = vpop.f32.mrf.mxu1 }
 0x64b   :  { %v3178_v40 = vadd.f32 %v3148_v1, %v918_v63 }
 0x64d   :  { %v4825_v15 = vmul.f32 -1.442695, %v3178_v40  ;;  %v5381_v40 = vld [vmem:[#allocation5 + $0x30] sm:$0xff] }
 0x64f   :  { %5359 = vpow2.f32 %v4825_v15 }
 0x650   :  { %v3161_v19 = vpop.f32.mrf.mxu2 }
 0x651   :  { %v3198_v24 = vadd.f32 %v3161_v19, %v1034_v7  ;;  %v3174_v23 = vpop.f32.mrf.mxu3 }
 0x652   :  { %v3150_v17 = vpop.f32.mrf.mxu1  ;;  %v3218_v0 = vadd.f32 %v5380_v35, %v3174_v23 }
 0x653   :  { %v4826_v27 = vmul.f32 -1.442695, %v3198_v24  ;;  %v5383_v24 = vld [vmem:[#allocation5 + $0x48] sm:$0xff] }
 0x655   :  { %v5360_v18 = vpop.eup %5359  ;;  %5361 = vpow2.f32 %v4826_v27 }
 0x656   :  { %v3182_v13 = vadd.f32 1.0, %v5360_v18 }
 0x658   :  { %5363 = vrcp.f32 %v3182_v13  ;;  %v3163_v43 = vpop.f32.mrf.mxu2  ;;  %v3192_v62 = vand.u32 2147483647, %v3182_v13  ;;  %v3194_v31 = vand.u32 2147483648, %v3182_v13  ;;  %vm3188_vm9 = vweird.f32 %v3182_v13 }
 0x659   :  { %v3176_v39 = vpop.f32.mrf.mxu3 }
 0x65a   :  { %v3489_v12 = vpop.f32.mrf.mxu1  ;;  %v3195_v59 = vor.u32 1.1754944e-38, %v3194_v31  ;;  %vm3193_vm11 = vcmp.eq.f32.partialorder %v3192_v62, 8.507059e+37 }
 0x65b   :  { %v5362_v55 = vpop.eup %5361  ;;  %v3490_v52 = vadd.f32 %v3489_v12, %v6050_v56 }
 0x65c   :  { %v6053_v60 = vadd.f32 1.0, %v5362_v55 }
 0x65d   :  { %v3568_v42 = vadd.f32 %v5376_v53, %v3490_v52 }
 0x65e   :  { %v5364_v25 = vpop.eup %5363  ;;  %5365 = vrcp.f32 %v6053_v60  ;;  %v3214_v47 = vand.u32 2147483648, %v6053_v60  ;;  %vm3208_vm13 = vweird.f32 %v6053_v60  ;;  %v3212_v38 = vand.u32 2147483647, %v6053_v60 }
 0x65f   :  { %v3184_v20 = vmul.f32 %v5364_v25, %v3182_v13  ;;  %3600 = vst [vmem:[#allocation14 + $0x8] sm:$0xff] %v3568_v42  ;;  %vm3189_vm8 = vweird.f32 %v5364_v25 }
 0x660   :  { %v3518_v26 = vpop.f32.mrf.mxu2  ;;  %vm3190_vm10 = vmor %vm3188_vm9, %vm3189_vm8  ;;  %v3215_v19 = vor.u32 1.1754944e-38, %v3214_v47  ;;  %vm3213_vm15 = vcmp.eq.f32.partialorder %v3212_v38, 8.507059e+37 }
 0x661   :  { %v3185_v28 = vsub.f32 1.0, %v3184_v20  ;;  %v3519_v44 = vadd.f32 %v3518_v26, %v6056_v14  ;;  %v3547_v8 = vpop.f32.mrf.mxu3 }
 0x662   :  { %v3548_v61 = vadd.f32 %v3547_v8, %v6060_v54  ;;  %v3491_v30 = vpop.f32.mrf.mxu1 }
 0x663   :  { %v3186_v5 = vmul.f32 %v5364_v25, %v3185_v28  ;;  %v3569_v10 = vadd.f32 %v5377_v32, %v3519_v44  ;;  %v3492_v9 = vadd.f32 %v3491_v30, %v6050_v56  ;;  %v5386_v44 = vld [vmem:[#allocation5 + $0x68] sm:$0xff] }
 0x664   :  { %v5366_v37 = vpop.eup %5365  ;;  %v3570_v51 = vadd.f32 %v5378_v33, %v3548_v61  ;;  %v3243_v61 = vmax.f32 %v6025_v57, 0.0  ;;  %v5387_v33 = vld [vmem:[#allocation5 + $0x70] sm:$0xff] }
 0x665   :  { %v3204_v4 = vmul.f32 %v5366_v37, %v6053_v60  ;;  %v3187_v46 = vadd.f32 %v5364_v25, %v3186_v5  ;;  %3601 = vst [vmem:[#allocation14 + $0x10] sm:$0xff] %v3569_v10  ;;  %v3572_v48 = vadd.f32 %v5379_v3, %v3492_v9  ;;  %vm3209_vm12 = vweird.f32 %v5366_v37  ;;  %v5384_v60 = vld [vmem:[#allocation5 + $0x50] sm:$0xff] }
 0x666   :  { %3602 = vst [vmem:[#allocation14 + $0x18] sm:$0xff] %v3570_v51  ;;  %vm3210_vm14 = vmor %vm3208_vm13, %vm3209_vm12 }
 0x667   :  { %v3205_v16 = vsub.f32 1.0, %v3204_v4  ;;  %v3191_v58 = vsel %vm3190_vm10, %v5364_v25, %v3187_v46  ;;  %3604 = vst [vmem:[#allocation14 + $0x28] sm:$0xff] %v3572_v48  ;;  %v5385_v25 = vld [vmem:[#allocation5 + $0x58] sm:$0xff]  ;;  %v5389_v48 = vld [vmem:[#allocation5 + $0x88] sm:$0xff] }
 0x668   :  { %v3196_v45 = vsel %vm3193_vm11, %v3195_v59, %v3191_v58  ;;  %v3520_v36 = vpop.f32.mrf.mxu2  ;;  %v5388_v46 = vld [vmem:[#allocation5 + $0x78] sm:$0xff] }
 0x669   :  { %v3206_v6 = vmul.f32 %v5366_v37, %v3205_v16  ;;  %v3219_v29 = vmul.f32 %v3218_v0, %v3196_v45  ;;  %v3521_v63 = vadd.f32 %v3520_v36, %v6056_v14  ;;  %v3549_v2 = vpop.f32.mrf.mxu3  ;;  %v5391_v36 = vld [vmem:[#allocation5 + $0x98] sm:$0xff] }
 0x66a   :  { %v3550_v11 = vadd.f32 %v3549_v2, %v6060_v54  ;;  %v3494_v1 = vpop.f32.mrf.mxu1 }
 0x66b   :  { %v3220_v41 = vadd.f32 %v3219_v29, %v1150_v34  ;;  %v3573_v49 = vadd.f32 %v5381_v40, %v3521_v63  ;;  %v3495_v22 = vadd.f32 %v3494_v1, %v6050_v56  ;;  %v3207_v15 = vadd.f32 %v5366_v37, %v3206_v6  ;;  %v5390_v34 = vld [vmem:[#allocation5 + $0x90] sm:$0xff]  ;;  %v5392_v29 = vld [vmem:[#allocation5 + $0xa8] sm:$0xff] }
 0x66c   :  { %v3574_v7 = vadd.f32 %v5382_v21, %v3550_v11 }
 0x66d   :  { %5367 = vtanh.f32 %v3220_v41  ;;  %3605 = vst [vmem:[#allocation14 + $0x30] sm:$0xff] %v3573_v49  ;;  %v3576_v23 = vadd.f32 %v5383_v24, %v3495_v22  ;;  %v3211_v17 = vsel %vm3210_vm14, %v5366_v37, %v3207_v15  ;;  %v5393_v41 = vld [vmem:[#allocation5 + $0xb0] sm:$0xff]  ;;  %v5394_v49 = vld [vmem:[#allocation5 + $0xb8] sm:$0xff]  ;;  %v5395_v24 = vld [vmem:[#allocation5 + $0xc0] sm:$0xff] }
 0x66e   :  { %3606 = vst [vmem:[#allocation14 + $0x38] sm:$0xff] %v3574_v7  ;;  %v3216_v27 = vsel %vm3213_vm15, %v3215_v19, %v3211_v17  ;;  %v5396_v17 = vld [vmem:[#allocation5 + $0xc8] sm:$0xff] }
 0x66f   :  { %3608 = vst [vmem:[#allocation14 + $0x48] sm:$0xff] %v3576_v23  ;;  %v3222_v55 = vsub.f32 1.0, %v3216_v27  ;;  %v3224_v28 = vmul.f32 %v3216_v27, %v6025_v57 }
 0x670   :  { %v3523_v18 = vpop.f32.mrf.mxu2 }
 0x671   :  { %v3524_v13 = vadd.f32 %v3523_v18, %v6056_v14  ;;  %v3552_v43 = vpop.f32.mrf.mxu3 }
 0x672   :  { %v3553_v39 = vadd.f32 %v3552_v43, %v6060_v54  ;;  %v3496_v12 = vpop.f32.mrf.mxu1 }
 0x673   :  { %v5368_v52 = vpop.eup %5367  ;;  %v3577_v53 = vadd.f32 %v5384_v60, %v3524_v13  ;;  %v3497_v42 = vadd.f32 %v3496_v12, %v6050_v56 }
 0x674   :  { %v3578_v20 = vadd.f32 %v5385_v25, %v3553_v39  ;;  %v3223_v26 = vmul.f32 %v5368_v52, %v3222_v55  ;;  %v5398_v25 = vld [vmem:[#allocation5 + $0xd8] sm:$0xff] }
 0x675   :  { %3609 = vst [vmem:[#allocation14 + $0x50] sm:$0xff] %v3577_v53  ;;  %v3580_v8 = vadd.f32 %v5386_v44, %v3497_v42  ;;  %v5397_v53 = vld [vmem:[#allocation5 + $0xd0] sm:$0xff]  ;;  %v5400_v44 = vld [vmem:[#allocation5 + $0xe8] sm:$0xff] }
 0x676   :  { %3610 = vst [vmem:[#allocation14 + $0x58] sm:$0xff] %v3578_v20  ;;  %v3225_v62 = vadd.f32 %v3224_v28, %v3223_v26  ;;  %v5399_v26 = vld [vmem:[#allocation5 + $0xe0] sm:$0xff] }
 0x677   :  { %3612 = vst [vmem:[#allocation14 + $0x68] sm:$0xff] %v3580_v8 }
 0x678   :  { %v3525_v31 = vpop.f32.mrf.mxu2  ;;  %v3244_v30 = vmax.f32 %v3225_v62, 0.0 }
 0x679   :  { %v3526_v5 = vadd.f32 %v3525_v31, %v6056_v14  ;;  %v3554_v32 = vpop.f32.mrf.mxu3 }
 0x67a   :  { %v3555_v10 = vadd.f32 %v3554_v32, %v6060_v54  ;;  %v3499_v9 = vpop.f32.mrf.mxu1  ;;  %v3248_v37 = vpack.c.bf16 %v3244_v30, %v3243_v61 }
 0x67b   :  { %v3581_v51 = vadd.f32 %v5387_v33, %v3526_v5  ;;  %v3500_v4 = vadd.f32 %v3499_v9, %v6050_v56  ;;  %v5402_v5 = vld [vmem:[#allocation5 + $0xf8] sm:$0xff] }
 0x67c   :  { %v3582_v3 = vadd.f32 %v5388_v46, %v3555_v10  ;;  %3474 = vmatmul.bf16.gmra.mxu0 %v3248_v37  ;;  %3503 = vmatmul.bf16.gmra.mxu1 %v3248_v37 }
 0x67d   :  { %3613 = vst [vmem:[#allocation14 + $0x70] sm:$0xff] %v3581_v51  ;;  %v3584_v59 = vadd.f32 %v5389_v48, %v3500_v4  ;;  %3532 = vmatmul.bf16.gmra.mxu2 %v3248_v37  ;;  %3561 = vmatmul.bf16.gmra.mxu3 %v3248_v37 }
 0x67e   :  { %3614 = vst [vmem:[#allocation14 + $0x78] sm:$0xff] %v3582_v3 }
 0x67f   :  { %3616 = vst [vmem:[#allocation14 + $0x88] sm:$0xff] %v3584_v59 }
 0x680   :  { %v3528_v57 = vpop.f32.mrf.mxu2 }
 0x681   :  { %v3529_v16 = vadd.f32 %v3528_v57, %v6056_v14  ;;  %v3557_v58 = vpop.f32.mrf.mxu3 }
 0x682   :  { %v3558_v35 = vadd.f32 %v3557_v58, %v6060_v54  ;;  %v3501_v0 = vpop.f32.mrf.mxu1 }
 0x683   :  { %v3585_v47 = vadd.f32 %v5390_v34, %v3529_v16  ;;  %v3502_v45 = vadd.f32 %v3501_v0, %v6050_v56 }
 0x684   :  { %v3586_v6 = vadd.f32 %v5391_v36, %v3558_v35 }
 0x685   :  { %3617 = vst [vmem:[#allocation14 + $0x90] sm:$0xff] %v3585_v47  ;;  %v3588_v63 = vadd.f32 %v5392_v29, %v3502_v45 }
 0x686   :  { %3618 = vst [vmem:[#allocation14 + $0x98] sm:$0xff] %v3586_v6 }
 0x687   :  { %3620 = vst [vmem:[#allocation14 + $0xa8] sm:$0xff] %v3588_v63 }
 0x688   :  { %v3530_v2 = vpop.f32.mrf.mxu2 }
 0x689   :  { %v3531_v11 = vadd.f32 %v3530_v2, %v6056_v14  ;;  %v3559_v1 = vpop.f32.mrf.mxu3 }
 0x68a   :  { %v3560_v38 = vadd.f32 %v3559_v1, %v6060_v54 }
 0x68b   :  { %v3589_v40 = vadd.f32 %v5393_v41, %v3531_v11 }
 0x68c   :  { %v3590_v22 = vadd.f32 %v5394_v49, %v3560_v38 }
 0x68d   :  { %3621 = vst [vmem:[#allocation14 + $0xb0] sm:$0xff] %v3589_v40 }
 0x68e   :  { %3622 = vst [vmem:[#allocation14 + $0xb8] sm:$0xff] %v3590_v22 }
 0x6f9   :  { %v3475_v15 = vpop.f32.mrf.mxu0  ;;  %v3504_v21 = vpop.f32.mrf.mxu1 }
 0x6fa   :  { %v3476_v7 = vadd.f32 %v3475_v15, %v5984_v50  ;;  %v3505_v19 = vadd.f32 %v3504_v21, %v6050_v56 }
 0x6fc   :  { %v3591_v23 = vadd.f32 %v5395_v24, %v3476_v7  ;;  %v3592_v27 = vadd.f32 %v5396_v17, %v3505_v19 }
 0x6fe   :  { %3623 = vst [vmem:[#allocation14 + $0xc0] sm:$0xff] %v3591_v23 }
 0x6ff   :  { %3624 = vst [vmem:[#allocation14 + $0xc8] sm:$0xff] %v3592_v27 }
 0x700   :  { %v3533_v18 = vpop.f32.mrf.mxu2  ;;  %v3562_v13 = vpop.f32.mrf.mxu3 }
 0x701   :  { %v3534_v43 = vadd.f32 %v3533_v18, %v6056_v14  ;;  %v3563_v39 = vadd.f32 %v3562_v13, %v6060_v54  ;;  %v3477_v12 = vpop.f32.mrf.mxu0  ;;  %v3506_v55 = vpop.f32.mrf.mxu1 }
 0x702   :  { %v3478_v52 = vadd.f32 %v3477_v12, %v5984_v50  ;;  %v3507_v60 = vadd.f32 %v3506_v55, %v6050_v56  ;;  %v5401_v56 = vld [vmem:[#allocation5 + $0xf0] sm:$0xff] }
 0x703   :  { %v3593_v42 = vadd.f32 %v5397_v53, %v3534_v43  ;;  %v3594_v20 = vadd.f32 %v5398_v25, %v3563_v39 }
 0x704   :  { %v3595_v28 = vadd.f32 %v5399_v26, %v3478_v52  ;;  %v3596_v8 = vadd.f32 %v5400_v44, %v3507_v60 }
 0x705   :  { %3625 = vst [vmem:[#allocation14 + $0xd0] sm:$0xff] %v3593_v42 }
 0x706   :  { %3626 = vst [vmem:[#allocation14 + $0xd8] sm:$0xff] %v3594_v20 }
 0x707   :  { %3627 = vst [vmem:[#allocation14 + $0xe0] sm:$0xff] %v3595_v28 }
 0x708   :  { %3628 = vst [vmem:[#allocation14 + $0xe8] sm:$0xff] %v3596_v8  ;;  %v3535_v62 = vpop.f32.mrf.mxu2  ;;  %v3564_v31 = vpop.f32.mrf.mxu3 }
 0x709   :  { %v3536_v61 = vadd.f32 %v3535_v62, %v6056_v14  ;;  %v3565_v50 = vadd.f32 %v3564_v31, %v6060_v54 }
 0x70b   :  { %v3597_v30 = vadd.f32 %v5401_v56, %v3536_v61  ;;  %v3598_v32 = vadd.f32 %v5402_v5, %v3565_v50 }
 0x70d   :  { %3629 = vst [vmem:[#allocation14 + $0xf0] sm:$0xff] %v3597_v30 }
 0x70e   :  { %3630 = vst [vmem:[#allocation14 + $0xf8] sm:$0xff] %v3598_v32 }
 0x70f   :  { %3643 = dma.vmem_to_hbm [thread:$0]  %s3636_s11, 4096, %s3638_s14, [#allocation7], %s5562_s21, %s5562_s21, %s5563_s22  }
 0x710   :  { %5553 = dma.done.wait [#allocation7], 4096  }
 0x711   :  { %5554 = vsyncadd [#allocation7], 4294963200 }
 0x712   :  { %3648 = vsyncpa [#allocation6], 1 }
 0x713   :  { %3649 = vsyncpa [#allocation9], 1 }
 0x714   :  { %3650 = vsyncpa [#allocation12], 1 }
 0x715   :  { %3651 = vsyncpa [#allocation7], 1 }

</bundles_post_ra>
